<compile_context>
chip_gen: v5e
topology: v5e:2x2
jax: 0.10.0
libtpu: 0.0.40
codegen_flags: <defaults>
</compile_context>

<pallas_src>
import functools
import math
import numpy as np
import jax
import jax.numpy as jnp
from jax import lax
from jax.experimental import pallas as pl
from jax.experimental.pallas import tpu as pltpu

# ---- module "globals" (the torch file's constants), small & fixed ----------
MONO_NET_SM_LINEAR_1_SIZE = 32
MONO_NET_SM_LINEAR_2_SIZE = 32
MONO_NET_SM_GRU_NUM_UNITS = 32
MIDI_SYNTH_USE_STRING_EMBEDDING = True
USE_CONTEXT_NET = False
MIDI_SYNTH_USE_MFCC_INPUT = False
STRING_EMBEDDING_NUM = 6
STRING_EMBEDDING_SIZE = 8
NUM_OSCILLATORS = 16
NUM_FILTER_COEFFICIENTS = 16
MIDI_NORM = 127.0
MASK_STRING_DATA_WITH_CONDITIONING = True
EXTEND_STRING_MASK = True
STRING_MASK_LEFT_EXTEND_FRAMES = 2
STRING_MASK_RIGHT_EXTEND_FRAMES = 1

LN_EPS = 1e-5
LEAKY_SLOPE = 0.01          # nn.LeakyReLU default
LOG10 = math.log(10.0)
LOG2 = math.log(2.0)

NUM_INPUTS = 2 + STRING_EMBEDDING_SIZE   # pitch/vel + string embedding
NA = NUM_OSCILLATORS + 1                 # dense_amplitudes output size
NF = NUM_FILTER_COEFFICIENTS
OUT_W = NA + NF + 1                      # overall(1) + harm(16) + H(16) + f0(1)
OUT_PAD = 128                            # lane-dense output slab width


def _leaky(x):
    return jnp.where(x >= 0.0, x, LEAKY_SLOPE * x)


def _sigmoid(x):
    return 1.0 / (1.0 + jnp.exp(-x))


def _modified_sigmoid(x):
    # reference form: 2 * sigmoid(x) ** log(10) + 1e-7
    s = _sigmoid(x)
    return 2.0 * jnp.exp(LOG10 * jnp.log(s)) + 1e-7


def _modified_sigmoid_k(x):
    # numerically stable kernel form: 2 * exp(-log(10) * softplus(-x)) + 1e-7
    sp = jnp.maximum(-x, 0.0) + jnp.log(1.0 + jnp.exp(-jnp.abs(x)))
    return 2.0 * jnp.exp(-LOG10 * sp) + 1e-7


# ----------------------------- Pallas kernel -------------------------------
def mono_net_kernel(
    x_ref,                               # (T*Bc, Din)   time-major inputs
    w1_ref, wi_ref, wh_ref, w2_ref, whd_ref, bias_ref,
    out_ref,                             # (T*Bc, 128)   lane-dense output slab
    gi_s, gru_s,                         # VMEM scratch: (T*Bc, 3H), (T*Bc, H)
    *, T, Bc,
):
    TB = T * Bc
    H = wh_ref.shape[0]
    L1 = w1_ref.shape[1]
    L2 = w2_ref.shape[1]
    G3 = 3 * H

    # bias slab rows (static slices)
    b1 = bias_ref[0:1, 0:L1]
    bi = bias_ref[1:2, 0:G3]
    bh = bias_ref[2:3, 0:G3]
    b2 = bias_ref[3:4, 0:L2]
    ln_g = bias_ref[4:5, 0:L2]
    ln_b = bias_ref[5:6, 0:L2]
    bhd = bias_ref[6:7, 0:NA + NF]

    x = x_ref[...]

    # ---- linear1 + LeakyReLU, then HOISTED input-gate projection -----------
    x1 = _leaky(jnp.dot(x, w1_ref[...], preferred_element_type=jnp.float32) + b1)
    gi_s[...] = jnp.dot(x1, wi_ref[...], preferred_element_type=jnp.float32) + bi

    # ---- GRU recurrence: one packed (Bc,H)@(H,3H) matmul per step ----------
    wh = wh_ref[...]                     # hoist weight load out of the loop

    def gru_step(t, h):
        if isinstance(t, int):
            off = t * Bc                 # static slice (python unroll)
        else:
            off = pl.multiple_of(t * Bc, 8)
        g_i = gi_s[pl.ds(off, Bc), :]    # (Bc, 3H) precomputed input gates
        g_h = jnp.dot(h, wh, preferred_element_type=jnp.float32) + bh
        # one sigmoid over r|z lanes (single EUP push), then slice
        rz = _sigmoid(g_i[:, 0:2 * H] + g_h[:, 0:2 * H])
        r = rz[:, 0:H]
        z = rz[:, H:2 * H]
        n = jnp.tanh(g_i[:, 2 * H:3 * H] + r * g_h[:, 2 * H:3 * H])
        h_new = n + z * (h - n)          # == (1-z)*n + z*h, one fewer mul
        gru_s[pl.ds(off, Bc), :] = h_new
        return h_new

    h0 = jnp.zeros((Bc, H), jnp.float32)
    if T <= 16 and Bc < 64:
        # small static T and low vreg pressure: fully unroll with static indices
        h = h0
        for t in range(T):
            h = gru_step(t, h)
    else:
        unroll = 2 if Bc >= 64 else min(8, T)
        h = lax.fori_loop(0, T, gru_step, h0, unroll=unroll)

    # ---- linear2 + LeakyReLU + LayerNorm ------------------------------------
    g2d = gru_s[...]                                         # (TB, H), no reshape
    x2 = _leaky(jnp.dot(g2d, w2_ref[...],
                        preferred_element_type=jnp.float32) + b2)
    mu = jnp.mean(x2, axis=-1, keepdims=True)
    var = jnp.mean((x2 - mu) ** 2, axis=-1, keepdims=True)
    ln = (x2 - mu) * lax.rsqrt(var + LN_EPS) * ln_g + ln_b

    # ---- fused output heads: one (TB, L2) @ (L2, NA+NF) matmul --------------
    act = _modified_sigmoid_k(
        jnp.dot(ln, whd_ref[...], preferred_element_type=jnp.float32) + bhd)
    overall = act[:, 0:1]                                    # (TB, 1)
    logits = act[:, 1:NA]                                    # (TB, NO)
    logits = logits - jnp.max(logits, axis=-1, keepdims=True)
    e = jnp.exp(logits)
    # exact reciprocal (approx=True error is borderline vs 2e-4 tolerance)
    harm = e * pl.reciprocal(jnp.sum(e, axis=-1, keepdims=True), approx=False)
    hcoef = act[:, NA:NA + NF]                               # (TB, NF)

    # ---- f0 from conditioning (midi_to_hz); midi is column 0 of x -----------
    midi = x[:, 0:1] * MIDI_NORM                             # (TB, 1)
    f0 = 440.0 * jnp.exp(LOG2 * (midi - 69.0) / 12.0)
    f0 = jnp.where(midi <= 0.0, 0.0, f0)

    # ---- string mask with +-frame extension (frame shift = Bc rows) ---------
    if MASK_STRING_DATA_WITH_CONDITIONING:
        mask = jnp.where(f0 > 0.0, 1.0, 0.0)                 # (TB, 1)
        if EXTEND_STRING_MASK:
            le = STRING_MASK_LEFT_EXTEND_FRAMES * Bc
            re = STRING_MASK_RIGHT_EXTEND_FRAMES * Bc
            rows = lax.broadcasted_iota(jnp.int32, (TB, 1), 0)
            # left shift (frames t+le), zeros past the end
            if le == 0:
                left = mask
            elif le >= TB:
                left = jnp.zeros_like(mask)
            else:
                left = jnp.where(rows < TB - le,
                                 pltpu.roll(mask, shift=TB - le, axis=0), 0.0)
            # right shift (frames t-re), zeros before the start
            if re == 0:
                right = mask
            elif re >= TB:
                right = jnp.zeros_like(mask)
            else:
                right = jnp.where(rows >= re,
                                  pltpu.roll(mask, shift=re, axis=0), 0.0)
            mask = jnp.minimum(left + right, 1.0)
        overall = overall * mask
        harm = harm * mask
        hcoef = hcoef * mask

    # ---- one lane-dense (TB, 128) output store (unmasked vst) ---------------
    pad = jnp.zeros((TB, OUT_PAD - OUT_W), jnp.float32)
    out_ref[...] = jnp.concatenate([overall, harm, hcoef, f0, pad], axis=-1)


# ------------------------------ wrapper -------------------------------------
def mono_network_small(params, conditioning, string_idx, batch_blocks=1):
    """batch_blocks > 1 splits the batch over a 'parallel' grid axis so v7x's
    two TensorCores each run part of the recurrence.  Only honoured when each
    block gets >= 8 batch rows; on v5e/v6e (single TC) keep the default of 1."""
    B, T, _ = conditioning.shape

    # --- batch-block selection + padding so Bc % 8 == 0 (sublane alignment) --
    G = max(1, int(batch_blocks))
    if B < 8 * G:
        G = 1
    Bc = (-(-B // G) + 7) // 8 * 8       # per-block rows, multiple of 8, >= 8
    Bp = Bc * G                          # padded batch
    TBc = T * Bc

    # ---- glue: embedding gather + concat + time-major batch-block stacking --
    E = params["string_emb"].shape[-1]
    cond = conditioning.astype(jnp.float32)
    sidx = string_idx.astype(jnp.int32)
    if Bp > B:
        cond = jnp.concatenate(
            [cond, jnp.zeros((Bp - B, T, cond.shape[-1]), jnp.float32)], axis=0)
        sidx = jnp.concatenate([sidx, jnp.zeros((Bp - B,), jnp.int32)], axis=0)

    emb = params["string_emb"][sidx]                                # (Bp, E)
    emb = jnp.broadcast_to(emb[:, None, :], (Bp, T, E))
    inputs = jnp.concatenate([cond, emb], axis=-1)                  # (Bp, T, Din)
    Din = inputs.shape[-1]

    x_tm = jnp.transpose(inputs, (1, 0, 2))                         # (T, Bp, Din)
    if G == 1:
        x_g = x_tm.reshape(1, TBc, Din)
    else:
        x_g = x_tm.reshape(T, G, Bc, Din).transpose(1, 0, 2, 3).reshape(G, TBc, Din)

    # ---- pack parameters: 5 weight matrices + one (8,128) bias slab ---------
    w1 = params["w1_t"]                                             # (Din, L1)
    wi = jnp.concatenate([params["w_ir_t"], params["w_iz_t"], params["w_in_t"]],
                         axis=1)                                    # (L1, 3H)
    wh = jnp.concatenate([params["w_hr_t"], params["w_hz_t"], params["w_hn_t"]],
                         axis=1)                                    # (H, 3H)
    w2 = params["w2_t"]                                             # (H, L2)
    whd = jnp.concatenate([params["wa_t"], params["wf_t"]], axis=1) # (L2, NA+NF)

    def _row(v):
        v = v.reshape(1, -1).astype(jnp.float32)
        return jnp.pad(v, ((0, 0), (0, 128 - v.shape[1])))

    bias = jnp.concatenate([
        _row(params["b1"]),
        _row(jnp.concatenate([params["b_ir"], params["b_iz"], params["b_in"]], axis=1)),
        _row(jnp.concatenate([params["b_hr"], params["b_hz"], params["b_hn"]], axis=1)),
        _row(params["b2"]),
        _row(params["ln_g"]),
        _row(params["ln_b"]),
        _row(jnp.concatenate([params["ba"], params["bf"]], axis=1)),
        jnp.zeros((1, 128), jnp.float32),
    ], axis=0)                                                      # (8, 128)

    H = wh.shape[0]

    def full2d(a):
        return pl.BlockSpec(a.shape, lambda g: (0, 0))

    # explicit scoped-VMEM budget (generous but well under v7x's 64 MiB physical)
    est = TBc * 128 * 4 * 12 + (2 << 20)
    vmem_limit = int(min(max(est, 32 << 20), 56 << 20))

    grid_spec = pltpu.PrefetchScalarGridSpec(
        num_scalar_prefetch=0,
        grid=(G,),
        in_specs=[
            pl.BlockSpec((None, TBc, Din), lambda g: (g, 0, 0)),
            full2d(w1), full2d(wi), full2d(wh), full2d(w2), full2d(whd),
            full2d(bias),
        ],
        out_specs=pl.BlockSpec((None, TBc, OUT_PAD), lambda g: (g, 0, 0)),
        scratch_shapes=[
            pltpu.VMEM((TBc, 3 * H), jnp.float32),   # precomputed input gates
            pltpu.VMEM((TBc, H), jnp.float32),       # GRU outputs
        ],
    )

    kernel = functools.partial(mono_net_kernel, T=T, Bc=Bc)

    slab = pl.pallas_call(
        kernel,
        out_shape=jax.ShapeDtypeStruct((G, TBc, OUT_PAD), jnp.float32),
        grid_spec=grid_spec,
        compiler_params=pltpu.CompilerParams(
            dimension_semantics=("parallel",),
            vmem_limit_bytes=vmem_limit),
    )(x_g, w1, wi, wh, w2, whd, bias)

    # ---- split the slab back into the four PyTorch-layout outputs -----------
    # TODO(synk): if downstream consumers can take (T, B, .) / (B, T, NO)
    # layouts directly, skip these XLA transposes — for realistic T they move
    # more HBM bytes than the kernel itself.
    if G == 1:
        slab = slab.reshape(T, Bc, OUT_PAD)
    else:
        slab = slab.reshape(G, T, Bc, OUT_PAD).transpose(1, 0, 2, 3).reshape(T, Bp, OUT_PAD)
    slab = slab[:, :B, :OUT_W]                                       # drop pad rows/lanes
    NO = NUM_OSCILLATORS
    return {
        "overall_amplitude": slab[:, :, 0].T,                        # (B, T)
        "harm_distr": jnp.transpose(slab[:, :, 1:1 + NO], (1, 2, 0)),  # (B, NO, T)
        "H": jnp.transpose(slab[:, :, 1 + NO:1 + NO + NF], (1, 0, 2)),  # (B, T, NF)
        "f0": slab[:, :, OUT_W - 1].T,                               # (B, T)
    }


# ----------------------- deterministic parameter init -----------------------
def init_params(key):
    ks = jax.random.split(key, 16)
    L1, L2, H = MONO_NET_SM_LINEAR_1_SIZE, MONO_NET_SM_LINEAR_2_SIZE, MONO_NET_SM_GRU_NUM_UNITS
    Din = NUM_INPUTS

    def u(k, shape, fan_in):
        bound = 1.0 / math.sqrt(fan_in)
        return jax.random.uniform(k, shape, jnp.float32, -bound, bound)

    p = {}
    p["string_emb"] = jax.random.normal(
        ks[0], (STRING_EMBEDDING_NUM, STRING_EMBEDDING_SIZE), jnp.float32)

    w1 = u(ks[1], (L1, Din), Din)                 # torch Linear weight (out, in)
    p["w1_t"], p["b1"] = w1.T, u(ks[2], (1, L1), Din)

    wih = u(ks[3], (3 * H, L1), H)                # torch GRU weight_ih_l0
    whh = u(ks[4], (3 * H, H), H)                 # torch GRU weight_hh_l0
    bih = u(ks[5], (1, 3 * H), H)
    bhh = u(ks[6], (1, 3 * H), H)
    p["w_ir_t"], p["w_iz_t"], p["w_in_t"] = wih[:H].T, wih[H:2 * H].T, wih[2 * H:].T
    p["w_hr_t"], p["w_hz_t"], p["w_hn_t"] = whh[:H].T, whh[H:2 * H].T, whh[2 * H:].T
    p["b_ir"], p["b_iz"], p["b_in"] = bih[:, :H], bih[:, H:2 * H], bih[:, 2 * H:]
    p["b_hr"], p["b_hz"], p["b_hn"] = bhh[:, :H], bhh[:, H:2 * H], bhh[:, 2 * H:]

    w2 = u(ks[7], (L2, H), H)
    p["w2_t"], p["b2"] = w2.T, u(ks[8], (1, L2), H)
    p["ln_g"], p["ln_b"] = jnp.ones((1, L2), jnp.float32), jnp.zeros((1, L2), jnp.float32)

    wa = u(ks[9], (NA, L2), L2)
    p["wa_t"], p["ba"] = wa.T, u(ks[10], (1, NA), L2)
    wf = u(ks[11], (NF, L2), L2)
    p["wf_t"], p["bf"] = wf.T, u(ks[12], (1, NF), L2)
    return p


# --------------------------- pure-JAX reference ------------------------------
def reference_forward(params, conditioning, string_idx):
    B, T, _ = conditioning.shape
    emb = params["string_emb"][string_idx]
    emb = jnp.broadcast_to(emb[:, None, :], (B, T, emb.shape[-1]))
    x = jnp.concatenate([conditioning, emb], axis=-1)

    x1 = _leaky(x @ params["w1_t"] + params["b1"][0])

    H = MONO_NET_SM_GRU_NUM_UNITS

    def step(h, xt):
        r = _sigmoid(xt @ params["w_ir_t"] + params["b_ir"][0]
                     + h @ params["w_hr_t"] + params["b_hr"][0])
        z = _sigmoid(xt @ params["w_iz_t"] + params["b_iz"][0]
                     + h @ params["w_hz_t"] + params["b_hz"][0])
        n = jnp.tanh(xt @ params["w_in_t"] + params["b_in"][0]
                     + r * (h @ params["w_hn_t"] + params["b_hn"][0]))
        hn = (1.0 - z) * n + z * h
        return hn, hn

    _, ys = lax.scan(step, jnp.zeros((B, H), jnp.float32), jnp.transpose(x1, (1, 0, 2)))
    gru_out = jnp.transpose(ys, (1, 0, 2))

    x2 = _leaky(gru_out @ params["w2_t"] + params["b2"][0])
    mu = jnp.mean(x2, axis=-1, keepdims=True)
    var = jnp.mean((x2 - mu) ** 2, axis=-1, keepdims=True)
    ln = (x2 - mu) / jnp.sqrt(var + LN_EPS) * params["ln_g"][0] + params["ln_b"][0]

    amp = _modified_sigmoid(ln @ params["wa_t"] + params["ba"][0])
    Hc = _modified_sigmoid(ln @ params["wf_t"] + params["bf"][0])
    overall = amp[..., 0]
    harm = jax.nn.softmax(amp[..., 1:], axis=-1)
    harm = jnp.transpose(harm, (0, 2, 1))

    midi = conditioning[:, :, 0] * MIDI_NORM
    f0 = 440.0 * 2.0 ** ((midi - 69.0) / 12.0)
    f0 = jnp.where(midi <= 0.0, 0.0, f0)

    mask = jnp.where(f0 > 0.0, 1.0, 0.0)
    le, re = STRING_MASK_LEFT_EXTEND_FRAMES, STRING_MASK_RIGHT_EXTEND_FRAMES
    left = jnp.pad(mask[:, le:], ((0, 0), (0, le)))
    right = jnp.pad(mask[:, :T - re], ((0, 0), (re, 0))) if re > 0 else mask
    mask = jnp.clip(left + right, 0.0, 1.0)
    overall = overall * mask
    harm = harm * mask[:, None, :]
    Hc = Hc * mask[:, :, None]
    return {"overall_amplitude": overall, "harm_distr": harm, "H": Hc, "f0": f0}


if __name__ == "__main__":
    key = jax.random.PRNGKey(0)
    pkey, ckey, skey = jax.random.split(key, 3)
    params = init_params(pkey)

    # ---- small case (B=2): exercises batch padding to the 8-sublane boundary
    B, T = 2, 8
    conditioning = jax.random.uniform(ckey, (B, T, 2), jnp.float32, 0.3, 1.0)
    conditioning = conditioning.at[:, :2, 0].set(0.0)  # silent frames -> mask path
    string_idx = jnp.array([0, 3], dtype=jnp.int32)

    ref = reference_forward(params, conditioning, string_idx)
    for nb in (1, 2):     # nb=2 falls back to 1 here (would give < 8 rows/block)
        out = mono_network_small(params, conditioning, string_idx, batch_blocks=nb)
        out = jax.block_until_ready(out)
        for k in ("overall_amplitude", "harm_distr", "H", "f0"):
            np.testing.assert_allclose(np.asarray(out[k]), np.asarray(ref[k]),
                                       rtol=2e-4, atol=2e-4)

    # ---- larger case (B=16): exercises the 2-block 'parallel' grid (Bc=8) ----
    ck2, sk2 = jax.random.split(skey)
    B2, T2 = 16, 8
    conditioning2 = jax.random.uniform(ck2, (B2, T2, 2), jnp.float32, 0.3, 1.0)
    conditioning2 = conditioning2.at[:, :2, 0].set(0.0)
    string_idx2 = jax.random.randint(sk2, (B2,), 0, STRING_EMBEDDING_NUM).astype(jnp.int32)

    ref2 = reference_forward(params, conditioning2, string_idx2)
    out2 = mono_network_small(params, conditioning2, string_idx2, batch_blocks=2)
    out2 = jax.block_until_ready(out2)
    for k in ("overall_amplitude", "harm_distr", "H", "f0"):
        np.testing.assert_allclose(np.asarray(out2[k]), np.asarray(ref2[k]),
                                   rtol=2e-4, atol=2e-4)

    print("KERNEL_OK")
</pallas_src>

<mosaic_0001>
module attributes {stable_mosaic.version = 11 : i64} {
  func.func @mono_net_kernel(%arg0: i32, %arg1: memref<1x64x10xf32, #tpu.memory_space<vmem>>, %arg2: memref<10x32xf32, #tpu.memory_space<vmem>>, %arg3: memref<32x96xf32, #tpu.memory_space<vmem>>, %arg4: memref<32x96xf32, #tpu.memory_space<vmem>>, %arg5: memref<32x32xf32, #tpu.memory_space<vmem>>, %arg6: memref<32x33xf32, #tpu.memory_space<vmem>>, %arg7: memref<8x128xf32, #tpu.memory_space<vmem>>, %arg8: memref<1x64x128xf32, #tpu.memory_space<vmem>>, %arg9: memref<64x96xf32, #tpu.memory_space<vmem>>, %arg10: memref<64x32xf32, #tpu.memory_space<vmem>>) attributes {dimension_semantics = [#tpu.dimension_semantics<parallel>], iteration_bounds = array<i64: 1>, scalar_prefetch = 0 : i64, scratch_operands = 2 : i64, tpu.core_type = #tpu.core_type<tc>, window_params = [{transform_indices = @transform_0, window_bounds = array<i64: 1, 64, 10>}, {pipeline_mode = #tpu.pipeline_mode<synchronous>, transform_indices = @transform_1, window_bounds = array<i64: 10, 32>}, {pipeline_mode = #tpu.pipeline_mode<synchronous>, transform_indices = @transform_2, window_bounds = array<i64: 32, 96>}, {pipeline_mode = #tpu.pipeline_mode<synchronous>, transform_indices = @transform_3, window_bounds = array<i64: 32, 96>}, {pipeline_mode = #tpu.pipeline_mode<synchronous>, transform_indices = @transform_4, window_bounds = array<i64: 32, 32>}, {pipeline_mode = #tpu.pipeline_mode<synchronous>, transform_indices = @transform_5, window_bounds = array<i64: 32, 33>}, {pipeline_mode = #tpu.pipeline_mode<synchronous>, transform_indices = @transform_6, window_bounds = array<i64: 8, 128>}, {transform_indices = @transform_7, window_bounds = array<i64: 1, 64, 128>}]} {
    %c0 = arith.constant 0 : index
    %c0_0 = arith.constant 0 : index
    %0 = vector.load %arg7[%c0, %c0_0] : memref<8x128xf32, #tpu.memory_space<vmem>>, vector<1x32xf32>
    %c1 = arith.constant 1 : index
    %c0_1 = arith.constant 0 : index
    %1 = vector.load %arg7[%c1, %c0_1] : memref<8x128xf32, #tpu.memory_space<vmem>>, vector<1x96xf32>
    %c2 = arith.constant 2 : index
    %c0_2 = arith.constant 0 : index
    %2 = vector.load %arg7[%c2, %c0_2] : memref<8x128xf32, #tpu.memory_space<vmem>>, vector<1x96xf32>
    %c3 = arith.constant 3 : index
    %c0_3 = arith.constant 0 : index
    %3 = vector.load %arg7[%c3, %c0_3] : memref<8x128xf32, #tpu.memory_space<vmem>>, vector<1x32xf32>
    %c4 = arith.constant 4 : index
    %c0_4 = arith.constant 0 : index
    %4 = vector.load %arg7[%c4, %c0_4] : memref<8x128xf32, #tpu.memory_space<vmem>>, vector<1x32xf32>
    %c5 = arith.constant 5 : index
    %c0_5 = arith.constant 0 : index
    %5 = vector.load %arg7[%c5, %c0_5] : memref<8x128xf32, #tpu.memory_space<vmem>>, vector<1x32xf32>
    %c6 = arith.constant 6 : index
    %c0_6 = arith.constant 0 : index
    %6 = vector.load %arg7[%c6, %c0_6] : memref<8x128xf32, #tpu.memory_space<vmem>>, vector<1x33xf32>
    %c0_7 = arith.constant 0 : index
    %c0_8 = arith.constant 0 : index
    %c0_9 = arith.constant 0 : index
    %7 = vector.load %arg1[%c0_7, %c0_8, %c0_9] : memref<1x64x10xf32, #tpu.memory_space<vmem>>, vector<1x64x10xf32>
    %8 = vector.shape_cast %7 : vector<1x64x10xf32> to vector<64x10xf32>
    %c0_10 = arith.constant 0 : index
    %c0_11 = arith.constant 0 : index
    %9 = vector.load %arg2[%c0_10, %c0_11] : memref<10x32xf32, #tpu.memory_space<vmem>>, vector<10x32xf32>
    %cst = arith.constant dense<0.000000e+00> : vector<64x32xf32>
    %10 = tpu.matmul %8, %9, %cst {dimension_numbers = #tpu.dot_dimension_numbers<[1], [0], [0], [1], [0, 0, 1, 1], [], []>} : vector<64x10xf32>, vector<10x32xf32>, vector<64x32xf32> -> vector<64x32xf32>
    %11 = vector.broadcast %0 : vector<1x32xf32> to vector<64x32xf32>
    %12 = arith.addf %10, %11 : vector<64x32xf32>
    %cst_12 = arith.constant 0.000000e+00 : f32
    %13 = vector.broadcast %cst_12 : f32 to vector<64x32xf32>
    %14 = arith.cmpf oge, %12, %13 : vector<64x32xf32>
    %cst_13 = arith.constant 0.00999999977 : f32
    %15 = vector.broadcast %cst_13 : f32 to vector<64x32xf32>
    %16 = arith.mulf %15, %12 : vector<64x32xf32>
    %17 = arith.select %14, %12, %16 : vector<64x32xi1>, vector<64x32xf32>
    %c0_14 = arith.constant 0 : index
    %c0_15 = arith.constant 0 : index
    %18 = vector.load %arg3[%c0_14, %c0_15] : memref<32x96xf32, #tpu.memory_space<vmem>>, vector<32x96xf32>
    %cst_16 = arith.constant dense<0.000000e+00> : vector<64x96xf32>
    %19 = tpu.matmul %17, %18, %cst_16 {dimension_numbers = #tpu.dot_dimension_numbers<[1], [0], [0], [1], [0, 0, 1, 1], [], []>} : vector<64x32xf32>, vector<32x96xf32>, vector<64x96xf32> -> vector<64x96xf32>
    %20 = vector.broadcast %1 : vector<1x96xf32> to vector<64x96xf32>
    %21 = arith.addf %19, %20 : vector<64x96xf32>
    %c0_17 = arith.constant 0 : index
    %c0_18 = arith.constant 0 : index
    %22 = vector.load %arg9[%c0_17, %c0_18] : memref<64x96xf32, #tpu.memory_space<vmem>>, vector<64x96xf32>
    tpu.vector_store %arg9[%c0_17, %c0_18], %21 {strides = array<i32>} : memref<64x96xf32, #tpu.memory_space<vmem>>, vector<64x96xf32>,
    %c0_19 = arith.constant 0 : index
    %c0_20 = arith.constant 0 : index
    %23 = vector.load %arg4[%c0_19, %c0_20] : memref<32x96xf32, #tpu.memory_space<vmem>>, vector<32x96xf32>
    %cst_21 = arith.constant 0.000000e+00 : f32
    %24 = vector.broadcast %cst_21 : f32 to vector<8x32xf32>
    %c0_22 = arith.constant 0 : index
    %c0_23 = arith.constant 0 : index
    %25 = vector.load %arg9[%c0_22, %c0_23] : memref<64x96xf32, #tpu.memory_space<vmem>>, vector<8x96xf32>
    %cst_24 = arith.constant dense<0.000000e+00> : vector<8x96xf32>
    %26 = tpu.matmul %24, %23, %cst_24 {dimension_numbers = #tpu.dot_dimension_numbers<[1], [0], [0], [1], [0, 0, 1, 1], [], []>} : vector<8x32xf32>, vector<32x96xf32>, vector<8x96xf32> -> vector<8x96xf32>
    %27 = vector.broadcast %2 : vector<1x96xf32> to vector<8x96xf32>
    %28 = arith.addf %26, %27 : vector<8x96xf32>
    %29 = vector.extract_strided_slice %25 {offsets = [0, 0], sizes = [8, 64], strides = [1, 1]} : vector<8x96xf32> to vector<8x64xf32>
    %30 = vector.extract_strided_slice %28 {offsets = [0, 0], sizes = [8, 64], strides = [1, 1]} : vector<8x96xf32> to vector<8x64xf32>
    %31 = arith.addf %29, %30 : vector<8x64xf32>
    %cst_25 = arith.constant 0.000000e+00 : f32
    %32 = vector.broadcast %cst_25 : f32 to vector<8x64xf32>
    %33 = arith.subf %32, %31 : vector<8x64xf32>
    %34 = math.exp %33 : vector<8x64xf32>
    %cst_26 = arith.constant 1.000000e+00 : f32
    %35 = vector.broadcast %cst_26 : f32 to vector<8x64xf32>
    %36 = arith.addf %35, %34 : vector<8x64xf32>
    %cst_27 = arith.constant 1.000000e+00 : f32
    %37 = vector.broadcast %cst_27 : f32 to vector<8x64xf32>
    %38 = arith.divf %37, %36 : vector<8x64xf32>
    %39 = vector.extract_strided_slice %38 {offsets = [0, 0], sizes = [8, 32], strides = [1, 1]} : vector<8x64xf32> to vector<8x32xf32>
    %40 = vector.extract_strided_slice %38 {offsets = [0, 32], sizes = [8, 32], strides = [1, 1]} : vector<8x64xf32> to vector<8x32xf32>
    %41 = vector.extract_strided_slice %25 {offsets = [0, 64], sizes = [8, 32], strides = [1, 1]} : vector<8x96xf32> to vector<8x32xf32>
    %42 = vector.extract_strided_slice %28 {offsets = [0, 64], sizes = [8, 32], strides = [1, 1]} : vector<8x96xf32> to vector<8x32xf32>
    %43 = arith.mulf %39, %42 : vector<8x32xf32>
    %44 = arith.addf %41, %43 : vector<8x32xf32>
    %45 = math.tanh %44 : vector<8x32xf32>
    %46 = arith.subf %24, %45 : vector<8x32xf32>
    %47 = arith.mulf %40, %46 : vector<8x32xf32>
    %48 = arith.addf %45, %47 : vector<8x32xf32>
    %c0_28 = arith.constant 0 : index
    %c0_29 = arith.constant 0 : index
    %49 = vector.load %arg10[%c0_28, %c0_29] : memref<64x32xf32, #tpu.memory_space<vmem>>, vector<8x32xf32>
    tpu.vector_store %arg10[%c0_28, %c0_29], %48 {strides = array<i32>} : memref<64x32xf32, #tpu.memory_space<vmem>>, vector<8x32xf32>,
    %c8 = arith.constant 8 : index
    %c0_30 = arith.constant 0 : index
    %50 = vector.load %arg9[%c8, %c0_30] : memref<64x96xf32, #tpu.memory_space<vmem>>, vector<8x96xf32>
    %cst_31 = arith.constant dense<0.000000e+00> : vector<8x96xf32>
    %51 = tpu.matmul %48, %23, %cst_31 {dimension_numbers = #tpu.dot_dimension_numbers<[1], [0], [0], [1], [0, 0, 1, 1], [], []>} : vector<8x32xf32>, vector<32x96xf32>, vector<8x96xf32> -> vector<8x96xf32>
    %52 = vector.broadcast %2 : vector<1x96xf32> to vector<8x96xf32>
    %53 = arith.addf %51, %52 : vector<8x96xf32>
    %54 = vector.extract_strided_slice %50 {offsets = [0, 0], sizes = [8, 64], strides = [1, 1]} : vector<8x96xf32> to vector<8x64xf32>
    %55 = vector.extract_strided_slice %53 {offsets = [0, 0], sizes = [8, 64], strides = [1, 1]} : vector<8x96xf32> to vector<8x64xf32>
    %56 = arith.addf %54, %55 : vector<8x64xf32>
    %cst_32 = arith.constant 0.000000e+00 : f32
    %57 = vector.broadcast %cst_32 : f32 to vector<8x64xf32>
    %58 = arith.subf %57, %56 : vector<8x64xf32>
    %59 = math.exp %58 : vector<8x64xf32>
    %cst_33 = arith.constant 1.000000e+00 : f32
    %60 = vector.broadcast %cst_33 : f32 to vector<8x64xf32>
    %61 = arith.addf %60, %59 : vector<8x64xf32>
    %cst_34 = arith.constant 1.000000e+00 : f32
    %62 = vector.broadcast %cst_34 : f32 to vector<8x64xf32>
    %63 = arith.divf %62, %61 : vector<8x64xf32>
    %64 = vector.extract_strided_slice %63 {offsets = [0, 0], sizes = [8, 32], strides = [1, 1]} : vector<8x64xf32> to vector<8x32xf32>
    %65 = vector.extract_strided_slice %63 {offsets = [0, 32], sizes = [8, 32], strides = [1, 1]} : vector<8x64xf32> to vector<8x32xf32>
    %66 = vector.extract_strided_slice %50 {offsets = [0, 64], sizes = [8, 32], strides = [1, 1]} : vector<8x96xf32> to vector<8x32xf32>
    %67 = vector.extract_strided_slice %53 {offsets = [0, 64], sizes = [8, 32], strides = [1, 1]} : vector<8x96xf32> to vector<8x32xf32>
    %68 = arith.mulf %64, %67 : vector<8x32xf32>
    %69 = arith.addf %66, %68 : vector<8x32xf32>
    %70 = math.tanh %69 : vector<8x32xf32>
    %71 = arith.subf %48, %70 : vector<8x32xf32>
    %72 = arith.mulf %65, %71 : vector<8x32xf32>
    %73 = arith.addf %70, %72 : vector<8x32xf32>
    %c8_35 = arith.constant 8 : index
    %c0_36 = arith.constant 0 : index
    %74 = vector.load %arg10[%c8_35, %c0_36] : memref<64x32xf32, #tpu.memory_space<vmem>>, vector<8x32xf32>
    tpu.vector_store %arg10[%c8_35, %c0_36], %73 {strides = array<i32>} : memref<64x32xf32, #tpu.memory_space<vmem>>, vector<8x32xf32>,
    %c16 = arith.constant 16 : index
    %c0_37 = arith.constant 0 : index
    %75 = vector.load %arg9[%c16, %c0_37] : memref<64x96xf32, #tpu.memory_space<vmem>>, vector<8x96xf32>
    %cst_38 = arith.constant dense<0.000000e+00> : vector<8x96xf32>
    %76 = tpu.matmul %73, %23, %cst_38 {dimension_numbers = #tpu.dot_dimension_numbers<[1], [0], [0], [1], [0, 0, 1, 1], [], []>} : vector<8x32xf32>, vector<32x96xf32>, vector<8x96xf32> -> vector<8x96xf32>
    %77 = vector.broadcast %2 : vector<1x96xf32> to vector<8x96xf32>
    %78 = arith.addf %76, %77 : vector<8x96xf32>
    %79 = vector.extract_strided_slice %75 {offsets = [0, 0], sizes = [8, 64], strides = [1, 1]} : vector<8x96xf32> to vector<8x64xf32>
    %80 = vector.extract_strided_slice %78 {offsets = [0, 0], sizes = [8, 64], strides = [1, 1]} : vector<8x96xf32> to vector<8x64xf32>
    %81 = arith.addf %79, %80 : vector<8x64xf32>
    %cst_39 = arith.constant 0.000000e+00 : f32
    %82 = vector.broadcast %cst_39 : f32 to vector<8x64xf32>
    %83 = arith.subf %82, %81 : vector<8x64xf32>
    %84 = math.exp %83 : vector<8x64xf32>
    %cst_40 = arith.constant 1.000000e+00 : f32
    %85 = vector.broadcast %cst_40 : f32 to vector<8x64xf32>
    %86 = arith.addf %85, %84 : vector<8x64xf32>
    %cst_41 = arith.constant 1.000000e+00 : f32
    %87 = vector.broadcast %cst_41 : f32 to vector<8x64xf32>
    %88 = arith.divf %87, %86 : vector<8x64xf32>
    %89 = vector.extract_strided_slice %88 {offsets = [0, 0], sizes = [8, 32], strides = [1, 1]} : vector<8x64xf32> to vector<8x32xf32>
    %90 = vector.extract_strided_slice %88 {offsets = [0, 32], sizes = [8, 32], strides = [1, 1]} : vector<8x64xf32> to vector<8x32xf32>
    %91 = vector.extract_strided_slice %75 {offsets = [0, 64], sizes = [8, 32], strides = [1, 1]} : vector<8x96xf32> to vector<8x32xf32>
    %92 = vector.extract_strided_slice %78 {offsets = [0, 64], sizes = [8, 32], strides = [1, 1]} : vector<8x96xf32> to vector<8x32xf32>
    %93 = arith.mulf %89, %92 : vector<8x32xf32>
    %94 = arith.addf %91, %93 : vector<8x32xf32>
    %95 = math.tanh %94 : vector<8x32xf32>
    %96 = arith.subf %73, %95 : vector<8x32xf32>
    %97 = arith.mulf %90, %96 : vector<8x32xf32>
    %98 = arith.addf %95, %97 : vector<8x32xf32>
    %c16_42 = arith.constant 16 : index
    %c0_43 = arith.constant 0 : index
    %99 = vector.load %arg10[%c16_42, %c0_43] : memref<64x32xf32, #tpu.memory_space<vmem>>, vector<8x32xf32>
    tpu.vector_store %arg10[%c16_42, %c0_43], %98 {strides = array<i32>} : memref<64x32xf32, #tpu.memory_space<vmem>>, vector<8x32xf32>,
    %c24 = arith.constant 24 : index
    %c0_44 = arith.constant 0 : index
    %100 = vector.load %arg9[%c24, %c0_44] : memref<64x96xf32, #tpu.memory_space<vmem>>, vector<8x96xf32>
    %cst_45 = arith.constant dense<0.000000e+00> : vector<8x96xf32>
    %101 = tpu.matmul %98, %23, %cst_45 {dimension_numbers = #tpu.dot_dimension_numbers<[1], [0], [0], [1], [0, 0, 1, 1], [], []>} : vector<8x32xf32>, vector<32x96xf32>, vector<8x96xf32> -> vector<8x96xf32>
    %102 = vector.broadcast %2 : vector<1x96xf32> to vector<8x96xf32>
    %103 = arith.addf %101, %102 : vector<8x96xf32>
    %104 = vector.extract_strided_slice %100 {offsets = [0, 0], sizes = [8, 64], strides = [1, 1]} : vector<8x96xf32> to vector<8x64xf32>
    %105 = vector.extract_strided_slice %103 {offsets = [0, 0], sizes = [8, 64], strides = [1, 1]} : vector<8x96xf32> to vector<8x64xf32>
    %106 = arith.addf %104, %105 : vector<8x64xf32>
    %cst_46 = arith.constant 0.000000e+00 : f32
    %107 = vector.broadcast %cst_46 : f32 to vector<8x64xf32>
    %108 = arith.subf %107, %106 : vector<8x64xf32>
    %109 = math.exp %108 : vector<8x64xf32>
    %cst_47 = arith.constant 1.000000e+00 : f32
    %110 = vector.broadcast %cst_47 : f32 to vector<8x64xf32>
    %111 = arith.addf %110, %109 : vector<8x64xf32>
    %cst_48 = arith.constant 1.000000e+00 : f32
    %112 = vector.broadcast %cst_48 : f32 to vector<8x64xf32>
    %113 = arith.divf %112, %111 : vector<8x64xf32>
    %114 = vector.extract_strided_slice %113 {offsets = [0, 0], sizes = [8, 32], strides = [1, 1]} : vector<8x64xf32> to vector<8x32xf32>
    %115 = vector.extract_strided_slice %113 {offsets = [0, 32], sizes = [8, 32], strides = [1, 1]} : vector<8x64xf32> to vector<8x32xf32>
    %116 = vector.extract_strided_slice %100 {offsets = [0, 64], sizes = [8, 32], strides = [1, 1]} : vector<8x96xf32> to vector<8x32xf32>
    %117 = vector.extract_strided_slice %103 {offsets = [0, 64], sizes = [8, 32], strides = [1, 1]} : vector<8x96xf32> to vector<8x32xf32>
    %118 = arith.mulf %114, %117 : vector<8x32xf32>
    %119 = arith.addf %116, %118 : vector<8x32xf32>
    %120 = math.tanh %119 : vector<8x32xf32>
    %121 = arith.subf %98, %120 : vector<8x32xf32>
    %122 = arith.mulf %115, %121 : vector<8x32xf32>
    %123 = arith.addf %120, %122 : vector<8x32xf32>
    %c24_49 = arith.constant 24 : index
    %c0_50 = arith.constant 0 : index
    %124 = vector.load %arg10[%c24_49, %c0_50] : memref<64x32xf32, #tpu.memory_space<vmem>>, vector<8x32xf32>
    tpu.vector_store %arg10[%c24_49, %c0_50], %123 {strides = array<i32>} : memref<64x32xf32, #tpu.memory_space<vmem>>, vector<8x32xf32>,
    %c32 = arith.constant 32 : index
    %c0_51 = arith.constant 0 : index
    %125 = vector.load %arg9[%c32, %c0_51] : memref<64x96xf32, #tpu.memory_space<vmem>>, vector<8x96xf32>
    %cst_52 = arith.constant dense<0.000000e+00> : vector<8x96xf32>
    %126 = tpu.matmul %123, %23, %cst_52 {dimension_numbers = #tpu.dot_dimension_numbers<[1], [0], [0], [1], [0, 0, 1, 1], [], []>} : vector<8x32xf32>, vector<32x96xf32>, vector<8x96xf32> -> vector<8x96xf32>
    %127 = vector.broadcast %2 : vector<1x96xf32> to vector<8x96xf32>
    %128 = arith.addf %126, %127 : vector<8x96xf32>
    %129 = vector.extract_strided_slice %125 {offsets = [0, 0], sizes = [8, 64], strides = [1, 1]} : vector<8x96xf32> to vector<8x64xf32>
    %130 = vector.extract_strided_slice %128 {offsets = [0, 0], sizes = [8, 64], strides = [1, 1]} : vector<8x96xf32> to vector<8x64xf32>
    %131 = arith.addf %129, %130 : vector<8x64xf32>
    %cst_53 = arith.constant 0.000000e+00 : f32
    %132 = vector.broadcast %cst_53 : f32 to vector<8x64xf32>
    %133 = arith.subf %132, %131 : vector<8x64xf32>
    %134 = math.exp %133 : vector<8x64xf32>
    %cst_54 = arith.constant 1.000000e+00 : f32
    %135 = vector.broadcast %cst_54 : f32 to vector<8x64xf32>
    %136 = arith.addf %135, %134 : vector<8x64xf32>
    %cst_55 = arith.constant 1.000000e+00 : f32
    %137 = vector.broadcast %cst_55 : f32 to vector<8x64xf32>
    %138 = arith.divf %137, %136 : vector<8x64xf32>
    %139 = vector.extract_strided_slice %138 {offsets = [0, 0], sizes = [8, 32], strides = [1, 1]} : vector<8x64xf32> to vector<8x32xf32>
    %140 = vector.extract_strided_slice %138 {offsets = [0, 32], sizes = [8, 32], strides = [1, 1]} : vector<8x64xf32> to vector<8x32xf32>
    %141 = vector.extract_strided_slice %125 {offsets = [0, 64], sizes = [8, 32], strides = [1, 1]} : vector<8x96xf32> to vector<8x32xf32>
    %142 = vector.extract_strided_slice %128 {offsets = [0, 64], sizes = [8, 32], strides = [1, 1]} : vector<8x96xf32> to vector<8x32xf32>
    %143 = arith.mulf %139, %142 : vector<8x32xf32>
    %144 = arith.addf %141, %143 : vector<8x32xf32>
    %145 = math.tanh %144 : vector<8x32xf32>
    %146 = arith.subf %123, %145 : vector<8x32xf32>
    %147 = arith.mulf %140, %146 : vector<8x32xf32>
    %148 = arith.addf %145, %147 : vector<8x32xf32>
    %c32_56 = arith.constant 32 : index
    %c0_57 = arith.constant 0 : index
    %149 = vector.load %arg10[%c32_56, %c0_57] : memref<64x32xf32, #tpu.memory_space<vmem>>, vector<8x32xf32>
    tpu.vector_store %arg10[%c32_56, %c0_57], %148 {strides = array<i32>} : memref<64x32xf32, #tpu.memory_space<vmem>>, vector<8x32xf32>,
    %c40 = arith.constant 40 : index
    %c0_58 = arith.constant 0 : index
    %150 = vector.load %arg9[%c40, %c0_58] : memref<64x96xf32, #tpu.memory_space<vmem>>, vector<8x96xf32>
    %cst_59 = arith.constant dense<0.000000e+00> : vector<8x96xf32>
    %151 = tpu.matmul %148, %23, %cst_59 {dimension_numbers = #tpu.dot_dimension_numbers<[1], [0], [0], [1], [0, 0, 1, 1], [], []>} : vector<8x32xf32>, vector<32x96xf32>, vector<8x96xf32> -> vector<8x96xf32>
    %152 = vector.broadcast %2 : vector<1x96xf32> to vector<8x96xf32>
    %153 = arith.addf %151, %152 : vector<8x96xf32>
    %154 = vector.extract_strided_slice %150 {offsets = [0, 0], sizes = [8, 64], strides = [1, 1]} : vector<8x96xf32> to vector<8x64xf32>
    %155 = vector.extract_strided_slice %153 {offsets = [0, 0], sizes = [8, 64], strides = [1, 1]} : vector<8x96xf32> to vector<8x64xf32>
    %156 = arith.addf %154, %155 : vector<8x64xf32>
    %cst_60 = arith.constant 0.000000e+00 : f32
    %157 = vector.broadcast %cst_60 : f32 to vector<8x64xf32>
    %158 = arith.subf %157, %156 : vector<8x64xf32>
    %159 = math.exp %158 : vector<8x64xf32>
    %cst_61 = arith.constant 1.000000e+00 : f32
    %160 = vector.broadcast %cst_61 : f32 to vector<8x64xf32>
    %161 = arith.addf %160, %159 : vector<8x64xf32>
    %cst_62 = arith.constant 1.000000e+00 : f32
    %162 = vector.broadcast %cst_62 : f32 to vector<8x64xf32>
    %163 = arith.divf %162, %161 : vector<8x64xf32>
    %164 = vector.extract_strided_slice %163 {offsets = [0, 0], sizes = [8, 32], strides = [1, 1]} : vector<8x64xf32> to vector<8x32xf32>
    %165 = vector.extract_strided_slice %163 {offsets = [0, 32], sizes = [8, 32], strides = [1, 1]} : vector<8x64xf32> to vector<8x32xf32>
    %166 = vector.extract_strided_slice %150 {offsets = [0, 64], sizes = [8, 32], strides = [1, 1]} : vector<8x96xf32> to vector<8x32xf32>
    %167 = vector.extract_strided_slice %153 {offsets = [0, 64], sizes = [8, 32], strides = [1, 1]} : vector<8x96xf32> to vector<8x32xf32>
    %168 = arith.mulf %164, %167 : vector<8x32xf32>
    %169 = arith.addf %166, %168 : vector<8x32xf32>
    %170 = math.tanh %169 : vector<8x32xf32>
    %171 = arith.subf %148, %170 : vector<8x32xf32>
    %172 = arith.mulf %165, %171 : vector<8x32xf32>
    %173 = arith.addf %170, %172 : vector<8x32xf32>
    %c40_63 = arith.constant 40 : index
    %c0_64 = arith.constant 0 : index
    %174 = vector.load %arg10[%c40_63, %c0_64] : memref<64x32xf32, #tpu.memory_space<vmem>>, vector<8x32xf32>
    tpu.vector_store %arg10[%c40_63, %c0_64], %173 {strides = array<i32>} : memref<64x32xf32, #tpu.memory_space<vmem>>, vector<8x32xf32>,
    %c48 = arith.constant 48 : index
    %c0_65 = arith.constant 0 : index
    %175 = vector.load %arg9[%c48, %c0_65] : memref<64x96xf32, #tpu.memory_space<vmem>>, vector<8x96xf32>
    %cst_66 = arith.constant dense<0.000000e+00> : vector<8x96xf32>
    %176 = tpu.matmul %173, %23, %cst_66 {dimension_numbers = #tpu.dot_dimension_numbers<[1], [0], [0], [1], [0, 0, 1, 1], [], []>} : vector<8x32xf32>, vector<32x96xf32>, vector<8x96xf32> -> vector<8x96xf32>
    %177 = vector.broadcast %2 : vector<1x96xf32> to vector<8x96xf32>
    %178 = arith.addf %176, %177 : vector<8x96xf32>
    %179 = vector.extract_strided_slice %175 {offsets = [0, 0], sizes = [8, 64], strides = [1, 1]} : vector<8x96xf32> to vector<8x64xf32>
    %180 = vector.extract_strided_slice %178 {offsets = [0, 0], sizes = [8, 64], strides = [1, 1]} : vector<8x96xf32> to vector<8x64xf32>
    %181 = arith.addf %179, %180 : vector<8x64xf32>
    %cst_67 = arith.constant 0.000000e+00 : f32
    %182 = vector.broadcast %cst_67 : f32 to vector<8x64xf32>
    %183 = arith.subf %182, %181 : vector<8x64xf32>
    %184 = math.exp %183 : vector<8x64xf32>
    %cst_68 = arith.constant 1.000000e+00 : f32
    %185 = vector.broadcast %cst_68 : f32 to vector<8x64xf32>
    %186 = arith.addf %185, %184 : vector<8x64xf32>
    %cst_69 = arith.constant 1.000000e+00 : f32
    %187 = vector.broadcast %cst_69 : f32 to vector<8x64xf32>
    %188 = arith.divf %187, %186 : vector<8x64xf32>
    %189 = vector.extract_strided_slice %188 {offsets = [0, 0], sizes = [8, 32], strides = [1, 1]} : vector<8x64xf32> to vector<8x32xf32>
    %190 = vector.extract_strided_slice %188 {offsets = [0, 32], sizes = [8, 32], strides = [1, 1]} : vector<8x64xf32> to vector<8x32xf32>
    %191 = vector.extract_strided_slice %175 {offsets = [0, 64], sizes = [8, 32], strides = [1, 1]} : vector<8x96xf32> to vector<8x32xf32>
    %192 = vector.extract_strided_slice %178 {offsets = [0, 64], sizes = [8, 32], strides = [1, 1]} : vector<8x96xf32> to vector<8x32xf32>
    %193 = arith.mulf %189, %192 : vector<8x32xf32>
    %194 = arith.addf %191, %193 : vector<8x32xf32>
    %195 = math.tanh %194 : vector<8x32xf32>
    %196 = arith.subf %173, %195 : vector<8x32xf32>
    %197 = arith.mulf %190, %196 : vector<8x32xf32>
    %198 = arith.addf %195, %197 : vector<8x32xf32>
    %c48_70 = arith.constant 48 : index
    %c0_71 = arith.constant 0 : index
    %199 = vector.load %arg10[%c48_70, %c0_71] : memref<64x32xf32, #tpu.memory_space<vmem>>, vector<8x32xf32>
    tpu.vector_store %arg10[%c48_70, %c0_71], %198 {strides = array<i32>} : memref<64x32xf32, #tpu.memory_space<vmem>>, vector<8x32xf32>,
    %c56 = arith.constant 56 : index
    %c0_72 = arith.constant 0 : index
    %200 = vector.load %arg9[%c56, %c0_72] : memref<64x96xf32, #tpu.memory_space<vmem>>, vector<8x96xf32>
    %cst_73 = arith.constant dense<0.000000e+00> : vector<8x96xf32>
    %201 = tpu.matmul %198, %23, %cst_73 {dimension_numbers = #tpu.dot_dimension_numbers<[1], [0], [0], [1], [0, 0, 1, 1], [], []>} : vector<8x32xf32>, vector<32x96xf32>, vector<8x96xf32> -> vector<8x96xf32>
    %202 = vector.broadcast %2 : vector<1x96xf32> to vector<8x96xf32>
    %203 = arith.addf %201, %202 : vector<8x96xf32>
    %204 = vector.extract_strided_slice %200 {offsets = [0, 0], sizes = [8, 64], strides = [1, 1]} : vector<8x96xf32> to vector<8x64xf32>
    %205 = vector.extract_strided_slice %203 {offsets = [0, 0], sizes = [8, 64], strides = [1, 1]} : vector<8x96xf32> to vector<8x64xf32>
    %206 = arith.addf %204, %205 : vector<8x64xf32>
    %cst_74 = arith.constant 0.000000e+00 : f32
    %207 = vector.broadcast %cst_74 : f32 to vector<8x64xf32>
    %208 = arith.subf %207, %206 : vector<8x64xf32>
    %209 = math.exp %208 : vector<8x64xf32>
    %cst_75 = arith.constant 1.000000e+00 : f32
    %210 = vector.broadcast %cst_75 : f32 to vector<8x64xf32>
    %211 = arith.addf %210, %209 : vector<8x64xf32>
    %cst_76 = arith.constant 1.000000e+00 : f32
    %212 = vector.broadcast %cst_76 : f32 to vector<8x64xf32>
    %213 = arith.divf %212, %211 : vector<8x64xf32>
    %214 = vector.extract_strided_slice %213 {offsets = [0, 0], sizes = [8, 32], strides = [1, 1]} : vector<8x64xf32> to vector<8x32xf32>
    %215 = vector.extract_strided_slice %213 {offsets = [0, 32], sizes = [8, 32], strides = [1, 1]} : vector<8x64xf32> to vector<8x32xf32>
    %216 = vector.extract_strided_slice %200 {offsets = [0, 64], sizes = [8, 32], strides = [1, 1]} : vector<8x96xf32> to vector<8x32xf32>
    %217 = vector.extract_strided_slice %203 {offsets = [0, 64], sizes = [8, 32], strides = [1, 1]} : vector<8x96xf32> to vector<8x32xf32>
    %218 = arith.mulf %214, %217 : vector<8x32xf32>
    %219 = arith.addf %216, %218 : vector<8x32xf32>
    %220 = math.tanh %219 : vector<8x32xf32>
    %221 = arith.subf %198, %220 : vector<8x32xf32>
    %222 = arith.mulf %215, %221 : vector<8x32xf32>
    %223 = arith.addf %220, %222 : vector<8x32xf32>
    %c56_77 = arith.constant 56 : index
    %c0_78 = arith.constant 0 : index
    %224 = vector.load %arg10[%c56_77, %c0_78] : memref<64x32xf32, #tpu.memory_space<vmem>>, vector<8x32xf32>
    tpu.vector_store %arg10[%c56_77, %c0_78], %223 {strides = array<i32>} : memref<64x32xf32, #tpu.memory_space<vmem>>, vector<8x32xf32>,
    %c0_79 = arith.constant 0 : index
    %c0_80 = arith.constant 0 : index
    %225 = vector.load %arg10[%c0_79, %c0_80] : memref<64x32xf32, #tpu.memory_space<vmem>>, vector<64x32xf32>
    %c0_81 = arith.constant 0 : index
    %c0_82 = arith.constant 0 : index
    %226 = vector.load %arg5[%c0_81, %c0_82] : memref<32x32xf32, #tpu.memory_space<vmem>>, vector<32x32xf32>
    %cst_83 = arith.constant dense<0.000000e+00> : vector<64x32xf32>
    %227 = tpu.matmul %225, %226, %cst_83 {dimension_numbers = #tpu.dot_dimension_numbers<[1], [0], [0], [1], [0, 0, 1, 1], [], []>} : vector<64x32xf32>, vector<32x32xf32>, vector<64x32xf32> -> vector<64x32xf32>
    %228 = vector.broadcast %3 : vector<1x32xf32> to vector<64x32xf32>
    %229 = arith.addf %227, %228 : vector<64x32xf32>
    %cst_84 = arith.constant 0.000000e+00 : f32
    %230 = vector.broadcast %cst_84 : f32 to vector<64x32xf32>
    %231 = arith.cmpf oge, %229, %230 : vector<64x32xf32>
    %cst_85 = arith.constant 0.00999999977 : f32
    %232 = vector.broadcast %cst_85 : f32 to vector<64x32xf32>
    %233 = arith.mulf %232, %229 : vector<64x32xf32>
    %234 = arith.select %231, %229, %233 : vector<64x32xi1>, vector<64x32xf32>
    %cst_86 = arith.constant dense<0.000000e+00> : vector<64xf32>
    %235 = vector.multi_reduction <add>, %234, %cst_86 [1] : vector<64x32xf32> to vector<64xf32>
    %236 = vector.shape_cast %235 : vector<64xf32> to vector<64x1xf32>
    %cst_87 = arith.constant 3.200000e+01 : f32
    %237 = vector.broadcast %cst_87 : f32 to vector<64x1xf32>
    %238 = arith.divf %236, %237 : vector<64x1xf32>
    %239 = vector.broadcast %238 : vector<64x1xf32> to vector<64x32xf32>
    %240 = arith.subf %234, %239 : vector<64x32xf32>
    %241 = arith.mulf %240, %240 : vector<64x32xf32>
    %cst_88 = arith.constant dense<0.000000e+00> : vector<64xf32>
    %242 = vector.multi_reduction <add>, %241, %cst_88 [1] : vector<64x32xf32> to vector<64xf32>
    %243 = vector.shape_cast %242 : vector<64xf32> to vector<64x1xf32>
    %cst_89 = arith.constant 3.200000e+01 : f32
    %244 = vector.broadcast %cst_89 : f32 to vector<64x1xf32>
    %245 = arith.divf %243, %244 : vector<64x1xf32>
    %246 = vector.broadcast %238 : vector<64x1xf32> to vector<64x32xf32>
    %247 = arith.subf %234, %246 : vector<64x32xf32>
    %cst_90 = arith.constant 9.99999974E-6 : f32
    %248 = vector.broadcast %cst_90 : f32 to vector<64x1xf32>
    %249 = arith.addf %245, %248 : vector<64x1xf32>
    %250 = math.rsqrt %249 : vector<64x1xf32>
    %251 = vector.broadcast %250 : vector<64x1xf32> to vector<64x32xf32>
    %252 = arith.mulf %247, %251 : vector<64x32xf32>
    %253 = vector.broadcast %4 : vector<1x32xf32> to vector<64x32xf32>
    %254 = arith.mulf %252, %253 : vector<64x32xf32>
    %255 = vector.broadcast %5 : vector<1x32xf32> to vector<64x32xf32>
    %256 = arith.addf %254, %255 : vector<64x32xf32>
    %c0_91 = arith.constant 0 : index
    %c0_92 = arith.constant 0 : index
    %257 = vector.load %arg6[%c0_91, %c0_92] : memref<32x33xf32, #tpu.memory_space<vmem>>, vector<32x33xf32>
    %cst_93 = arith.constant dense<0.000000e+00> : vector<64x33xf32>
    %258 = tpu.matmul %256, %257, %cst_93 {dimension_numbers = #tpu.dot_dimension_numbers<[1], [0], [0], [1], [0, 0, 1, 1], [], []>} : vector<64x32xf32>, vector<32x33xf32>, vector<64x33xf32> -> vector<64x33xf32>
    %259 = vector.broadcast %6 : vector<1x33xf32> to vector<64x33xf32>
    %260 = arith.addf %258, %259 : vector<64x33xf32>
    %cst_94 = arith.constant 0.000000e+00 : f32
    %261 = vector.broadcast %cst_94 : f32 to vector<64x33xf32>
    %262 = arith.subf %261, %260 : vector<64x33xf32>
    %cst_95 = arith.constant 0.000000e+00 : f32
    %263 = vector.broadcast %cst_95 : f32 to vector<64x33xf32>
    %264 = arith.maximumf %262, %263 : vector<64x33xf32>
    %265 = math.absf %260 : vector<64x33xf32>
    %cst_96 = arith.constant 0.000000e+00 : f32
    %266 = vector.broadcast %cst_96 : f32 to vector<64x33xf32>
    %267 = arith.subf %266, %265 : vector<64x33xf32>
    %268 = math.exp %267 : vector<64x33xf32>
    %cst_97 = arith.constant 1.000000e+00 : f32
    %269 = vector.broadcast %cst_97 : f32 to vector<64x33xf32>
    %270 = arith.addf %269, %268 : vector<64x33xf32>
    %271 = math.log %270 : vector<64x33xf32>
    %272 = arith.addf %264, %271 : vector<64x33xf32>
    %cst_98 = arith.constant -2.30258512 : f32
    %273 = vector.broadcast %cst_98 : f32 to vector<64x33xf32>
    %274 = arith.mulf %273, %272 : vector<64x33xf32>
    %275 = math.exp %274 : vector<64x33xf32>
    %cst_99 = arith.constant 2.000000e+00 : f32
    %276 = vector.broadcast %cst_99 : f32 to vector<64x33xf32>
    %277 = arith.mulf %276, %275 : vector<64x33xf32>
    %cst_100 = arith.constant 1.000000e-07 : f32
    %278 = vector.broadcast %cst_100 : f32 to vector<64x33xf32>
    %279 = arith.addf %277, %278 : vector<64x33xf32>
    %280 = vector.extract_strided_slice %279 {offsets = [0, 0], sizes = [64, 1], strides = [1, 1]} : vector<64x33xf32> to vector<64x1xf32>
    %281 = vector.extract_strided_slice %279 {offsets = [0, 1], sizes = [64, 16], strides = [1, 1]} : vector<64x33xf32> to vector<64x16xf32>
    %cst_101 = arith.constant dense<0xFF800000> : vector<64xf32>
    %282 = vector.multi_reduction <maximumf>, %281, %cst_101 [1] : vector<64x16xf32> to vector<64xf32>
    %283 = vector.shape_cast %282 : vector<64xf32> to vector<64x1xf32>
    %284 = vector.broadcast %283 : vector<64x1xf32> to vector<64x16xf32>
    %285 = arith.subf %281, %284 : vector<64x16xf32>
    %286 = math.exp %285 : vector<64x16xf32>
    %cst_102 = arith.constant dense<0.000000e+00> : vector<64xf32>
    %287 = vector.multi_reduction <add>, %286, %cst_102 [1] : vector<64x16xf32> to vector<64xf32>
    %288 = vector.shape_cast %287 : vector<64xf32> to vector<64x1xf32>
    %289 = tpu.reciprocal %288 : vector<64x1xf32> -> vector<64x1xf32>
    %290 = vector.broadcast %289 : vector<64x1xf32> to vector<64x16xf32>
    %291 = arith.mulf %286, %290 : vector<64x16xf32>
    %292 = vector.extract_strided_slice %279 {offsets = [0, 17], sizes = [64, 16], strides = [1, 1]} : vector<64x33xf32> to vector<64x16xf32>
    %293 = vector.extract_strided_slice %8 {offsets = [0, 0], sizes = [64, 1], strides = [1, 1]} : vector<64x10xf32> to vector<64x1xf32>
    %cst_103 = arith.constant 1.270000e+02 : f32
    %294 = vector.broadcast %cst_103 : f32 to vector<64x1xf32>
    %295 = arith.mulf %293, %294 : vector<64x1xf32>
    %cst_104 = arith.constant 6.900000e+01 : f32
    %296 = vector.broadcast %cst_104 : f32 to vector<64x1xf32>
    %297 = arith.subf %295, %296 : vector<64x1xf32>
    %cst_105 = arith.constant 0.693147182 : f32
    %298 = vector.broadcast %cst_105 : f32 to vector<64x1xf32>
    %299 = arith.mulf %298, %297 : vector<64x1xf32>
    %cst_106 = arith.constant 1.200000e+01 : f32
    %300 = vector.broadcast %cst_106 : f32 to vector<64x1xf32>
    %301 = arith.divf %299, %300 : vector<64x1xf32>
    %302 = math.exp %301 : vector<64x1xf32>
    %cst_107 = arith.constant 4.400000e+02 : f32
    %303 = vector.broadcast %cst_107 : f32 to vector<64x1xf32>
    %304 = arith.mulf %303, %302 : vector<64x1xf32>
    %cst_108 = arith.constant 0.000000e+00 : f32
    %305 = vector.broadcast %cst_108 : f32 to vector<64x1xf32>
    %306 = arith.cmpf ole, %295, %305 : vector<64x1xf32>
    %cst_109 = arith.constant 0.000000e+00 : f32
    %307 = vector.broadcast %cst_109 : f32 to vector<64x1xf32>
    %308 = arith.select %306, %307, %304 : vector<64x1xi1>, vector<64x1xf32>
    %cst_110 = arith.constant 0.000000e+00 : f32
    %309 = vector.broadcast %cst_110 : f32 to vector<64x1xf32>
    %310 = arith.cmpf ogt, %308, %309 : vector<64x1xf32>
    %cst_111 = arith.constant 1.000000e+00 : f32
    %cst_112 = arith.constant 0.000000e+00 : f32
    %311 = vector.broadcast %cst_111 : f32 to vector<64x1xf32>
    %312 = vector.broadcast %cst_112 : f32 to vector<64x1xf32>
    %313 = arith.select %310, %311, %312 : vector<64x1xi1>, vector<64x1xf32>
    %314 = tpu.iota {dimensions = array<i32: 0>} : vector<64x1xi32>
    %c48_i32 = arith.constant 48 : i32
    %315 = vector.broadcast %c48_i32 : i32 to vector<64x1xi32>
    %316 = arith.cmpi slt, %314, %315 : vector<64x1xi32>
    %c48_i32_113 = arith.constant 48 : i32
    %317 = tpu.dynamic_rotate %313 by %c48_i32_113 dim 0 : vector<64x1xf32>, i32 -> vector<64x1xf32>
    %cst_114 = arith.constant 0.000000e+00 : f32
    %318 = vector.broadcast %cst_114 : f32 to vector<64x1xf32>
    %319 = arith.select %316, %317, %318 : vector<64x1xi1>, vector<64x1xf32>
    %c8_i32 = arith.constant 8 : i32
    %320 = vector.broadcast %c8_i32 : i32 to vector<64x1xi32>
    %321 = arith.cmpi sge, %314, %320 : vector<64x1xi32>
    %c8_i32_115 = arith.constant 8 : i32
    %322 = tpu.dynamic_rotate %313 by %c8_i32_115 dim 0 : vector<64x1xf32>, i32 -> vector<64x1xf32>
    %cst_116 = arith.constant 0.000000e+00 : f32
    %323 = vector.broadcast %cst_116 : f32 to vector<64x1xf32>
    %324 = arith.select %321, %322, %323 : vector<64x1xi1>, vector<64x1xf32>
    %325 = arith.addf %319, %324 : vector<64x1xf32>
    %cst_117 = arith.constant 1.000000e+00 : f32
    %326 = vector.broadcast %cst_117 : f32 to vector<64x1xf32>
    %327 = arith.minimumf %325, %326 : vector<64x1xf32>
    %328 = arith.mulf %280, %327 : vector<64x1xf32>
    %329 = vector.broadcast %327 : vector<64x1xf32> to vector<64x16xf32>
    %330 = arith.mulf %291, %329 : vector<64x16xf32>
    %331 = vector.broadcast %327 : vector<64x1xf32> to vector<64x16xf32>
    %332 = arith.mulf %292, %331 : vector<64x16xf32>
    %cst_118 = arith.constant 0.000000e+00 : f32
    %333 = vector.broadcast %cst_118 : f32 to vector<64x94xf32>
    %334 = tpu.concatenate %328, %330, %332, %308, %333 in 1 : vector<64x1xf32>, vector<64x16xf32>, vector<64x16xf32>, vector<64x1xf32>, vector<64x94xf32> -> vector<64x128xf32>
    %c0_119 = arith.constant 0 : index
    %c0_120 = arith.constant 0 : index
    %c0_121 = arith.constant 0 : index
    %335 = vector.load %arg8[%c0_119, %c0_120, %c0_121] : memref<1x64x128xf32, #tpu.memory_space<vmem>>, vector<1x64x128xf32>
    %336 = vector.shape_cast %335 : vector<1x64x128xf32> to vector<64x128xf32>
    %337 = vector.shape_cast %334 : vector<64x128xf32> to vector<1x64x128xf32>
    tpu.vector_store %arg8[%c0_119, %c0_120, %c0_121], %337 {strides = array<i32>} : memref<1x64x128xf32, #tpu.memory_space<vmem>>, vector<1x64x128xf32>,
    return
  }
  func.func @transform_0(%arg0: i32) -> (i32, i32, i32) {
    %c0_i32 = arith.constant 0 : i32
    %c0_i32_0 = arith.constant 0 : i32
    %c0_i32_1 = arith.constant 0 : i32
    return %arg0, %c0_i32, %c0_i32_0 : i32, i32, i32
  }
  func.func @transform_1(%arg0: i32) -> (i32, i32) {
    %c0_i32 = arith.constant 0 : i32
    %c0_i32_0 = arith.constant 0 : i32
    %c0_i32_1 = arith.constant 0 : i32
    return %c0_i32, %c0_i32_0 : i32, i32
  }
  func.func @transform_2(%arg0: i32) -> (i32, i32) {
    %c0_i32 = arith.constant 0 : i32
    %c0_i32_0 = arith.constant 0 : i32
    %c0_i32_1 = arith.constant 0 : i32
    return %c0_i32, %c0_i32_0 : i32, i32
  }
  func.func @transform_3(%arg0: i32) -> (i32, i32) {
    %c0_i32 = arith.constant 0 : i32
    %c0_i32_0 = arith.constant 0 : i32
    %c0_i32_1 = arith.constant 0 : i32
    return %c0_i32, %c0_i32_0 : i32, i32
  }
  func.func @transform_4(%arg0: i32) -> (i32, i32) {
    %c0_i32 = arith.constant 0 : i32
    %c0_i32_0 = arith.constant 0 : i32
    %c0_i32_1 = arith.constant 0 : i32
    return %c0_i32, %c0_i32_0 : i32, i32
  }
  func.func @transform_5(%arg0: i32) -> (i32, i32) {
    %c0_i32 = arith.constant 0 : i32
    %c0_i32_0 = arith.constant 0 : i32
    %c0_i32_1 = arith.constant 0 : i32
    return %c0_i32, %c0_i32_0 : i32, i32
  }
  func.func @transform_6(%arg0: i32) -> (i32, i32) {
    %c0_i32 = arith.constant 0 : i32
    %c0_i32_0 = arith.constant 0 : i32
    %c0_i32_1 = arith.constant 0 : i32
    return %c0_i32, %c0_i32_0 : i32, i32
  }
  func.func @transform_7(%arg0: i32) -> (i32, i32, i32) {
    %c0_i32 = arith.constant 0 : i32
    %c0_i32_0 = arith.constant 0 : i32
    %c0_i32_1 = arith.constant 0 : i32
    return %arg0, %c0_i32, %c0_i32_0 : i32, i32, i32
  }
}

</mosaic_0001>

<bundles_post_ra>
// kernel: tpu_custom_call.1
= control target key start
LH: loop header
LB: loop body
LE: loop exit
PB: predicated region body
PF: predicated region fallthrough
CT: control target
= control target key end

     0   :  { %12 = vsyncpa [#allocation5], 0  ;;  %s3018_s0 = inlined_call_operand.vmem [shape: f32[1,64,10], index: 0, kind: input, shape index: {}]   ;;  %s3019_s1 = inlined_call_operand.hbm [shape: f32[10,32], index: 1, kind: input, shape index: {}]   ;;  %s3020_s2 = inlined_call_operand.vmem [shape: f32[32,96], index: 2, kind: input, shape index: {}]   ;;  %s3021_s3 = inlined_call_operand.vmem [shape: f32[32,96], index: 3, kind: input, shape index: {}]   ;;  %s3022_s4 = inlined_call_operand.hbm [shape: f32[32,32], index: 4, kind: input, shape index: {}]   ;;  %s3023_s5 = inlined_call_operand.hbm [shape: f32[32,33], index: 5, kind: input, shape index: {}]   ;;  %s3024_s6 = inlined_call_operand.vmem [shape: f32[8,128], index: 6, kind: input, shape index: {}]   ;;  %s3025_s7 = inlined_call_operand.hbm [shape: f32[1,64,128], index: 7, kind: output, shape index: {}]  }
   0x1   :  { %13 = vsyncpa [#allocation8], 0 }
   0x2   :  { %14 = vsyncpa [#allocation6], 0  ;;  %s38_s26 = sshll.u32 %s3022_s4, 4  ;;  %s2223_s27 = smov [#allocation7]   ;;  %s39_s26 = int_to_ptr.hbm [resolvable:$true] %s38_s26 }
   0x3   :  { %s40_s28 = sshll.u32 %s2223_s27, 4  ;;  %s21_s8 = sshll.u32 %s3019_s1, 4  ;;  %s41_s28 = int_to_ptr.vmem [resolvable:$true] %s40_s28  ;;  %s22_s8 = int_to_ptr.hbm [resolvable:$true] %s21_s8 }
   0x4   :  { %s2224_s9 = smov 128   ;;  %s2225_s10 = smov 8  }
   0x5   :  { %46 = dma.hbm_to_vmem [thread:$0]  %s39_s26, 512, %s41_s28, [#allocation8], %s2224_s9, %s2224_s9, %s2225_s10  }
   0x6   :  { %s2226_s11 = smov [#allocation4]   ;;  %s51_s4 = sshll.u32 %s3023_s5, 4  ;;  %s52_s4 = int_to_ptr.hbm [resolvable:$true] %s51_s4 }
   0x7   :  { %s23_s12 = sshll.u32 %s2226_s11, 4  ;;  %s2227_s1 = smov [#allocation9]   ;;  %s24_s12 = int_to_ptr.vmem [resolvable:$true] %s23_s12 }
   0x8   :  { %29 = dma.hbm_to_vmem [thread:$0]  %s22_s8, 256, %s24_s12, [#allocation5], %s2224_s9, %s2224_s9, %s2225_s10  }
   0x9   :  { %s53_s15 = sshll.u32 %s2227_s1, 4  ;;  %s54_s15 = int_to_ptr.vmem [resolvable:$true] %s53_s15 }
   0xa   :  { %59 = dma.hbm_to_vmem [thread:$0]  %s52_s4, 512, %s54_s15, [#allocation8], %s2224_s9, %s2224_s9, %s2225_s10  }
   0xb   :  { %2217 = dma.done.wait [#allocation5], 256  }
   0xc   :  { %2218 = vsyncadd [#allocation5], 4294967040 }
   0xd   :  { %2219 = dma.done.wait [#allocation8], 1024  }
   0xe   :  { %2220 = vsyncadd [#allocation8], 4294966272  ;;  %vm117_vm0 = vcmask 1041408   ;;  %v90_v0 = vld [vmem:[#allocation4 + $0x8] sm:$0x3]  ;;  %v89_v1 = vld [vmem:[#allocation4] sm:$0xff] }
   0xf   :  { %1863 = vmatpush.msk.msra.mxu0 %vm117_vm0, %v90_v0  ;;  %v81_v2 = vld [vmem:[%s3018_s0] sm:$0xff]  ;;  %vm92_vm1 = vcmask 80896   ;;  %v2302_v3 = vld [vmem:[%s3021_s3 + $0x18] sm:$0xff]  ;;  %v2307_v4 = vld [vmem:[%s3021_s3 + $0x10] sm:$0xff]  ;;  %v2228_v8 = vmov 0.0   ;;  %vm191_vm3 = vcmask 261120  }
  0x10   :  { %287 = vmatpush.msra.mxu2 %v2302_v3  ;;  %v189_v5 = vld [vmem:[%s3020_s2 + $0x18] sm:$0xff]  ;;  %357 = vmatpush.msra.mxu3 %v2302_v3  ;;  %v2317_v6 = vld [vmem:[%s3021_s3 + $0x8] sm:$0xff]  ;;  %v2324_v7 = vld [vmem:[%s3021_s3] sm:$0xff]  ;;  %vm257_vm4 = vcmask 785408   ;;  %s2230_s15 = smov 96   ;;  %s2231_s17 = smov 32  }
  0x11   :  { %136 = vmatpush.msra.mxu0 %v89_v1  ;;  %228 = vmatpush.msra.mxu1 %v189_v5  ;;  %v188_v9 = vld [vmem:[%s3020_s2 + $0x10] sm:$0xff]  ;;  %v187_v10 = vld [vmem:[%s3020_s2 + $0x8] sm:$0xff]  ;;  %v186_v11 = vld [vmem:[%s3020_s2] sm:$0xff]  ;;  %s2229_s2 = smov 64   ;;  %s2236_s24 = smov 33  }
  0x12   :  { %1864 = vmatmul.msk.f32.vlgmr.msra.gmra.mxu0 %vm92_vm1, %v81_v2  ;;  %288 = vmatpush.msra.mxu2 %v2307_v4  ;;  %v2356_v12 = vld [vmem:[%s3024_s6] ss:$0 sm:$0xff]  ;;  %v2363_v17 = vld [vmem:[%s3024_s6 + $0x2] ss:$0 sm:$0xff]  ;;  %v2370_v20 = vld [vmem:[%s3024_s6 + $0x1] ss:$0 sm:$0xff] }
  0x13   :  { %358 = vmatpush.msra.mxu3 %v2307_v4  ;;  %229 = vmatpush.msra.mxu1 %v188_v9  ;;  %v82_v45 = vld [vmem:[%s3018_s0 + $0x8] sm:$0xff]  ;;  %v83_v48 = vld [vmem:[%s3018_s0 + $0x10] sm:$0xff]  ;;  %v84_v49 = vld [vmem:[%s3018_s0 + $0x18] sm:$0xff]  ;;  %s1849_s8 = sshll.u32 %s3025_s7, 4  ;;  %s1850_s8 = int_to_ptr.hbm [resolvable:$true] %s1849_s8 }
  0x14   :  { %289 = vmatpush.msra.mxu2 %v2317_v6  ;;  %v85_v53 = vld [vmem:[%s3018_s0 + $0x20] sm:$0xff]  ;;  %v86_v55 = vld [vmem:[%s3018_s0 + $0x28] sm:$0xff]  ;;  %v87_v58 = vld [vmem:[%s3018_s0 + $0x30] sm:$0xff] }
  0x15   :  { %359 = vmatpush.msra.mxu3 %v2317_v6  ;;  %230 = vmatpush.msra.mxu1 %v187_v10  ;;  %v88_v59 = vld [vmem:[%s3018_s0 + $0x38] sm:$0xff]  ;;  %v2408_v60 = vld [vmem:[#allocation7 + $0x18] sm:$0xff]  ;;  %v2410_v61 = vld [vmem:[#allocation7 + $0x10] sm:$0xff] }
  0x16   :  { %290 = vmatpush.msra.mxu2 %v2324_v7  ;;  %881 = vmatpush.msrb.mxu0 %v2408_v60  ;;  %v2413_v62 = vld [vmem:[#allocation7 + $0x8] sm:$0xff]  ;;  %v2416_v63 = vld [vmem:[#allocation7] sm:$0xff] }
  0x17   :  { %291 = vmatmul.f32.vlgmr.msra.gmra.mxu2 %v2228_v8  ;;  %360 = vmatpush.msra.mxu3 %v2324_v7 }
  0x18   :  { %427 = vmatpush.msrb.mxu2 %v2302_v3  ;;  %231 = vmatpush.msra.mxu1 %v186_v11 }
  0x19   :  { %497 = vmatpush.msrb.mxu3 %v2302_v3  ;;  %882 = vmatpush.msrb.mxu0 %v2410_v61 }
  0x1a   :  { %428 = vmatpush.msrb.mxu2 %v2307_v4  ;;  %1865 = vmatmul.msk.f32.gmra.mxu0 %vm92_vm1, %v82_v45 }
  0x1b   :  { %498 = vmatpush.msrb.mxu3 %v2307_v4  ;;  %883 = vmatpush.msrb.mxu0 %v2413_v62 }
  0x1c   :  { %429 = vmatpush.msrb.mxu2 %v2317_v6 }
  0x1d   :  { %499 = vmatpush.msrb.mxu3 %v2317_v6  ;;  %884 = vmatpush.msrb.mxu0 %v2416_v63 }
  0x1e   :  { %430 = vmatpush.msrb.mxu2 %v2324_v7 }
  0x1f   :  { %500 = vmatpush.msrb.mxu3 %v2324_v7 }
  0x20   :  { %567 = vmatpush.msra.mxu2 %v2302_v3 }
  0x22   :  { %568 = vmatpush.msra.mxu2 %v2307_v4  ;;  %1866 = vmatmul.msk.f32.gmra.mxu0 %vm92_vm1, %v83_v48 }
  0x24   :  { %569 = vmatpush.msra.mxu2 %v2317_v6 }
  0x26   :  { %570 = vmatpush.msra.mxu2 %v2324_v7 }
  0x2a   :  { %1867 = vmatmul.msk.f32.gmra.mxu0 %vm92_vm1, %v84_v49 }
  0x32   :  { %1868 = vmatmul.msk.f32.gmra.mxu0 %vm92_vm1, %v85_v53 }
  0x3a   :  { %1869 = vmatmul.msk.f32.gmra.mxu0 %vm92_vm1, %v86_v55 }
  0x42   :  { %1870 = vmatmul.msk.f32.gmra.mxu0 %vm92_vm1, %v87_v58 }
  0x4a   :  { %1871 = vmatmul.msk.f32.gmra.mxu0 %vm92_vm1, %v88_v59 }
  0x8f   :  { %v138_v13 = vpop.f32.mrf.mxu0 }
  0x90   :  { %v139_v14 = vadd.f32 %v2356_v12, %v138_v13 }
  0x92   :  { %v170_v15 = vmul.f32 0.01, %v139_v14  ;;  %vm162_vm2 = vcmp.ge.f32.partialorder %v139_v14, 0.0 }
  0x94   :  { %v178_v16 = vsel %vm162_vm2, %v139_v14, %v170_v15 }
  0x95   :  { %1872 = vmatmul.msk.f32.vlgmr.msra.gmra.mxu1 %vm191_vm3, %v178_v16 }
  0x97   :  { %v141_v50 = vpop.f32.mrf.mxu0 }
  0x98   :  { %v142_v51 = vadd.f32 %v2356_v12, %v141_v50 }
  0x9a   :  { %v292_v18 = vpop.f32.mrf.mxu2  ;;  %v171_v52 = vmul.f32 0.01, %v142_v51  ;;  %vm163_vm9 = vcmp.ge.f32.partialorder %v142_v51, 0.0 }
  0x9b   :  { %v293_v19 = vadd.f32 %v2363_v17, %v292_v18 }
  0x9c   :  { %v179_v54 = vsel %vm163_vm9, %v142_v51, %v171_v52 }
  0x9d   :  { %316 = vrot.lane.b32.xlu0 %v293_v19, %s2229_s2  ;;  %1873 = vmatmul.msk.f32.gmra.mxu1 %vm191_vm3, %v179_v54 }
 0x10f   :  { %v317_v36 = vpop.permute.xlu0 %316 }
 0x112   :  { %v233_v21 = vpop.f32.mrf.mxu1 }
 0x113   :  { %v234_v22 = vadd.f32 %v2370_v20, %v233_v21 }
 0x115   :  { %258 = vst.msk [vmem:[#allocation2] sm:$0xff] %vm257_vm4, %v234_v22 }
 0x11a   :  { %v236_v2 = vpop.f32.mrf.mxu1 }
 0x11b   :  { %v237_v5 = vadd.f32 %v2370_v20, %v236_v2 }
 0x11c   :  { %v270_v23 = vld [vmem:[#allocation2] sm:$0xff] }
 0x11d   :  { %v295_v24 = vadd.f32 %v293_v19, %v270_v23  ;;  %259 = vst.msk [vmem:[#allocation2 + $0x8] sm:$0xff] %vm257_vm4, %v237_v5 }
 0x11f   :  { %v296_v25 = vsub.f32 0.0, %v295_v24 }
 0x121   :  { %v297_v26 = vmul.f32 1.442695, %v296_v25 }
 0x123   :  { %1949 = vpow2.f32 %v297_v26 }
 0x124   :  { %v342_v11 = vld [vmem:[#allocation2 + $0x8] sm:$0xff] }
 0x129   :  { %v1950_v27 = vpop.eup %1949 }
 0x12a   :  { %v299_v28 = vadd.f32 1.0, %v1950_v27 }
 0x12c   :  { %1951 = vrcp.f32 %v299_v28  ;;  %v311_v32 = vand.u32 2147483648, %v299_v28  ;;  %v309_v34 = vand.u32 2147483647, %v299_v28  ;;  %vm305_vm6 = vweird.f32 %v299_v28 }
 0x12e   :  { %v312_v37 = vor.u32 1.1754944e-38, %v311_v32  ;;  %vm310_vm8 = vcmp.eq.f32.partialorder %v309_v34, 8.507059e+37 }
 0x132   :  { %v1952_v29 = vpop.eup %1951 }
 0x133   :  { %v301_v30 = vmul.f32 %v1952_v29, %v299_v28  ;;  %vm306_vm5 = vweird.f32 %v1952_v29 }
 0x134   :  { %vm307_vm7 = vmor %vm305_vm6, %vm306_vm5 }
 0x135   :  { %v302_v31 = vsub.f32 1.0, %v301_v30 }
 0x137   :  { %v303_v33 = vmul.f32 %v1952_v29, %v302_v31 }
 0x139   :  { %v304_v35 = vadd.f32 %v1952_v29, %v303_v33 }
 0x13b   :  { %v308_v38 = vsel %vm307_vm7, %v1952_v29, %v304_v35 }
 0x13c   :  { %v313_v39 = vsel %vm310_vm8, %v312_v37, %v308_v38  ;;  %v144_v38 = vpop.f32.mrf.mxu0 }
 0x13d   :  { %v319_v40 = vmul.f32 %v317_v36, %v313_v39 }
 0x13f   :  { %321 = vrot.lane.b32.xlu0 %v319_v40, %s2229_s2 }
 0x1b1   :  { %v322_v41 = vpop.permute.xlu0 %321 }
 0x1b2   :  { %v324_v42 = vadd.f32 %v322_v41, %v270_v23 }
 0x1b4   :  { %1953 = vtanh.f32 %v324_v42 }
 0x1ba   :  { %v1954_v43 = vpop.eup %1953 }
 0x1bb   :  { %v326_v44 = vsub.f32 0.0, %v1954_v43 }
 0x1bd   :  { %328 = vrot.lane.b32.xlu1 %v326_v44, %s2230_s15 }
 0x22f   :  { %v329_v46 = vpop.permute.xlu1 %328 }
 0x230   :  { %v331_v47 = vmul.f32 %v329_v46, %v313_v39  ;;  %v145_v39 = vadd.f32 %v2356_v12, %v144_v38 }
 0x232   :  { %333 = vrot.lane.b32.xlu1 %v331_v47, %s2231_s17  ;;  %v172_v40 = vmul.f32 0.01, %v145_v39  ;;  %vm164_vm14 = vcmp.ge.f32.partialorder %v145_v39, 0.0 }
 0x234   :  { %v180_v41 = vsel %vm164_vm14, %v145_v39, %v172_v40 }
 0x235   :  { %1874 = vmatmul.msk.f32.gmra.mxu1 %vm191_vm3, %v180_v41 }
 0x2a4   :  { %v334_v56 = vpop.permute.xlu1 %333 }
 0x2a5   :  { %v336_v57 = vadd.f32 %v1954_v43, %v334_v56 }
 0x2a7   :  { %338 = vrot.lane.b32.xlu2 %v336_v57, %s2229_s2 }
 0x2b2   :  { %v239_v44 = vpop.f32.mrf.mxu1 }
 0x2b3   :  { %v240_v45 = vadd.f32 %v2370_v20, %v239_v44 }
 0x2b5   :  { %260 = vst.msk [vmem:[#allocation2 + $0x10] sm:$0xff] %vm257_vm4, %v240_v45 }
 0x2bc   :  { %v412_v50 = vld [vmem:[#allocation2 + $0x10] sm:$0xff] }
 0x301   :  { %v339_v0 = vpop.permute.xlu2 %338 }
 0x302   :  { %341 = vst.msk [vmem:[#allocation3] sm:$0xff] %vm191_vm3, %v339_v0  ;;  %1880 = vmatmul.msk.f32.vlgmr.msra.gmra.mxu3 %vm191_vm3, %v339_v0 }
 0x303   :  { %637 = vmatpush.msra.mxu3 %v2302_v3 }
 0x305   :  { %638 = vmatpush.msra.mxu3 %v2307_v4 }
 0x307   :  { %639 = vmatpush.msra.mxu3 %v2317_v6 }
 0x309   :  { %v832_v1 = vld [vmem:[#allocation3] sm:$0xff]  ;;  %640 = vmatpush.msra.mxu3 %v2324_v7 }
 0x30a   :  { %1887 = vmatmul.msk.f32.vlgmr.msrb.gmra.mxu0 %vm191_vm3, %v832_v1 }
 0x385   :  { %v362_v9 = vpop.f32.mrf.mxu3 }
 0x386   :  { %v363_v10 = vadd.f32 %v2363_v17, %v362_v9 }
 0x388   :  { %386 = vrot.lane.b32.xlu2 %v363_v10, %s2229_s2  ;;  %v365_v13 = vadd.f32 %v363_v10, %v342_v11 }
 0x38a   :  { %v366_v14 = vsub.f32 0.0, %v365_v13 }
 0x38c   :  { %v367_v15 = vmul.f32 1.442695, %v366_v14 }
 0x38e   :  { %1955 = vpow2.f32 %v367_v15 }
 0x394   :  { %v1956_v16 = vpop.eup %1955 }
 0x395   :  { %v369_v18 = vadd.f32 1.0, %v1956_v16 }
 0x397   :  { %1957 = vrcp.f32 %v369_v18  ;;  %v381_v25 = vand.u32 2147483648, %v369_v18  ;;  %vm375_vm11 = vweird.f32 %v369_v18  ;;  %v379_v26 = vand.u32 2147483647, %v369_v18 }
 0x399   :  { %v382_v28 = vor.u32 1.1754944e-38, %v381_v25  ;;  %vm380_vm13 = vcmp.eq.f32.partialorder %v379_v26, 8.507059e+37 }
 0x39d   :  { %v1958_v19 = vpop.eup %1957 }
 0x39e   :  { %v371_v21 = vmul.f32 %v1958_v19, %v369_v18  ;;  %vm376_vm10 = vweird.f32 %v1958_v19 }
 0x39f   :  { %vm377_vm12 = vmor %vm375_vm11, %vm376_vm10 }
 0x3a0   :  { %v372_v22 = vsub.f32 1.0, %v371_v21 }
 0x3a2   :  { %v373_v23 = vmul.f32 %v1958_v19, %v372_v22  ;;  %v147_v22 = vpop.f32.mrf.mxu0 }
 0x3a4   :  { %v374_v24 = vadd.f32 %v1958_v19, %v373_v23  ;;  %v148_v23 = vadd.f32 %v2356_v12, %v147_v22 }
 0x3a6   :  { %v378_v27 = vsel %vm377_vm12, %v1958_v19, %v374_v24  ;;  %v173_v24 = vmul.f32 0.01, %v148_v23  ;;  %vm165_vm5 = vcmp.ge.f32.partialorder %v148_v23, 0.0 }
 0x3a7   :  { %v383_v30 = vsel %vm380_vm13, %v382_v28, %v378_v27 }
 0x3a8   :  { %v181_v25 = vsel %vm165_vm5, %v148_v23, %v173_v24 }
 0x3a9   :  { %1875 = vmatmul.msk.f32.gmra.mxu1 %vm191_vm3, %v181_v25 }
 0x3e2   :  { %v387_v29 = vpop.permute.xlu2 %386 }
 0x3e3   :  { %v389_v31 = vmul.f32 %v387_v29, %v383_v30 }
 0x3e5   :  { %391 = vrot.lane.b32.xlu0 %v389_v31, %s2229_s2 }
 0x426   :  { %v242_v29 = vpop.f32.mrf.mxu1 }
 0x457   :  { %v392_v32 = vpop.permute.xlu0 %391 }
 0x458   :  { %v394_v33 = vadd.f32 %v392_v32, %v342_v11 }
 0x45a   :  { %1959 = vtanh.f32 %v394_v33 }
 0x460   :  { %v1960_v34 = vpop.eup %1959 }
 0x461   :  { %v396_v35 = vsub.f32 %v336_v57, %v1960_v34 }
 0x463   :  { %398 = vrot.lane.b32.xlu1 %v396_v35, %s2230_s15 }
 0x4d5   :  { %v399_v36 = vpop.permute.xlu1 %398 }
 0x4d6   :  { %v401_v37 = vmul.f32 %v399_v36, %v383_v30  ;;  %v243_v30 = vadd.f32 %v2370_v20, %v242_v29 }
 0x4d8   :  { %403 = vrot.lane.b32.xlu2 %v401_v37, %s2231_s17  ;;  %261 = vst.msk [vmem:[#allocation2 + $0x18] sm:$0xff] %vm257_vm4, %v243_v30 }
 0x4df   :  { %v482_v33 = vld [vmem:[#allocation2 + $0x18] sm:$0xff] }
 0x532   :  { %v404_v42 = vpop.permute.xlu2 %403 }
 0x533   :  { %v406_v43 = vadd.f32 %v1960_v34, %v404_v42 }
 0x535   :  { %408 = vrot.lane.b32.xlu0 %v406_v43, %s2229_s2 }
 0x5a7   :  { %v409_v46 = vpop.permute.xlu0 %408 }
 0x5a8   :  { %411 = vst.msk [vmem:[#allocation3 + $0x8] sm:$0xff] %vm191_vm3, %v409_v46  ;;  %1881 = vmatmul.msk.f32.vlgmr.msrb.gmra.mxu2 %vm191_vm3, %v409_v46 }
 0x5a9   :  { %707 = vmatpush.msrb.mxu2 %v2302_v3 }
 0x5ab   :  { %708 = vmatpush.msrb.mxu2 %v2307_v4 }
 0x5ad   :  { %709 = vmatpush.msrb.mxu2 %v2317_v6 }
 0x5af   :  { %v833_v47 = vld [vmem:[#allocation3 + $0x8] sm:$0xff]  ;;  %710 = vmatpush.msrb.mxu2 %v2324_v7 }
 0x5b0   :  { %1888 = vmatmul.msk.f32.gmra.mxu0 %vm191_vm3, %v833_v47 }
 0x62b   :  { %v432_v48 = vpop.f32.mrf.mxu2 }
 0x62c   :  { %v433_v49 = vadd.f32 %v2363_v17, %v432_v48 }
 0x62e   :  { %456 = vrot.lane.b32.xlu1 %v433_v49, %s2229_s2  ;;  %v435_v51 = vadd.f32 %v433_v49, %v412_v50 }
 0x630   :  { %v436_v52 = vsub.f32 0.0, %v435_v51 }
 0x632   :  { %v437_v53 = vmul.f32 1.442695, %v436_v52 }
 0x634   :  { %1961 = vpow2.f32 %v437_v53  ;;  %v150_v53 = vpop.f32.mrf.mxu0 }
 0x63a   :  { %v1962_v54 = vpop.eup %1961 }
 0x63b   :  { %v439_v55 = vadd.f32 1.0, %v1962_v54  ;;  %v151_v54 = vadd.f32 %v2356_v12, %v150_v53 }
 0x63d   :  { %1963 = vrcp.f32 %v439_v55  ;;  %v451_v1 = vand.u32 2147483648, %v439_v55  ;;  %vm445_vm0 = vweird.f32 %v439_v55  ;;  %v449_v2 = vand.u32 2147483647, %v439_v55 }
 0x63e   :  { %vm166_vm10 = vcmp.ge.f32.partialorder %v151_v54, 0.0 }
 0x63f   :  { %v452_v9 = vor.u32 1.1754944e-38, %v451_v1  ;;  %vm450_vm2 = vcmp.eq.f32.partialorder %v449_v2, 8.507059e+37 }
 0x643   :  { %v1964_v56 = vpop.eup %1963 }
 0x644   :  { %v441_v57 = vmul.f32 %v1964_v56, %v439_v55  ;;  %vm446_vm15 = vweird.f32 %v1964_v56  ;;  %v174_v55 = vmul.f32 0.01, %v151_v54 }
 0x645   :  { %vm447_vm1 = vmor %vm445_vm0, %vm446_vm15 }
 0x646   :  { %v442_v58 = vsub.f32 1.0, %v441_v57 }
 0x648   :  { %v443_v59 = vmul.f32 %v1964_v56, %v442_v58 }
 0x64a   :  { %v444_v0 = vadd.f32 %v1964_v56, %v443_v59 }
 0x64c   :  { %v448_v5 = vsel %vm447_vm1, %v1964_v56, %v444_v0  ;;  %v182_v56 = vsel %vm166_vm10, %v151_v54, %v174_v55 }
 0x64d   :  { %v453_v11 = vsel %vm450_vm2, %v452_v9, %v448_v5  ;;  %1876 = vmatmul.msk.f32.gmra.mxu1 %vm191_vm3, %v182_v56 }
 0x6a0   :  { %v457_v10 = vpop.permute.xlu1 %456 }
 0x6a1   :  { %v459_v13 = vmul.f32 %v457_v10, %v453_v11 }
 0x6a3   :  { %461 = vrot.lane.b32.xlu2 %v459_v13, %s2229_s2 }
 0x6ca   :  { %v245_v59 = vpop.f32.mrf.mxu1 }
 0x6cb   :  { %v246_v0 = vadd.f32 %v2370_v20, %v245_v59 }
 0x6cd   :  { %262 = vst.msk [vmem:[#allocation2 + $0x20] sm:$0xff] %vm257_vm4, %v246_v0 }
 0x6d4   :  { %v552_v9 = vld [vmem:[#allocation2 + $0x20] sm:$0xff] }
 0x6fd   :  { %v462_v14 = vpop.permute.xlu2 %461 }
 0x6fe   :  { %v464_v15 = vadd.f32 %v462_v14, %v412_v50 }
 0x700   :  { %1965 = vtanh.f32 %v464_v15 }
 0x706   :  { %v1966_v16 = vpop.eup %1965 }
 0x707   :  { %v466_v18 = vsub.f32 %v406_v43, %v1966_v16 }
 0x709   :  { %468 = vrot.lane.b32.xlu0 %v466_v18, %s2230_s15 }
 0x77b   :  { %v469_v19 = vpop.permute.xlu0 %468 }
 0x77c   :  { %v471_v21 = vmul.f32 %v469_v19, %v453_v11 }
 0x77e   :  { %473 = vrot.lane.b32.xlu1 %v471_v21, %s2231_s17 }
 0x7f0   :  { %v474_v26 = vpop.permute.xlu1 %473 }
 0x7f1   :  { %v476_v27 = vadd.f32 %v1966_v16, %v474_v26 }
 0x7f3   :  { %478 = vrot.lane.b32.xlu2 %v476_v27, %s2229_s2 }
 0x84d   :  { %v479_v28 = vpop.permute.xlu2 %478 }
 0x84e   :  { %481 = vst.msk [vmem:[#allocation3 + $0x10] sm:$0xff] %vm191_vm3, %v479_v28  ;;  %1882 = vmatmul.msk.f32.vlgmr.msrb.gmra.mxu3 %vm191_vm3, %v479_v28 }
 0x84f   :  { %777 = vmatpush.msrb.mxu3 %v2302_v3 }
 0x851   :  { %778 = vmatpush.msrb.mxu3 %v2307_v4 }
 0x853   :  { %779 = vmatpush.msrb.mxu3 %v2317_v6 }
 0x855   :  { %780 = vmatpush.msrb.mxu3 %v2324_v7 }
 0x8d1   :  { %v502_v31 = vpop.f32.mrf.mxu3 }
 0x8d2   :  { %v503_v32 = vadd.f32 %v2363_v17, %v502_v31 }
 0x8d4   :  { %526 = vrot.lane.b32.xlu0 %v503_v32, %s2229_s2  ;;  %v505_v34 = vadd.f32 %v503_v32, %v482_v33  ;;  %v153_v32 = vpop.f32.mrf.mxu0 }
 0x8d6   :  { %v506_v35 = vsub.f32 0.0, %v505_v34 }
 0x8d8   :  { %v507_v3 = vmul.f32 1.442695, %v506_v35 }
 0x8da   :  { %1967 = vpow2.f32 %v507_v3 }
 0x8e0   :  { %v1968_v4 = vpop.eup %1967 }
 0x8e1   :  { %v509_v36 = vadd.f32 1.0, %v1968_v4 }
 0x8e3   :  { %1969 = vrcp.f32 %v509_v36  ;;  %v521_v7 = vand.u32 2147483648, %v509_v36  ;;  %vm515_vm7 = vweird.f32 %v509_v36  ;;  %v519_v41 = vand.u32 2147483647, %v509_v36 }
 0x8e5   :  { %v522_v43 = vor.u32 1.1754944e-38, %v521_v7  ;;  %vm520_vm9 = vcmp.eq.f32.partialorder %v519_v41, 8.507059e+37 }
 0x8e9   :  { %v1970_v37 = vpop.eup %1969 }
 0x8ea   :  { %v511_v38 = vmul.f32 %v1970_v37, %v509_v36  ;;  %vm516_vm6 = vweird.f32 %v1970_v37 }
 0x8eb   :  { %vm517_vm8 = vmor %vm515_vm7, %vm516_vm6 }
 0x8ec   :  { %v512_v6 = vsub.f32 1.0, %v511_v38 }
 0x8ee   :  { %v513_v39 = vmul.f32 %v1970_v37, %v512_v6 }
 0x8f0   :  { %v514_v40 = vadd.f32 %v1970_v37, %v513_v39 }
 0x8f2   :  { %v518_v42 = vsel %vm517_vm8, %v1970_v37, %v514_v40 }
 0x8f3   :  { %v523_v45 = vsel %vm520_vm9, %v522_v43, %v518_v42 }
 0x946   :  { %v527_v44 = vpop.permute.xlu0 %526 }
 0x947   :  { %v529_v46 = vmul.f32 %v527_v44, %v523_v45 }
 0x949   :  { %531 = vrot.lane.b32.xlu1 %v529_v46, %s2229_s2 }
 0x9bb   :  { %v532_v47 = vpop.permute.xlu1 %531 }
 0x9bc   :  { %v534_v48 = vadd.f32 %v532_v47, %v482_v33  ;;  %v154_v33 = vadd.f32 %v2356_v12, %v153_v32 }
 0x9be   :  { %1971 = vtanh.f32 %v534_v48  ;;  %v175_v34 = vmul.f32 0.01, %v154_v33  ;;  %vm167_vm15 = vcmp.ge.f32.partialorder %v154_v33, 0.0 }
 0x9c0   :  { %v183_v35 = vsel %vm167_vm15, %v154_v33, %v175_v34 }
 0x9c1   :  { %1877 = vmatmul.msk.f32.gmra.mxu1 %vm191_vm3, %v183_v35 }
 0x9c4   :  { %v1972_v49 = vpop.eup %1971 }
 0x9c5   :  { %v536_v50 = vsub.f32 %v476_v27, %v1972_v49 }
 0x9c7   :  { %538 = vrot.lane.b32.xlu2 %v536_v50, %s2230_s15 }
 0xa21   :  { %v539_v51 = vpop.permute.xlu2 %538 }
 0xa22   :  { %v541_v52 = vmul.f32 %v539_v51, %v523_v45 }
 0xa24   :  { %543 = vrot.lane.b32.xlu0 %v541_v52, %s2231_s17 }
 0xa3e   :  { %v248_v36 = vpop.f32.mrf.mxu1 }
 0xa3f   :  { %v249_v37 = vadd.f32 %v2370_v20, %v248_v36 }
 0xa41   :  { %263 = vst.msk [vmem:[#allocation2 + $0x28] sm:$0xff] %vm257_vm4, %v249_v37 }
 0xa48   :  { %v622_v40 = vld [vmem:[#allocation2 + $0x28] sm:$0xff] }
 0xa96   :  { %v544_v57 = vpop.permute.xlu0 %543 }
 0xa97   :  { %v546_v58 = vadd.f32 %v1972_v49, %v544_v57 }
 0xa99   :  { %548 = vrot.lane.b32.xlu1 %v546_v58, %s2229_s2 }
 0xb0b   :  { %v549_v1 = vpop.permute.xlu1 %548 }
 0xb0c   :  { %551 = vst.msk [vmem:[#allocation3 + $0x18] sm:$0xff] %vm191_vm3, %v549_v1  ;;  %1883 = vmatmul.msk.f32.vlgmr.msra.gmra.mxu2 %vm191_vm3, %v549_v1 }
 0xb0d   :  { %1911 = vmatpush.msra.mxu2 %v2408_v60 }
 0xb0f   :  { %1912 = vmatpush.msra.mxu2 %v2410_v61 }
 0xb11   :  { %1913 = vmatpush.msra.mxu2 %v2413_v62 }
 0xb13   :  { %1914 = vmatpush.msra.mxu2 %v2416_v63 }
 0xb8f   :  { %v572_v2 = vpop.f32.mrf.mxu2 }
 0xb90   :  { %v573_v5 = vadd.f32 %v2363_v17, %v572_v2 }
 0xb92   :  { %596 = vrot.lane.b32.xlu2 %v573_v5, %s2229_s2  ;;  %v575_v10 = vadd.f32 %v573_v5, %v552_v9  ;;  %v156_v5 = vpop.f32.mrf.mxu0 }
 0xb94   :  { %v576_v11 = vsub.f32 0.0, %v575_v10 }
 0xb96   :  { %v577_v13 = vmul.f32 1.442695, %v576_v11 }
 0xb98   :  { %1973 = vpow2.f32 %v577_v13 }
 0xb9e   :  { %v1974_v14 = vpop.eup %1973 }
 0xb9f   :  { %v579_v15 = vadd.f32 1.0, %v1974_v14 }
 0xba1   :  { %1975 = vrcp.f32 %v579_v15  ;;  %v591_v63 = vand.u32 2147483648, %v579_v15  ;;  %vm585_vm12 = vweird.f32 %v579_v15  ;;  %v589_v19 = vand.u32 2147483647, %v579_v15 }
 0xba3   :  { %v592_v22 = vor.u32 1.1754944e-38, %v591_v63  ;;  %vm590_vm14 = vcmp.eq.f32.partialorder %v589_v19, 8.507059e+37 }
 0xba7   :  { %v1976_v60 = vpop.eup %1975 }
 0xba8   :  { %v581_v16 = vmul.f32 %v1976_v60, %v579_v15  ;;  %vm586_vm11 = vweird.f32 %v1976_v60 }
 0xba9   :  { %vm587_vm13 = vmor %vm585_vm12, %vm586_vm11 }
 0xbaa   :  { %v582_v61 = vsub.f32 1.0, %v581_v16 }
 0xbac   :  { %v583_v18 = vmul.f32 %v1976_v60, %v582_v61  ;;  %v834_v61 = vld [vmem:[#allocation3 + $0x10] sm:$0xff] }
 0xbae   :  { %v584_v62 = vadd.f32 %v1976_v60, %v583_v18  ;;  %v835_v18 = vld [vmem:[#allocation3 + $0x18] sm:$0xff] }
 0xbb0   :  { %v588_v21 = vsel %vm587_vm13, %v1976_v60, %v584_v62 }
 0xbb1   :  { %v593_v24 = vsel %vm590_vm14, %v592_v22, %v588_v21 }
 0xbec   :  { %v597_v23 = vpop.permute.xlu2 %596 }
 0xbed   :  { %v599_v25 = vmul.f32 %v597_v23, %v593_v24 }
 0xbef   :  { %601 = vrot.lane.b32.xlu0 %v599_v25, %s2229_s2 }
 0xc61   :  { %v602_v26 = vpop.permute.xlu0 %601 }
 0xc62   :  { %v604_v27 = vadd.f32 %v602_v26, %v552_v9  ;;  %v157_v9 = vadd.f32 %v2356_v12, %v156_v5 }
 0xc64   :  { %1977 = vtanh.f32 %v604_v27  ;;  %v176_v10 = vmul.f32 0.01, %v157_v9  ;;  %vm168_vm6 = vcmp.ge.f32.partialorder %v157_v9, 0.0 }
 0xc66   :  { %v184_v11 = vsel %vm168_vm6, %v157_v9, %v176_v10 }
 0xc67   :  { %1878 = vmatmul.msk.f32.gmra.mxu1 %vm191_vm3, %v184_v11 }
 0xc6a   :  { %v1978_v28 = vpop.eup %1977 }
 0xc6b   :  { %v606_v29 = vsub.f32 %v546_v58, %v1978_v28 }
 0xc6d   :  { %608 = vrot.lane.b32.xlu1 %v606_v29, %s2230_s15 }
 0xcdf   :  { %v609_v30 = vpop.permute.xlu1 %608 }
 0xce0   :  { %v611_v31 = vmul.f32 %v609_v30, %v593_v24 }
 0xce2   :  { %613 = vrot.lane.b32.xlu2 %v611_v31, %s2231_s17 }
 0xce4   :  { %v251_v60 = vpop.f32.mrf.mxu1 }
 0xce5   :  { %v252_v16 = vadd.f32 %v2370_v20, %v251_v60 }
 0xce7   :  { %264 = vst.msk [vmem:[#allocation2 + $0x30] sm:$0xff] %vm257_vm4, %v252_v16 }
 0xcee   :  { %v692_v22 = vld [vmem:[#allocation2 + $0x30] sm:$0xff] }
 0xd3c   :  { %v614_v3 = vpop.permute.xlu2 %613 }
 0xd3d   :  { %v616_v4 = vadd.f32 %v1978_v28, %v614_v3 }
 0xd3f   :  { %618 = vrot.lane.b32.xlu0 %v616_v4, %s2229_s2 }
 0xdb1   :  { %v619_v38 = vpop.permute.xlu0 %618 }
 0xdb2   :  { %621 = vst.msk [vmem:[#allocation3 + $0x20] sm:$0xff] %vm191_vm3, %v619_v38  ;;  %1884 = vmatmul.msk.f32.vlgmr.msra.gmra.mxu3 %vm191_vm3, %v619_v38 }
 0xdb9   :  { %v836_v62 = vld [vmem:[#allocation3 + $0x20] sm:$0xff] }
 0xe35   :  { %v642_v6 = vpop.f32.mrf.mxu3 }
 0xe36   :  { %v643_v39 = vadd.f32 %v2363_v17, %v642_v6 }
 0xe38   :  { %666 = vrot.lane.b32.xlu1 %v643_v39, %s2229_s2  ;;  %v645_v7 = vadd.f32 %v643_v39, %v622_v40 }
 0xe3a   :  { %v646_v41 = vsub.f32 0.0, %v645_v7 }
 0xe3c   :  { %v647_v42 = vmul.f32 1.442695, %v646_v41 }
 0xe3e   :  { %1979 = vpow2.f32 %v647_v42  ;;  %v159_v42 = vpop.f32.mrf.mxu0 }
 0xe44   :  { %v1980_v43 = vpop.eup %1979 }
 0xe45   :  { %v649_v44 = vadd.f32 1.0, %v1980_v43  ;;  %v160_v43 = vadd.f32 %v2356_v12, %v159_v42 }
 0xe47   :  { %1981 = vrcp.f32 %v649_v44  ;;  %v661_v50 = vand.u32 2147483648, %v649_v44  ;;  %vm655_vm1 = vweird.f32 %v649_v44  ;;  %v659_v51 = vand.u32 2147483647, %v649_v44 }
 0xe48   :  { %vm169_vm11 = vcmp.ge.f32.partialorder %v160_v43, 0.0 }
 0xe49   :  { %v662_v53 = vor.u32 1.1754944e-38, %v661_v50  ;;  %vm660_vm5 = vcmp.eq.f32.partialorder %v659_v51, 8.507059e+37 }
 0xe4d   :  { %v1982_v45 = vpop.eup %1981 }
 0xe4e   :  { %v651_v46 = vmul.f32 %v1982_v45, %v649_v44  ;;  %vm656_vm0 = vweird.f32 %v1982_v45  ;;  %v177_v44 = vmul.f32 0.01, %v160_v43 }
 0xe4f   :  { %vm657_vm2 = vmor %vm655_vm1, %vm656_vm0 }
 0xe50   :  { %v652_v47 = vsub.f32 1.0, %v651_v46 }
 0xe52   :  { %v653_v48 = vmul.f32 %v1982_v45, %v652_v47 }
 0xe54   :  { %v654_v49 = vadd.f32 %v1982_v45, %v653_v48 }
 0xe56   :  { %v658_v52 = vsel %vm657_vm2, %v1982_v45, %v654_v49  ;;  %v185_v45 = vsel %vm169_vm11, %v160_v43, %v177_v44 }
 0xe57   :  { %v663_v55 = vsel %vm660_vm5, %v662_v53, %v658_v52  ;;  %1879 = vmatmul.msk.f32.gmra.mxu1 %vm191_vm3, %v185_v45 }
 0xeaa   :  { %v667_v54 = vpop.permute.xlu1 %666 }
 0xeab   :  { %v669_v56 = vmul.f32 %v667_v54, %v663_v55 }
 0xead   :  { %671 = vrot.lane.b32.xlu2 %v669_v56, %s2229_s2 }
 0xed4   :  { %v254_v48 = vpop.f32.mrf.mxu1 }
 0xed5   :  { %v255_v49 = vadd.f32 %v2370_v20, %v254_v48 }
 0xed7   :  { %265 = vst.msk [vmem:[#allocation2 + $0x38] sm:$0xff] %vm257_vm4, %v255_v49 }
 0xede   :  { %v762_v53 = vld [vmem:[#allocation2 + $0x38] sm:$0xff] }
 0xf07   :  { %v672_v57 = vpop.permute.xlu2 %671 }
 0xf08   :  { %v674_v58 = vadd.f32 %v672_v57, %v622_v40 }
 0xf0a   :  { %1983 = vtanh.f32 %v674_v58 }
 0xf10   :  { %v1984_v59 = vpop.eup %1983 }
 0xf11   :  { %v676_v0 = vsub.f32 %v616_v4, %v1984_v59 }
 0xf13   :  { %678 = vrot.lane.b32.xlu0 %v676_v0, %s2230_s15 }
 0xf85   :  { %v679_v1 = vpop.permute.xlu0 %678 }
 0xf86   :  { %v681_v2 = vmul.f32 %v679_v1, %v663_v55 }
 0xf88   :  { %683 = vrot.lane.b32.xlu1 %v681_v2, %s2231_s17 }
 0xffa   :  { %v684_v13 = vpop.permute.xlu1 %683 }
 0xffb   :  { %v686_v14 = vadd.f32 %v1984_v59, %v684_v13 }
 0xffd   :  { %688 = vrot.lane.b32.xlu2 %v686_v14, %s2229_s2 }
0x1057   :  { %v689_v15 = vpop.permute.xlu2 %688 }
0x1058   :  { %691 = vst.msk [vmem:[#allocation3 + $0x28] sm:$0xff] %vm191_vm3, %v689_v15  ;;  %1885 = vmatmul.msk.f32.vlgmr.msrb.gmra.mxu2 %vm191_vm3, %v689_v15 }
0x105f   :  { %v837_v63 = vld [vmem:[#allocation3 + $0x28] sm:$0xff] }
0x1060   :  { %1889 = vmatmul.msk.f32.vlgmr.msra.gmra.mxu2 %vm191_vm3, %v834_v61 }
0x1068   :  { %1890 = vmatmul.msk.f32.gmra.mxu2 %vm191_vm3, %v835_v18 }
0x1070   :  { %1891 = vmatmul.msk.f32.gmra.mxu2 %vm191_vm3, %v836_v62 }
0x1078   :  { %1892 = vmatmul.msk.f32.gmra.mxu2 %vm191_vm3, %v837_v63 }
0x10db   :  { %v712_v19 = vpop.f32.mrf.mxu2 }
0x10dc   :  { %v713_v21 = vadd.f32 %v2363_v17, %v712_v19 }
0x10de   :  { %736 = vrot.lane.b32.xlu0 %v713_v21, %s2229_s2  ;;  %v715_v23 = vadd.f32 %v713_v21, %v692_v22  ;;  %v2531_v21 = vld [vmem:[%s3024_s6 + $0x3] ss:$0 sm:$0xff] }
0x10e0   :  { %v716_v24 = vsub.f32 0.0, %v715_v23 }
0x10e2   :  { %v717_v25 = vmul.f32 1.442695, %v716_v24  ;;  %v886_v24 = vpop.f32.mrf.mxu0 }
0x10e3   :  { %v892_v61 = vpop.f32.mrf.mxu2 }
0x10e4   :  { %1985 = vpow2.f32 %v717_v25 }
0x10ea   :  { %v1986_v26 = vpop.eup %1985 }
0x10eb   :  { %v719_v27 = vadd.f32 1.0, %v1986_v26  ;;  %v895_v62 = vpop.f32.mrf.mxu2 }
0x10ed   :  { %1987 = vrcp.f32 %v719_v27  ;;  %v731_v33 = vand.u32 2147483648, %v719_v27  ;;  %vm725_vm8 = vweird.f32 %v719_v27  ;;  %v729_v34 = vand.u32 2147483647, %v719_v27 }
0x10ef   :  { %v732_v3 = vor.u32 1.1754944e-38, %v731_v33  ;;  %vm730_vm10 = vcmp.eq.f32.partialorder %v729_v34, 8.507059e+37 }
0x10f3   :  { %v1988_v28 = vpop.eup %1987  ;;  %v2526_v63 = vpop.f32.mrf.mxu2 }
0x10f4   :  { %v721_v29 = vmul.f32 %v1988_v28, %v719_v27  ;;  %vm726_vm7 = vweird.f32 %v1988_v28 }
0x10f5   :  { %vm727_vm9 = vmor %vm725_vm8, %vm726_vm7 }
0x10f6   :  { %v722_v30 = vsub.f32 1.0, %v721_v29 }
0x10f8   :  { %v723_v31 = vmul.f32 %v1988_v28, %v722_v30  ;;  %v889_v30 = vpop.f32.mrf.mxu0 }
0x10fa   :  { %v724_v32 = vadd.f32 %v1988_v28, %v723_v31  ;;  %v890_v31 = vadd.f32 %v2531_v21, %v889_v30  ;;  %v2584_v30 = vld [vmem:[%s3024_s6 + $0x5] ss:$0 sm:$0xff] }
0x10fb   :  { %v901_v19 = vpop.f32.mrf.mxu2 }
0x10fc   :  { %v728_v35 = vsel %vm727_vm9, %v1988_v28, %v724_v32  ;;  %v919_v34 = vmul.f32 0.01, %v890_v31  ;;  %vm911_vm1 = vcmp.ge.f32.partialorder %v890_v31, 0.0 }
0x10fd   :  { %v733_v36 = vsel %vm730_vm10, %v732_v3, %v728_v35 }
0x10fe   :  { %v2541_v35 = vsel %vm911_vm1, %v890_v31, %v919_v34 }
0x10ff   :  { %v937_v3 = vsel %vm191_vm3, %v2541_v35, 0.0 }
0x1150   :  { %v737_v4 = vpop.permute.xlu0 %736 }
0x1151   :  { %v739_v37 = vmul.f32 %v737_v4, %v733_v36 }
0x1153   :  { %741 = vrot.lane.b32.xlu1 %v739_v37, %s2229_s2  ;;  %v2232_v37 = vmov 32.0  }
0x11c5   :  { %v742_v38 = vpop.permute.xlu1 %741 }
0x11c6   :  { %v744_v6 = vadd.f32 %v742_v38, %v692_v22  ;;  %v893_v22 = vadd.f32 %v2531_v21, %v892_v61  ;;  %v896_v38 = vadd.f32 %v2531_v21, %v895_v62  ;;  %v1135_v61 = vld [vmem:[#allocation9] sm:$0xff] }
0x11c8   :  { %1989 = vtanh.f32 %v744_v6  ;;  %v920_v23 = vmul.f32 0.01, %v893_v22  ;;  %vm912_vm15 = vcmp.ge.f32.partialorder %v893_v22, 0.0  ;;  %vm913_vm2 = vcmp.ge.f32.partialorder %v896_v38, 0.0 }
0x11ca   :  { %v928_v27 = vsel %vm912_vm15, %v893_v22, %v920_v23 }
0x11cb   :  { %v940_v28 = vsel %vm191_vm3, %v928_v27, 0.0 }
0x11ce   :  { %v1990_v39 = vpop.eup %1989 }
0x11cf   :  { %v746_v40 = vsub.f32 %v686_v14, %v1990_v39 }
0x11d1   :  { %748 = vrot.lane.b32.xlu2 %v746_v40, %s2230_s15 }
0x122b   :  { %v749_v7 = vpop.permute.xlu2 %748 }
0x122c   :  { %v751_v41 = vmul.f32 %v749_v7, %v733_v36  ;;  %v902_v7 = vadd.f32 %v2531_v21, %v901_v19 }
0x122e   :  { %753 = vrot.lane.b32.xlu0 %v751_v41, %s2231_s17  ;;  %v923_v44 = vmul.f32 0.01, %v902_v7  ;;  %vm915_vm5 = vcmp.ge.f32.partialorder %v902_v7, 0.0 }
0x1230   :  { %v931_v48 = vsel %vm915_vm5, %v902_v7, %v923_v44 }
0x1231   :  { %v949_v49 = vsel %vm191_vm3, %v931_v48, 0.0 }
0x12a0   :  { %v754_v46 = vpop.permute.xlu0 %753 }
0x12a1   :  { %v756_v47 = vadd.f32 %v1990_v39, %v754_v46  ;;  %v921_v39 = vmul.f32 0.01, %v896_v38  ;;  %v887_v46 = vadd.f32 %v2531_v21, %v886_v24 }
0x12a3   :  { %758 = vrot.lane.b32.xlu1 %v756_v47, %s2229_s2  ;;  %v2548_v42 = vsel %vm913_vm2, %v896_v38, %v921_v39  ;;  %vm910_vm7 = vcmp.ge.f32.partialorder %v887_v46, 0.0 }
0x12a4   :  { %v943_v43 = vsel %vm191_vm3, %v2548_v42, 0.0 }
0x1315   :  { %v759_v50 = vpop.permute.xlu1 %758 }
0x1316   :  { %761 = vst.msk [vmem:[#allocation3 + $0x30] sm:$0xff] %vm191_vm3, %v759_v50  ;;  %1886 = vmatmul.msk.f32.vlgmr.msrb.gmra.mxu3 %vm191_vm3, %v759_v50  ;;  %v918_v50 = vmul.f32 0.01, %v887_v46 }
0x131d   :  { %v838_v12 = vld [vmem:[#allocation3 + $0x30] sm:$0xff] }
0x131e   :  { %1893 = vmatmul.msk.f32.gmra.mxu2 %vm191_vm3, %v838_v12 }
0x1399   :  { %v782_v51 = vpop.f32.mrf.mxu3 }
0x139a   :  { %v783_v52 = vadd.f32 %v2363_v17, %v782_v51 }
0x139c   :  { %806 = vrot.lane.b32.xlu2 %v783_v52, %s2229_s2  ;;  %v785_v54 = vadd.f32 %v783_v52, %v762_v53 }
0x139e   :  { %v786_v55 = vsub.f32 0.0, %v785_v54 }
0x13a0   :  { %v787_v56 = vmul.f32 1.442695, %v786_v55 }
0x13a1   :  { %v904_v25 = vpop.f32.mrf.mxu2 }
0x13a2   :  { %1991 = vpow2.f32 %v787_v56  ;;  %v905_v26 = vadd.f32 %v2531_v21, %v904_v25 }
0x13a4   :  { %v924_v29 = vmul.f32 0.01, %v905_v26  ;;  %vm916_vm0 = vcmp.ge.f32.partialorder %v905_v26, 0.0 }
0x13a6   :  { %v2537_v32 = vsel %vm916_vm0, %v905_v26, %v924_v29 }
0x13a7   :  { %v952_v33 = vsel %vm191_vm3, %v2537_v32, 0.0 }
0x13a8   :  { %v1992_v20 = vpop.eup %1991 }
0x13a9   :  { %v789_v57 = vadd.f32 1.0, %v1992_v20 }
0x13ab   :  { %1993 = vrcp.f32 %v789_v57  ;;  %v801_v5 = vand.u32 2147483648, %v789_v57  ;;  %vm795_vm12 = vweird.f32 %v789_v57  ;;  %v799_v9 = vand.u32 2147483647, %v789_v57 }
0x13ad   :  { %v802_v10 = vor.u32 1.1754944e-38, %v801_v5  ;;  %vm800_vm14 = vcmp.eq.f32.partialorder %v799_v9, 8.507059e+37 }
0x13b1   :  { %v1994_v58 = vpop.eup %1993 }
0x13b2   :  { %v791_v59 = vmul.f32 %v1994_v58, %v789_v57  ;;  %vm796_vm4 = vweird.f32 %v1994_v58 }
0x13b3   :  { %vm797_vm13 = vmor %vm795_vm12, %vm796_vm4  ;;  %vm1325_vm12 = vcmask 138248  }
0x13b4   :  { %v792_v0 = vsub.f32 1.0, %v791_v59  ;;  %v899_v59 = vadd.f32 %v2531_v21, %v2526_v63 }
0x13b6   :  { %v793_v1 = vmul.f32 %v1994_v58, %v792_v0  ;;  %v922_v0 = vmul.f32 0.01, %v899_v59  ;;  %vm914_vm8 = vcmp.ge.f32.partialorder %v899_v59, 0.0 }
0x13b8   :  { %v794_v2 = vadd.f32 %v1994_v58, %v793_v1  ;;  %v930_v1 = vsel %vm914_vm8, %v899_v59, %v922_v0 }
0x13ba   :  { %v798_v17 = vsel %vm797_vm13, %v1994_v58, %v794_v2  ;;  %v946_v2 = vsel %vm191_vm3, %v930_v1, 0.0 }
0x13bb   :  { %v803_v13 = vsel %vm800_vm14, %v802_v10, %v798_v17 }
0x13f6   :  { %v807_v11 = vpop.permute.xlu2 %806 }
0x13f7   :  { %v809_v14 = vmul.f32 %v807_v11, %v803_v13 }
0x13f9   :  { %811 = vrot.lane.b32.xlu0 %v809_v14, %s2229_s2 }
0x146b   :  { %v812_v15 = vpop.permute.xlu0 %811 }
0x146c   :  { %v814_v60 = vadd.f32 %v812_v15, %v762_v53  ;;  %v2557_v53 = vsel %vm910_vm7, %v887_v46, %v918_v50  ;;  %v1137_v15 = vld [vmem:[#allocation9 + $0x10] sm:$0xff] }
0x146d   :  { %v934_v55 = vsel %vm191_vm3, %v2557_v53, 0.0 }
0x146e   :  { %1995 = vtanh.f32 %v814_v60 }
0x146f   :  { %1997 = vrcp.f32 %v2232_v37 }
0x1474   :  { %v2522_v16 = vpop.eup %1995 }
0x1475   :  { %v816_v18 = vsub.f32 %v756_v47, %v2522_v16  ;;  %v1998_v6 = vpop.eup %1997 }
0x1476   :  { %v959_v40 = vmul.f32 32.0, %v1998_v6  ;;  %vm963_vm6 = vweird.f32 %v1998_v6 }
0x1477   :  { %818 = vrot.lane.b32.xlu1 %v816_v18, %s2230_s15 }
0x1478   :  { %v960_v41 = vsub.f32 1.0, %v959_v40 }
0x147a   :  { %v961_v45 = vmul.f32 %v1998_v6, %v960_v41 }
0x147c   :  { %v962_v47 = vadd.f32 %v1998_v6, %v961_v45 }
0x147e   :  { %v2554_v12 = vsel %vm963_vm6, %v1998_v6, %v962_v47 }
0x14a1   :  { %941 = vadd.xlane.f32.xlu1 %v940_v28 }
0x14a9   :  { %953 = vadd.xlane.f32.xlu1 %v952_v33 }
0x14b1   :  { %938 = vadd.xlane.f32.xlu1 %v937_v3 }
0x14e9   :  { %v819_v4 = vpop.permute.xlu1 %818 }
0x14ea   :  { %v821_v36 = vmul.f32 %v819_v4, %v803_v13  ;;  %v1138_v13 = vld [vmem:[#allocation9 + $0x18] sm:$0xff] }
0x14eb   :  { %1915 = vmatpush.msra.mxu3 %v1138_v13  ;;  %1176 = vmatpush.msrb.mxu1 %v1138_v13 }
0x14ec   :  { %823 = vrot.lane.b32.xlu2 %v821_v36, %s2231_s17 }
0x14ed   :  { %1916 = vmatpush.msra.mxu3 %v1137_v15  ;;  %1177 = vmatpush.msrb.mxu1 %v1137_v15 }
0x1514   :  { %v942_v51 = vpop.xlane.xlu1 %941 }
0x1515   :  { %944 = vadd.xlane.f32.xlu2 %v943_v43  ;;  %v967_v52 = vmul.f32 %v2554_v12, %v942_v51  ;;  %v2607_v43 = vld [vmem:[%s3024_s6 + $0x6] ss:$0 sm:$0xff] }
0x1517   :  { %v975_v54 = vsub.f32 %v928_v27, %v967_v52  ;;  %v2579_v27 = vld [vmem:[%s3024_s6 + $0x4] ss:$0 sm:$0xff]  ;;  %s2233_s6 = smov 127  }
0x1519   :  { %v983_v56 = vmul.f32 %v975_v54, %v975_v54 }
0x151b   :  { %v995_v20 = vsel %vm191_vm3, %v983_v56, 0.0 }
0x151d   :  { %950 = vadd.xlane.f32.xlu2 %v949_v49 }
0x1525   :  { %935 = vadd.xlane.f32.xlu2 %v934_v55 }
0x152d   :  { %996 = vadd.xlane.f32.xlu2 %v995_v20 }
0x1546   :  { %v824_v57 = vpop.permute.xlu2 %823 }
0x1547   :  { %v826_v58 = vadd.f32 %v2522_v16, %v824_v57  ;;  %v1136_v16 = vld [vmem:[#allocation9 + $0x8] sm:$0xff] }
0x1548   :  { %1917 = vmatpush.msra.mxu3 %v1136_v16  ;;  %1178 = vmatpush.msrb.mxu1 %v1136_v16 }
0x1549   :  { %828 = vrot.lane.b32.xlu0 %v826_v58, %s2229_s2 }
0x154a   :  { %1918 = vmatpush.msra.mxu3 %v1135_v61  ;;  %1179 = vmatpush.msrb.mxu1 %v1135_v61 }
0x1573   :  { %947 = vadd.xlane.f32.xlu0 %v946_v2 }
0x1588   :  { %v2567_v5 = vpop.xlane.xlu2 %944 }
0x1589   :  { %v968_v51 = vmul.f32 %v2554_v12, %v2567_v5 }
0x158b   :  { %v2614_v55 = vsub.f32 %v2548_v42, %v968_v51 }
0x1590   :  { %v951_v9 = vpop.xlane.xlu2 %950 }
0x1591   :  { %v970_v17 = vmul.f32 %v2554_v12, %v951_v9 }
0x1593   :  { %v2570_v10 = vsub.f32 %v931_v48, %v970_v17 }
0x1595   :  { %v986_v11 = vmul.f32 %v2570_v10, %v2570_v10 }
0x1597   :  { %v1004_v14 = vsel %vm191_vm3, %v986_v11, 0.0 }
0x1598   :  { %1005 = vadd.xlane.f32.xlu2 %v1004_v14  ;;  %v936_v60 = vpop.xlane.xlu2 %935 }
0x1599   :  { %v965_v37 = vmul.f32 %v2554_v12, %v936_v60 }
0x159b   :  { %v2598_v39 = vsub.f32 %v2557_v53, %v965_v37  ;;  %v954_v53 = vpop.xlane.xlu1 %953 }
0x159c   :  { %v971_v58 = vmul.f32 %v2554_v12, %v954_v53 }
0x159d   :  { %v981_v7 = vmul.f32 %v2598_v39, %v2598_v39 }
0x159e   :  { %v2621_v59 = vsub.f32 %v2537_v32, %v971_v58 }
0x159f   :  { %v989_v41 = vsel %vm191_vm3, %v981_v7, 0.0 }
0x15a0   :  { %v997_v18 = vpop.xlane.xlu2 %996  ;;  %v987_v11 = vmul.f32 %v2621_v59, %v2621_v59 }
0x15a1   :  { %v1015_v62 = vmul.f32 %v997_v18, %v2554_v12 }
0x15a2   :  { %v1007_v32 = vsel %vm191_vm3, %v987_v11, 0.0 }
0x15a3   :  { %v1023_v63 = vadd.f32 1e-05, %v1015_v62  ;;  %v939_v2 = vpop.xlane.xlu1 %938 }
0x15a4   :  { %v966_v5 = vmul.f32 %v2554_v12, %v939_v2 }
0x15a5   :  { %1999 = vrsqrt.f32 %v1023_v63  ;;  %vm1055_vm10 = vweird.f32 %v1023_v63 }
0x15a6   :  { %v2628_v14 = vsub.f32 %v2541_v35, %v966_v5 }
0x15a8   :  { %v982_v61 = vmul.f32 %v2628_v14, %v2628_v14 }
0x15aa   :  { %v992_v18 = vsel %vm191_vm3, %v982_v61, 0.0 }
0x15ab   :  { %v2000_v19 = vpop.eup %1999 }
0x15ac   :  { %v1050_v22 = vmul.f32 %v2000_v19, %v1023_v63  ;;  %vm1056_vm9 = vweird.f32 %v2000_v19 }
0x15ad   :  { %vm1057_vm11 = vmor %vm1055_vm10, %vm1056_vm9 }
0x15ae   :  { %v1051_v23 = vmul.f32 %v2000_v19, %v1050_v22 }
0x15b0   :  { %v1052_v24 = vmul.f32 0.5, %v1051_v23 }
0x15b2   :  { %v1053_v25 = vsub.f32 1.5, %v1052_v24 }
0x15b4   :  { %v1054_v26 = vmul.f32 %v2000_v19, %v1053_v25 }
0x15b6   :  { %v1058_v28 = vsel %vm1057_vm11, %v2000_v19, %v1054_v26 }
0x15b7   :  { %v1111_v29 = vmul.f32 %v1058_v28, %v975_v54 }
0x15b9   :  { %v1120_v31 = vmul.f32 %v2579_v27, %v1111_v29 }
0x15bb   :  { %v829_v33 = vpop.permute.xlu0 %828  ;;  %v1129_v34 = vadd.f32 %v2584_v30, %v1120_v31 }
0x15bc   :  { %831 = vst.msk [vmem:[#allocation3 + $0x38] sm:$0xff] %vm191_vm3, %v829_v33 }
0x15bd   :  { %1897 = vmatmul.msk.f32.vlgmr.msra.gmra.mxu3 %vm191_vm3, %v1129_v34 }
0x15c3   :  { %v839_v3 = vld [vmem:[#allocation3 + $0x38] sm:$0xff] }
0x15c4   :  { %1894 = vmatmul.msk.f32.gmra.mxu2 %vm191_vm3, %v839_v3 }
0x15e6   :  { %v948_v4 = vpop.xlane.xlu0 %947 }
0x15e7   :  { %v969_v36 = vmul.f32 %v2554_v12, %v948_v4 }
0x15e9   :  { %v2593_v38 = vsub.f32 %v930_v1, %v969_v36 }
0x15eb   :  { %v985_v6 = vmul.f32 %v2593_v38, %v2593_v38 }
0x15ed   :  { %v1001_v40 = vsel %vm191_vm3, %v985_v6, 0.0 }
0x15ee   :  { %1002 = vadd.xlane.f32.xlu1 %v1001_v40 }
0x15f6   :  { %990 = vadd.xlane.f32.xlu1 %v989_v41 }
0x160b   :  { %v1006_v6 = vpop.xlane.xlu2 %1005 }
0x1640   :  { %v1187_v44 = vpop.f32.mrf.mxu3 }
0x1641   :  { %v1188_v45 = vadd.f32 %v2607_v43, %v1187_v44  ;;  %v1018_v44 = vmul.f32 %v1006_v6, %v2554_v12 }
0x1643   :  { %v1223_v46 = vand.u32 2147483647, %v1188_v45  ;;  %v1207_v0 = vsub.f32 0.0, %v1188_v45 }
0x1645   :  { %v1231_v47 = vsub.f32 0.0, %v1223_v46  ;;  %v1215_v9 = vmax.f32 %v1207_v0, 0.0  ;;  %v1026_v46 = vadd.f32 1e-05, %v1018_v44 }
0x1647   :  { %v1241_v48 = vmul.f32 1.442695, %v1231_v47  ;;  %v907_v49 = vpop.f32.mrf.mxu2  ;;  %vm1085_vm9 = vweird.f32 %v1026_v46 }
0x1648   :  { %v908_v50 = vadd.f32 %v2531_v21, %v907_v49  ;;  %v984_v21 = vmul.f32 %v2614_v55, %v2614_v55 }
0x1649   :  { %2001 = vpow2.f32 %v1241_v48 }
0x164a   :  { %v925_v52 = vmul.f32 0.01, %v908_v50  ;;  %vm917_vm4 = vcmp.ge.f32.partialorder %v908_v50, 0.0  ;;  %v998_v1 = vsel %vm191_vm3, %v984_v21, 0.0 }
0x164c   :  { %v933_v54 = vsel %vm917_vm4, %v908_v50, %v925_v52 }
0x164d   :  { %v955_v56 = vsel %vm191_vm3, %v933_v54, 0.0 }
0x164e   :  { %956 = vadd.xlane.f32.xlu0 %v955_v56 }
0x164f   :  { %v2002_v20 = vpop.eup %2001 }
0x1650   :  { %v1255_v57 = vadd.f32 1.0, %v2002_v20 }
0x1652   :  { %2003 = vlog2.f32 %v1255_v57 }
0x1656   :  { %999 = vadd.xlane.f32.xlu0 %v998_v1 }
0x1658   :  { %v2004_v42 = vpop.eup %2003 }
0x1659   :  { %v1266_v17 = vmul.f32 0.6931472, %v2004_v42 }
0x165b   :  { %v1279_v13 = vadd.f32 %v1266_v17, %v1215_v9 }
0x165d   :  { %v1287_v15 = vmul.f32 -2.3025851, %v1279_v13 }
0x165e   :  { %1008 = vadd.xlane.f32.xlu0 %v1007_v32 }
0x165f   :  { %v1297_v60 = vmul.f32 1.442695, %v1287_v15 }
0x1661   :  { %2005 = vpow2.f32 %v1297_v60  ;;  %v1003_v16 = vpop.xlane.xlu1 %1002 }
0x1662   :  { %v1017_v37 = vmul.f32 %v1003_v16, %v2554_v12 }
0x1664   :  { %v1025_v40 = vadd.f32 1e-05, %v1017_v37 }
0x1666   :  { %993 = vadd.xlane.f32.xlu0 %v992_v18  ;;  %vm1075_vm6 = vweird.f32 %v1025_v40 }
0x1667   :  { %v2006_v62 = vpop.eup %2005 }
0x1668   :  { %v1311_v63 = vmul.f32 2.0, %v2006_v62 }
0x1669   :  { %v991_v19 = vpop.xlane.xlu1 %990 }
0x166a   :  { %v1013_v35 = vmul.f32 %v991_v19, %v2554_v12  ;;  %v2635_v22 = vadd.f32 1e-07, %v1311_v63 }
0x166c   :  { %v1021_v23 = vadd.f32 1e-05, %v1013_v35  ;;  %v1332_v24 = vsel %vm1325_vm12, %v2635_v22, -inf }
0x166e   :  { %2007 = vrsqrt.f32 %v1021_v23  ;;  %1333 = vmax.xlane.f32.xlu0 %v1332_v24  ;;  %vm1035_vm14 = vweird.f32 %v1021_v23 }
0x166f   :  { %2009 = vrsqrt.f32 %v1025_v40 }
0x1670   :  { %2011 = vrsqrt.f32 %v1026_v46 }
0x1674   :  { %v2008_v25 = vpop.eup %2007 }
0x1675   :  { %v1030_v26 = vmul.f32 %v2008_v25, %v1021_v23  ;;  %vm1036_vm13 = vweird.f32 %v2008_v25  ;;  %v2010_v49 = vpop.eup %2009 }
0x1676   :  { %vm1037_vm15 = vmor %vm1035_vm14, %vm1036_vm13  ;;  %v1070_v52 = vmul.f32 %v2010_v49, %v1025_v40  ;;  %v2012_v53 = vpop.eup %2011  ;;  %vm1076_vm1 = vweird.f32 %v2010_v49 }
0x1677   :  { %v1031_v28 = vmul.f32 %v2008_v25, %v1030_v26  ;;  %v1080_v58 = vmul.f32 %v2012_v53, %v1026_v46  ;;  %vm1077_vm7 = vmor %vm1075_vm6, %vm1076_vm1  ;;  %vm1086_vm8 = vweird.f32 %v2012_v53 }
0x1678   :  { %v1071_v56 = vmul.f32 %v2010_v49, %v1070_v52  ;;  %vm1087_vm10 = vmor %vm1085_vm9, %vm1086_vm8 }
0x1679   :  { %v1032_v29 = vmul.f32 0.5, %v1031_v28  ;;  %v1081_v42 = vmul.f32 %v2012_v53, %v1080_v58 }
0x167a   :  { %v1072_v0 = vmul.f32 0.5, %v1071_v56 }
0x167b   :  { %v1033_v31 = vsub.f32 1.5, %v1032_v29  ;;  %v1082_v32 = vmul.f32 0.5, %v1081_v42 }
0x167c   :  { %v1073_v5 = vsub.f32 1.5, %v1072_v0 }
0x167d   :  { %v1034_v33 = vmul.f32 %v2008_v25, %v1033_v31  ;;  %v1083_v19 = vsub.f32 1.5, %v1082_v32 }
0x167e   :  { %v1074_v16 = vmul.f32 %v2010_v49, %v1073_v5 }
0x167f   :  { %v1038_v34 = vsel %vm1037_vm15, %v2008_v25, %v1034_v33  ;;  %v1084_v29 = vmul.f32 %v2012_v53, %v1083_v19 }
0x1680   :  { %v1109_v3 = vmul.f32 %v1038_v34, %v2598_v39  ;;  %v1078_v35 = vsel %vm1077_vm7, %v2010_v49, %v1074_v16 }
0x1681   :  { %v1113_v28 = vmul.f32 %v1078_v35, %v2593_v38 }
0x1682   :  { %v1118_v4 = vmul.f32 %v2579_v27, %v1109_v3  ;;  %v1088_v3 = vsel %vm1087_vm10, %v2012_v53, %v1084_v29 }
0x1683   :  { %v1114_v38 = vmul.f32 %v1088_v3, %v2570_v10 }
0x1684   :  { %v1127_v36 = vadd.f32 %v2584_v30, %v1118_v4 }
0x1686   :  { %1895 = vmatmul.msk.f32.vlgmr.msrb.gmra.mxu1 %vm191_vm3, %v1127_v36 }
0x16c1   :  { %v957_v7 = vpop.xlane.xlu0 %956 }
0x16c2   :  { %v972_v41 = vmul.f32 %v2554_v12, %v957_v7 }
0x16c4   :  { %v2646_v45 = vsub.f32 %v933_v54, %v972_v41 }
0x16c6   :  { %v988_v39 = vmul.f32 %v2646_v45, %v2646_v45 }
0x16c8   :  { %v1010_v47 = vsel %vm191_vm3, %v988_v39, 0.0  ;;  %v1123_v39 = vmul.f32 %v2579_v27, %v1114_v38 }
0x16c9   :  { %v1000_v48 = vpop.xlane.xlu0 %999  ;;  %1011 = vadd.xlane.f32.xlu2 %v1010_v47 }
0x16ca   :  { %v1016_v50 = vmul.f32 %v1000_v48, %v2554_v12  ;;  %v1132_v10 = vadd.f32 %v2584_v30, %v1123_v39 }
0x16cc   :  { %v1024_v51 = vadd.f32 1e-05, %v1016_v50 }
0x16ce   :  { %2013 = vrsqrt.f32 %v1024_v51  ;;  %vm1065_vm2 = vweird.f32 %v1024_v51 }
0x16d1   :  { %v1009_v20 = vpop.xlane.xlu0 %1008 }
0x16d2   :  { %v1019_v54 = vmul.f32 %v1009_v20, %v2554_v12 }
0x16d4   :  { %v2014_v57 = vpop.eup %2013  ;;  %v1027_v21 = vadd.f32 1e-05, %v1019_v54 }
0x16d5   :  { %v1060_v1 = vmul.f32 %v2014_v57, %v1024_v51  ;;  %vm1066_vm0 = vweird.f32 %v2014_v57 }
0x16d6   :  { %2015 = vrsqrt.f32 %v1027_v21  ;;  %vm1067_vm5 = vmor %vm1065_vm2, %vm1066_vm0  ;;  %vm1095_vm15 = vweird.f32 %v1027_v21 }
0x16d7   :  { %v1061_v2 = vmul.f32 %v2014_v57, %v1060_v1 }
0x16d9   :  { %v1062_v9 = vmul.f32 0.5, %v1061_v2  ;;  %v994_v17 = vpop.xlane.xlu0 %993 }
0x16da   :  { %v1014_v11 = vmul.f32 %v994_v17, %v2554_v12 }
0x16db   :  { %v1063_v13 = vsub.f32 1.5, %v1062_v9 }
0x16dc   :  { %v2016_v15 = vpop.eup %2015  ;;  %v1022_v60 = vadd.f32 1e-05, %v1014_v11 }
0x16dd   :  { %v1064_v61 = vmul.f32 %v2014_v57, %v1063_v13  ;;  %v1090_v18 = vmul.f32 %v2016_v15, %v1027_v21  ;;  %vm1096_vm4 = vweird.f32 %v2016_v15 }
0x16de   :  { %2017 = vrsqrt.f32 %v1022_v60  ;;  %vm1045_vm13 = vweird.f32 %v1022_v60  ;;  %vm1097_vm0 = vmor %vm1095_vm15, %vm1096_vm4 }
0x16df   :  { %v1068_v62 = vsel %vm1067_vm5, %v2014_v57, %v1064_v61  ;;  %v1091_v23 = vmul.f32 %v2016_v15, %v1090_v18 }
0x16e0   :  { %v1112_v63 = vmul.f32 %v1068_v62, %v2614_v55  ;;  %v1122_v55 = vmul.f32 %v2579_v27, %v1113_v28 }
0x16e1   :  { %v1092_v31 = vmul.f32 0.5, %v1091_v23 }
0x16e2   :  { %v1121_v24 = vmul.f32 %v2579_v27, %v1112_v63  ;;  %v1131_v6 = vadd.f32 %v2584_v30, %v1122_v55 }
0x16e3   :  { %v1093_v4 = vsub.f32 1.5, %v1092_v31 }
0x16e4   :  { %v2018_v25 = vpop.eup %2017  ;;  %v1130_v26 = vadd.f32 %v2584_v30, %v1121_v24 }
0x16e5   :  { %v1040_v33 = vmul.f32 %v2018_v25, %v1022_v60  ;;  %vm1046_vm11 = vweird.f32 %v2018_v25  ;;  %v1094_v40 = vmul.f32 %v2016_v15, %v1093_v4 }
0x16e6   :  { %1898 = vmatmul.msk.f32.gmra.mxu3 %vm191_vm3, %v1130_v26  ;;  %vm1047_vm14 = vmor %vm1045_vm13, %vm1046_vm11 }
0x16e7   :  { %v1041_v34 = vmul.f32 %v2018_v25, %v1040_v33  ;;  %v1098_v46 = vsel %vm1097_vm0, %v2016_v15, %v1094_v40 }
0x16e8   :  { %v1115_v49 = vmul.f32 %v1098_v46, %v2621_v59 }
0x16e9   :  { %v1042_v36 = vmul.f32 0.5, %v1041_v34 }
0x16ea   :  { %v1124_v50 = vmul.f32 %v2579_v27, %v1115_v49 }
0x16eb   :  { %v1043_v37 = vsub.f32 1.5, %v1042_v36 }
0x16ec   :  { %v1133_v51 = vadd.f32 %v2584_v30, %v1124_v50 }
0x16ed   :  { %v1044_v7 = vmul.f32 %v2018_v25, %v1043_v37 }
0x16ee   :  { %1899 = vmatmul.msk.f32.gmra.mxu3 %vm191_vm3, %v1131_v6 }
0x16ef   :  { %v1048_v41 = vsel %vm1047_vm14, %v2018_v25, %v1044_v7 }
0x16f0   :  { %v1110_v44 = vmul.f32 %v1048_v41, %v2628_v14 }
0x16f2   :  { %v1119_v47 = vmul.f32 %v2579_v27, %v1110_v44 }
0x16f4   :  { %v1128_v48 = vadd.f32 %v2584_v30, %v1119_v47 }
0x16f6   :  { %1896 = vmatmul.msk.f32.gmra.mxu1 %vm191_vm3, %v1128_v48  ;;  %1900 = vmatmul.msk.f32.gmra.mxu3 %vm191_vm3, %v1132_v10 }
0x16fe   :  { %1901 = vmatmul.msk.f32.gmra.mxu3 %vm191_vm3, %v1133_v51 }
0x1703   :  { %v1181_v14 = vpop.f32.mrf.mxu1 }
0x1704   :  { %v1182_v52 = vadd.f32 %v2607_v43, %v1181_v14 }
0x1706   :  { %v1221_v53 = vand.u32 2147483647, %v1182_v52  ;;  %v1205_v59 = vsub.f32 0.0, %v1182_v52 }
0x1708   :  { %v1229_v56 = vsub.f32 0.0, %v1221_v53  ;;  %v1213_v21 = vmax.f32 %v1205_v59, 0.0 }
0x170a   :  { %v1237_v20 = vmul.f32 1.442695, %v1229_v56 }
0x170c   :  { %2019 = vpow2.f32 %v1237_v20 }
0x1712   :  { %v2020_v54 = vpop.eup %2019 }
0x1713   :  { %v1253_v57 = vadd.f32 1.0, %v2020_v54 }
0x1715   :  { %2021 = vlog2.f32 %v1253_v57 }
0x171b   :  { %v2022_v58 = vpop.eup %2021 }
0x171c   :  { %v1262_v0 = vmul.f32 0.6931472, %v2022_v58 }
0x171e   :  { %v1277_v1 = vadd.f32 %v1262_v0, %v1213_v21 }
0x1720   :  { %v1285_v2 = vmul.f32 -2.3025851, %v1277_v1 }
0x1722   :  { %v1293_v42 = vmul.f32 1.442695, %v1285_v2 }
0x1724   :  { %2023 = vpow2.f32 %v1293_v42 }
0x172a   :  { %v2024_v5 = vpop.eup %2023 }
0x172b   :  { %v1309_v9 = vmul.f32 2.0, %v2024_v5 }
0x172d   :  { %v2675_v17 = vadd.f32 1e-07, %v1309_v9 }
0x172f   :  { %v1326_v11 = vsel %vm1325_vm12, %v2675_v17, -inf }
0x1730   :  { %1327 = vmax.xlane.f32.xlu1 %v1326_v11 }
0x173c   :  { %v1012_v13 = vpop.xlane.xlu2 %1011 }
0x173d   :  { %v1020_v15 = vmul.f32 %v1012_v13, %v2554_v12 }
0x173f   :  { %v1028_v32 = vadd.f32 1e-05, %v1020_v15 }
0x1741   :  { %2025 = vrsqrt.f32 %v1028_v32  ;;  %vm1105_vm2 = vweird.f32 %v1028_v32 }
0x1747   :  { %v2026_v60 = vpop.eup %2025 }
0x1748   :  { %v1100_v16 = vmul.f32 %v2026_v60, %v1028_v32  ;;  %vm1106_vm1 = vweird.f32 %v2026_v60 }
0x1749   :  { %vm1107_vm5 = vmor %vm1105_vm2, %vm1106_vm1 }
0x174a   :  { %v1101_v61 = vmul.f32 %v2026_v60, %v1100_v16 }
0x174c   :  { %v1102_v18 = vmul.f32 0.5, %v1101_v61 }
0x174e   :  { %v1103_v62 = vsub.f32 1.5, %v1102_v18 }
0x1750   :  { %v1104_v63 = vmul.f32 %v2026_v60, %v1103_v62 }
0x1752   :  { %v1108_v19 = vsel %vm1107_vm5, %v2026_v60, %v1104_v63 }
0x1753   :  { %v1116_v35 = vmul.f32 %v1108_v19, %v2646_v45 }
0x1755   :  { %v1125_v23 = vmul.f32 %v2579_v27, %v1116_v35 }
0x1757   :  { %v1134_v24 = vadd.f32 %v2584_v30, %v1125_v23 }
0x1759   :  { %1902 = vmatmul.msk.f32.gmra.mxu3 %vm191_vm3, %v1134_v24  ;;  %vm1406_vm3 = vcmask 130048  }
0x1769   :  { %v1190_v12 = vpop.f32.mrf.mxu3 }
0x176a   :  { %v1191_v25 = vadd.f32 %v2607_v43, %v1190_v12 }
0x176c   :  { %v1224_v26 = vand.u32 2147483647, %v1191_v25  ;;  %v1208_v41 = vsub.f32 0.0, %v1191_v25 }
0x176e   :  { %v1232_v28 = vsub.f32 0.0, %v1224_v26  ;;  %v1216_v50 = vmax.f32 %v1208_v41, 0.0 }
0x1770   :  { %v1243_v29 = vmul.f32 1.442695, %v1232_v28 }
0x1771   :  { %v1193_v31 = vpop.f32.mrf.mxu3 }
0x1772   :  { %2027 = vpow2.f32 %v1243_v29  ;;  %v1194_v33 = vadd.f32 %v2607_v43, %v1193_v31 }
0x1773   :  { %v1184_v34 = vpop.f32.mrf.mxu1 }
0x1774   :  { %v1225_v55 = vand.u32 2147483647, %v1194_v33  ;;  %v1185_v45 = vadd.f32 %v2607_v43, %v1184_v34  ;;  %v1209_v54 = vsub.f32 0.0, %v1194_v33 }
0x1776   :  { %v1233_v3 = vsub.f32 0.0, %v1225_v55  ;;  %v1222_v27 = vand.u32 2147483647, %v1185_v45  ;;  %v1206_v21 = vsub.f32 0.0, %v1185_v45  ;;  %v1217_v42 = vmax.f32 %v1209_v54, 0.0 }
0x1778   :  { %v2028_v4 = vpop.eup %2027  ;;  %v1245_v30 = vmul.f32 1.442695, %v1233_v3  ;;  %v1230_v36 = vsub.f32 0.0, %v1222_v27  ;;  %v1214_v13 = vmax.f32 %v1206_v21, 0.0 }
0x1779   :  { %v1256_v37 = vadd.f32 1.0, %v2028_v4  ;;  %v1196_v6 = vpop.f32.mrf.mxu3 }
0x177a   :  { %2029 = vpow2.f32 %v1245_v30  ;;  %v1239_v38 = vmul.f32 1.442695, %v1230_v36  ;;  %v1197_v40 = vadd.f32 %v2607_v43, %v1196_v6 }
0x177b   :  { %2031 = vlog2.f32 %v1256_v37 }
0x177c   :  { %2033 = vpow2.f32 %v1239_v38  ;;  %v1226_v7 = vand.u32 2147483647, %v1197_v40  ;;  %v1210_v32 = vsub.f32 0.0, %v1197_v40 }
0x177e   :  { %v1234_v44 = vsub.f32 0.0, %v1226_v7  ;;  %v1218_v19 = vmax.f32 %v1210_v32, 0.0 }
0x1780   :  { %v2030_v39 = vpop.eup %2029  ;;  %v1247_v46 = vmul.f32 1.442695, %v1234_v44 }
0x1781   :  { %v2032_v47 = vpop.eup %2031  ;;  %v1257_v48 = vadd.f32 1.0, %v2030_v39  ;;  %v1199_v10 = vpop.f32.mrf.mxu3 }
0x1782   :  { %v2034_v49 = vpop.eup %2033  ;;  %v1268_v51 = vmul.f32 0.6931472, %v2032_v47  ;;  %2035 = vpow2.f32 %v1247_v46  ;;  %v1200_v14 = vadd.f32 %v2607_v43, %v1199_v10 }
0x1783   :  { %2037 = vlog2.f32 %v1257_v48  ;;  %v1254_v52 = vadd.f32 1.0, %v2034_v49 }
0x1784   :  { %v1280_v53 = vadd.f32 %v1268_v51, %v1216_v50  ;;  %v1227_v56 = vand.u32 2147483647, %v1200_v14  ;;  %v1211_v34 = vsub.f32 0.0, %v1200_v14 }
0x1785   :  { %2039 = vlog2.f32 %v1254_v52  ;;  %v1334_v52 = vpop.xlane.xlu0 %1333 }
0x1786   :  { %v1288_v20 = vmul.f32 -2.3025851, %v1280_v53  ;;  %v1235_v57 = vsub.f32 0.0, %v1227_v56  ;;  %v1219_v4 = vmax.f32 %v1211_v34, 0.0  ;;  %v2234_v34 = vmov 12.0  }
0x1788   :  { %v2036_v59 = vpop.eup %2035  ;;  %v1299_v58 = vmul.f32 1.442695, %v1288_v20  ;;  %v1249_v0 = vmul.f32 1.442695, %v1235_v57  ;;  %v1352_v20 = vsub.f32 %v2635_v22, %v1334_v52 }
0x1789   :  { %v2038_v1 = vpop.eup %2037  ;;  %v1258_v2 = vadd.f32 1.0, %v2036_v59 }
0x178a   :  { %2041 = vpow2.f32 %v1299_v58  ;;  %v1270_v5 = vmul.f32 0.6931472, %v2038_v1  ;;  %v1362_v54 = vmul.f32 1.442695, %v1352_v20  ;;  %v2235_v20 = vmov 0  }
0x178b   :  { %v2040_v9 = vpop.eup %2039  ;;  %2043 = vlog2.f32 %v1258_v2  ;;  %1940 = vset.pattern.permute.xlu0 %v2235_v20  ;;  %1941 = vset.pattern.permute.xlu2 %v2235_v20 }
0x178c   :  { %v1281_v11 = vadd.f32 %v1270_v5, %v1217_v42  ;;  %v1264_v15 = vmul.f32 0.6931472, %v2040_v9  ;;  %2045 = vpow2.f32 %v1249_v0  ;;  %1934 = vset.pattern.permute.xlu1 %v2235_v20 }
0x178e   :  { %v1289_v60 = vmul.f32 -2.3025851, %v1281_v11  ;;  %v1278_v16 = vadd.f32 %v1264_v15, %v1214_v13 }
0x1790   :  { %v2042_v61 = vpop.eup %2041  ;;  %v1286_v18 = vmul.f32 -2.3025851, %v1278_v16  ;;  %v1301_v23 = vmul.f32 1.442695, %v1289_v60 }
0x1791   :  { %v2044_v62 = vpop.eup %2043  ;;  %v1312_v63 = vmul.f32 2.0, %v2042_v61 }
0x1792   :  { %v2046_v35 = vpop.eup %2045  ;;  %v1295_v24 = vmul.f32 1.442695, %v1286_v18  ;;  %v1272_v12 = vmul.f32 0.6931472, %v2044_v62 }
0x1793   :  { %v1259_v25 = vadd.f32 1.0, %v2046_v35  ;;  %v2689_v26 = vadd.f32 1e-07, %v1312_v63 }
0x1794   :  { %2047 = vpow2.f32 %v1295_v24  ;;  %v1282_v28 = vadd.f32 %v1272_v12, %v1218_v19 }
0x1795   :  { %2049 = vlog2.f32 %v1259_v25  ;;  %v1335_v29 = vsel %vm1325_vm12, %v2689_v26, -inf }
0x1796   :  { %2051 = vpow2.f32 %v1301_v23  ;;  %v1290_v31 = vmul.f32 -2.3025851, %v1282_v28  ;;  %1336 = vmax.xlane.f32.xlu1 %v1335_v29 }
0x1798   :  { %v1303_v33 = vmul.f32 1.442695, %v1290_v31 }
0x179a   :  { %v2048_v55 = vpop.eup %2047  ;;  %2053 = vpow2.f32 %v1303_v33 }
0x179b   :  { %v2050_v45 = vpop.eup %2049  ;;  %v1310_v3 = vmul.f32 2.0, %v2048_v55 }
0x179c   :  { %v2052_v27 = vpop.eup %2051  ;;  %v1274_v30 = vmul.f32 0.6931472, %v2050_v45 }
0x179d   :  { %v2693_v36 = vadd.f32 1e-07, %v1310_v3  ;;  %v1313_v6 = vmul.f32 2.0, %v2052_v27 }
0x179e   :  { %v1283_v37 = vadd.f32 %v1274_v30, %v1219_v4 }
0x179f   :  { %v1329_v38 = vsel %vm1325_vm12, %v2693_v36, -inf  ;;  %v2699_v46 = vadd.f32 1e-07, %v1313_v6 }
0x17a0   :  { %v2054_v40 = vpop.eup %2053  ;;  %v1291_v7 = vmul.f32 -2.3025851, %v1283_v37  ;;  %1330 = vmax.xlane.f32.xlu2 %v1329_v38  ;;  %v2113_v37 = vld [vmem:[%s3018_s0] sm:$0xff] }
0x17a1   :  { %v1314_v41 = vmul.f32 2.0, %v2054_v40  ;;  %v1338_v48 = vsel %vm1325_vm12, %v2699_v46, -inf  ;;  %v1551_v6 = vmul.f32 127.0, %v2113_v37 }
0x17a2   :  { %v1305_v44 = vmul.f32 1.442695, %v1291_v7 }
0x17a3   :  { %v2697_v39 = vadd.f32 1e-07, %v1314_v41  ;;  %v1328_v10 = vpop.xlane.xlu1 %1327  ;;  %v1903_v7 = vadd.f32 -69.0, %v1551_v6  ;;  %vm1614_vm7 = vcmp.le.f32.partialorder %v1551_v6, 0.0 }
0x17a4   :  { %2055 = vpow2.f32 %v1305_v44  ;;  %v1350_v51 = vsub.f32 %v2675_v17, %v1328_v10 }
0x17a5   :  { %v1341_v47 = vsel %vm1325_vm12, %v2697_v39, -inf }
0x17a6   :  { %1342 = vmax.xlane.f32.xlu0 %v1341_v47  ;;  %v1358_v53 = vmul.f32 1.442695, %v1350_v51  ;;  %v1567_v47 = vmul.f32 0.6931472, %v1903_v7 }
0x17a8   :  { %1339 = vmax.xlane.f32.xlu2 %v1338_v48  ;;  %2057 = vpow2.f32 %v1358_v53 }
0x17a9   :  { %2059 = vpow2.f32 %v1362_v54 }
0x17aa   :  { %v2056_v49 = vpop.eup %2055 }
0x17ab   :  { %v1315_v50 = vmul.f32 2.0, %v2056_v49 }
0x17ad   :  { %v2706_v14 = vadd.f32 1e-07, %v1315_v50 }
0x17ae   :  { %v2711_v57 = vpop.eup %2057 }
0x17af   :  { %v1344_v56 = vsel %vm1325_vm12, %v2706_v14, -inf  ;;  %v2715_v59 = vpop.eup %2059 }
0x17b0   :  { %1345 = vmax.xlane.f32.xlu1 %v1344_v56 }
0x17ba   :  { %1382 = vrot.lane.b32.xlu0 %v2711_v57, %s2233_s6 }
0x17c0   :  { %1386 = vrot.lane.b32.xlu2 %v2715_v59, %s2233_s6 }
0x17dc   :  { %v1202_v28 = vpop.f32.mrf.mxu3 }
0x17dd   :  { %v1203_v29 = vadd.f32 %v2607_v43, %v1202_v28  ;;  %v2114_v43 = vld [vmem:[%s3018_s0 + $0x18] sm:$0xff] }
0x17de   :  { %v1554_v38 = vmul.f32 127.0, %v2114_v43 }
0x17df   :  { %v1228_v31 = vand.u32 2147483647, %v1203_v29  ;;  %v1212_v49 = vsub.f32 0.0, %v1203_v29 }
0x17e0   :  { %v1906_v41 = vadd.f32 -69.0, %v1554_v38  ;;  %vm1617_vm8 = vcmp.le.f32.partialorder %v1554_v38, 0.0  ;;  %v2118_v38 = vld [vmem:[%s3018_s0 + $0x38] sm:$0xff] }
0x17e1   :  { %v1236_v33 = vsub.f32 0.0, %v1228_v31  ;;  %v1220_v56 = vmax.f32 %v1212_v49, 0.0  ;;  %v2117_v31 = vld [vmem:[%s3018_s0 + $0x30] sm:$0xff] }
0x17e2   :  { %v1570_v10 = vmul.f32 0.6931472, %v1906_v41  ;;  %v1558_v41 = vmul.f32 127.0, %v2118_v38 }
0x17e3   :  { %v1251_v55 = vmul.f32 1.442695, %v1236_v33  ;;  %v1557_v33 = vmul.f32 127.0, %v2117_v31 }
0x17e4   :  { %vm1621_vm0 = vcmp.le.f32.partialorder %v1558_v41, 0.0 }
0x17e5   :  { %vm1620_vm14 = vcmp.le.f32.partialorder %v1557_v33, 0.0 }
0x1809   :  { %v1337_v58 = vpop.xlane.xlu1 %1336 }
0x180a   :  { %v1353_v21 = vsub.f32 %v2689_v26, %v1337_v58 }
0x180c   :  { %v1364_v0 = vmul.f32 1.442695, %v1353_v21 }
0x180e   :  { %2061 = vpow2.f32 %v1364_v0 }
0x1813   :  { %v1331_v1 = vpop.xlane.xlu2 %1330 }
0x1814   :  { %v2720_v2 = vpop.eup %2061  ;;  %v1351_v42 = vsub.f32 %v2693_v36, %v1331_v1 }
0x1815   :  { %1388 = vrot.lane.b32.xlu0 %v2720_v2, %s2233_s6 }
0x1816   :  { %v1360_v5 = vmul.f32 1.442695, %v1351_v42 }
0x1818   :  { %2063 = vpow2.f32 %v1360_v5  ;;  %v2115_v5 = vld [vmem:[%s3018_s0 + $0x8] sm:$0xff] }
0x1819   :  { %v1343_v9 = vpop.xlane.xlu0 %1342 }
0x181a   :  { %v1355_v11 = vsub.f32 %v2697_v39, %v1343_v9  ;;  %v2761_v9 = vmul.f32 127.0, %v2115_v5 }
0x181b   :  { %v1340_v13 = vpop.xlane.xlu2 %1339 }
0x181c   :  { %v1368_v15 = vmul.f32 1.442695, %v1355_v11  ;;  %v1354_v32 = vsub.f32 %v2699_v46, %v1340_v13  ;;  %v2116_v11 = vld [vmem:[%s3018_s0 + $0x20] sm:$0xff]  ;;  %vm1615_vm11 = vcmp.le.f32.partialorder %v2761_v9, 0.0 }
0x181d   :  { %v2766_v13 = vmul.f32 127.0, %v2116_v11 }
0x181e   :  { %v2727_v60 = vpop.eup %2063  ;;  %2065 = vpow2.f32 %v1368_v15  ;;  %v1366_v16 = vmul.f32 1.442695, %v1354_v32 }
0x181f   :  { %1384 = vrot.lane.b32.xlu1 %v2727_v60, %s2233_s6  ;;  %vm1618_vm4 = vcmp.le.f32.partialorder %v2766_v13, 0.0 }
0x1820   :  { %2067 = vpow2.f32 %v1366_v16  ;;  %v1904_v16 = vadd.f32 -69.0, %v2761_v9 }
0x1823   :  { %v1346_v61 = vpop.xlane.xlu1 %1345  ;;  %v1387_v24 = vpop.permute.xlu2 %1386 }
0x1824   :  { %v2731_v18 = vpop.eup %2065  ;;  %v1356_v62 = vsub.f32 %v2706_v14, %v1346_v61  ;;  %v1413_v25 = vsel %vm1406_vm3, %v1387_v24, 0.0 }
0x1825   :  { %1392 = vrot.lane.b32.xlu0 %v2731_v18, %s2233_s6 }
0x1826   :  { %v2736_v63 = vpop.eup %2067  ;;  %v1370_v19 = vmul.f32 1.442695, %v1356_v62  ;;  %v1907_v62 = vadd.f32 -69.0, %v2766_v13 }
0x1827   :  { %1390 = vrot.lane.b32.xlu1 %v2736_v63, %s2233_s6 }
0x1828   :  { %2069 = vpow2.f32 %v1370_v19  ;;  %v1571_v29 = vmul.f32 0.6931472, %v1907_v62 }
0x1829   :  { %2071 = vrcp.f32 %v2234_v34 }
0x182a   :  { %2073 = vpow2.f32 %v1251_v55 }
0x182c   :  { %v1383_v23 = vpop.permute.xlu0 %1382 }
0x182d   :  { %v1407_v12 = vsel %vm1406_vm3, %v1383_v23, 0.0 }
0x182e   :  { %v2740_v35 = vpop.eup %2069 }
0x182f   :  { %1394 = vrot.lane.b32.xlu2 %v2740_v35, %s2233_s6  ;;  %v2072_v45 = vpop.eup %2071 }
0x1830   :  { %v1576_v3 = vmul.f32 12.0, %v2072_v45  ;;  %v2074_v27 = vpop.eup %2073  ;;  %vm1580_vm6 = vweird.f32 %v2072_v45 }
0x1831   :  { %v1260_v30 = vadd.f32 1.0, %v2074_v27  ;;  %v1909_v27 = vadd.f32 -69.0, %v1557_v33 }
0x1832   :  { %v1577_v4 = vsub.f32 1.0, %v1576_v3 }
0x1833   :  { %2075 = vlog2.f32 %v1260_v30  ;;  %v1573_v7 = vmul.f32 0.6931472, %v1909_v27 }
0x1834   :  { %v1578_v40 = vmul.f32 %v2072_v45, %v1577_v4 }
0x1836   :  { %v1579_v44 = vadd.f32 %v2072_v45, %v1578_v40 }
0x1838   :  { %v2753_v50 = vsel %vm1580_vm6, %v2072_v45, %v1579_v44 }
0x1839   :  { %v2076_v48 = vpop.eup %2075  ;;  %v1582_v51 = vmul.f32 %v2753_v50, %v1567_v47  ;;  %v1585_v53 = vmul.f32 %v2753_v50, %v1570_v10  ;;  %v1586_v4 = vmul.f32 %v2753_v50, %v1571_v29  ;;  %v1588_v49 = vmul.f32 %v2753_v50, %v1573_v7 }
0x183a   :  { %v1276_v52 = vmul.f32 0.6931472, %v2076_v48 }
0x183b   :  { %v1590_v54 = vmul.f32 1.442695, %v1582_v51  ;;  %v1596_v21 = vmul.f32 1.442695, %v1585_v53  ;;  %v1598_v44 = vmul.f32 1.442695, %v1586_v4 }
0x183c   :  { %v1284_v58 = vadd.f32 %v1276_v52, %v1220_v56  ;;  %v1910_v51 = vadd.f32 -69.0, %v1558_v41  ;;  %v1602_v56 = vmul.f32 1.442695, %v1588_v49 }
0x183d   :  { %2077 = vpow2.f32 %v1590_v54 }
0x183e   :  { %v1292_v42 = vmul.f32 -2.3025851, %v1284_v58  ;;  %2079 = vpow2.f32 %v1596_v21  ;;  %v1574_v20 = vmul.f32 0.6931472, %v1910_v51 }
0x1840   :  { %v1307_v15 = vmul.f32 1.442695, %v1292_v42 }
0x1842   :  { %2081 = vpow2.f32 %v1307_v15 }
0x1843   :  { %v2078_v61 = vpop.eup %2077 }
0x1844   :  { %v2080_v23 = vpop.eup %2079 }
0x1845   :  { %v1609_v34 = vmul.f32 440.0, %v2080_v23 }
0x1847   :  { %v2779_v30 = vsel %vm1617_vm8, 0.0, %v1609_v34  ;;  %vm1799_vm8 = vcmask 7168  }
0x1848   :  { %v2082_v3 = vpop.eup %2081  ;;  %vm1633_vm10 = vcmp.gt.f32.partialorder %v2779_v30, 0.0 }
0x1849   :  { %v1316_v6 = vmul.f32 2.0, %v2082_v3  ;;  %v1641_v10 = vsel %vm1633_vm10, 1.0, %v2228_v8  ;;  %vm1808_vm10 = vcmask 138240  }
0x184b   :  { %v2788_v48 = vadd.f32 1e-07, %v1316_v6 }
0x184d   :  { %v1347_v53 = vsel %vm1325_vm12, %v2788_v48, -inf }
0x184f   :  { %1408 = vadd.xlane.f32.xlu0 %v1407_v12  ;;  %v1606_v12 = vmul.f32 440.0, %v2078_v61  ;;  %v2119_v61 = vld [vmem:[%s3018_s0 + $0x10] sm:$0xff] }
0x1850   :  { %v1553_v62 = vmul.f32 127.0, %v2119_v61 }
0x1851   :  { %1414 = vadd.xlane.f32.xlu1 %v1413_v25  ;;  %v1568_v25 = vmul.f32 0.6931472, %v1904_v16  ;;  %v2775_v55 = vsel %vm1614_vm7, 0.0, %v1606_v12 }
0x1852   :  { %vm1630_vm9 = vcmp.gt.f32.partialorder %v2775_v55, 0.0  ;;  %vm1616_vm1 = vcmp.le.f32.partialorder %v1553_v62, 0.0 }
0x1853   :  { %v1583_v45 = vmul.f32 %v2753_v50, %v1568_v25  ;;  %v1638_v47 = vsel %vm1630_vm9, 1.0, %v2228_v8 }
0x1854   :  { %v2792_v52 = vadd.f32 %v1641_v10, %v1638_v47 }
0x1855   :  { %v1592_v40 = vmul.f32 1.442695, %v1583_v45 }
0x1856   :  { %v1696_v54 = vmin.f32 %v2792_v52, 1.0 }
0x1857   :  { %2083 = vpow2.f32 %v1592_v40 }
0x1858   :  { %2085 = vpow2.f32 %v1598_v44 }
0x1859   :  { %2087 = vpow2.f32 %v1602_v56 }
0x185d   :  { %v2084_v58 = vpop.eup %2083 }
0x185e   :  { %v2086_v21 = vpop.eup %2085 }
0x185f   :  { %v1610_v42 = vmul.f32 440.0, %v2086_v21 }
0x1861   :  { %v1626_v15 = vsel %vm1618_vm4, 0.0, %v1610_v42  ;;  %vm1817_vm4 = vcmask 269312  }
0x1862   :  { %vm1634_vm13 = vcmp.gt.f32.partialorder %v1626_v15, 0.0 }
0x1863   :  { %v2808_v13 = vsel %vm1634_vm13, 1.0, %v2228_v8 }
0x1887   :  { %v1389_v0 = vpop.permute.xlu0 %1388 }
0x1888   :  { %v1416_v1 = vsel %vm1406_vm3, %v1389_v0, 0.0  ;;  %v1589_v0 = vmul.f32 %v2753_v50, %v1574_v20 }
0x1889   :  { %1417 = vadd.xlane.f32.xlu0 %v1416_v1  ;;  %v1395_v32 = vpop.permute.xlu2 %1394  ;;  %v1607_v1 = vmul.f32 440.0, %v2084_v58 }
0x188a   :  { %v1425_v19 = vsel %vm1406_vm3, %v1395_v32, 0.0  ;;  %v1604_v5 = vmul.f32 1.442695, %v1589_v0  ;;  %v2088_v32 = vpop.eup %2087 }
0x188b   :  { %v1623_v11 = vsel %vm1615_vm11, 0.0, %v1607_v1  ;;  %v1612_v16 = vmul.f32 440.0, %v2088_v32 }
0x188c   :  { %2089 = vpow2.f32 %v1604_v5  ;;  %vm1631_vm12 = vcmp.gt.f32.partialorder %v1623_v11, 0.0 }
0x188d   :  { %v1639_v9 = vsel %vm1631_vm12, 1.0, %v2228_v8  ;;  %vm1826_vm12 = vcmask 277504  }
0x188e   :  { %v2814_v12 = vadd.f32 %v2808_v13, %v1639_v9 }
0x1890   :  { %v1697_v29 = vmin.f32 %v2814_v12, 1.0 }
0x1891   :  { %v1385_v24 = vpop.permute.xlu1 %1384  ;;  %1426 = vadd.xlane.f32.xlu0 %v1425_v19  ;;  %v2810_v19 = vsel %vm1620_vm14, 0.0, %v1612_v16 }
0x1892   :  { %v1410_v28 = vsel %vm1406_vm3, %v1385_v24, 0.0  ;;  %v2090_v23 = vpop.eup %2089  ;;  %v1905_v24 = vadd.f32 -69.0, %v1553_v62  ;;  %vm1636_vm15 = vcmp.gt.f32.partialorder %v2810_v19, 0.0 }
0x1893   :  { %1411 = vadd.xlane.f32.xlu2 %v1410_v28  ;;  %v1613_v25 = vmul.f32 440.0, %v2090_v23  ;;  %v2819_v31 = vsel %vm1636_vm15, 1.0, %v2228_v8 }
0x1894   :  { %v1569_v28 = vmul.f32 0.6931472, %v1905_v24  ;;  %v2826_v34 = vadd.f32 %v2819_v31, %v1641_v10  ;;  %v1702_v4 = vmin.f32 %v2819_v31, 1.0 }
0x1895   :  { %v2823_v33 = vsel %vm1621_vm0, 0.0, %v1613_v25  ;;  %v1704_v25 = vmul.f32 %v1696_v54, %v2693_v36 }
0x1896   :  { %v1584_v45 = vmul.f32 %v2753_v50, %v1569_v28  ;;  %v1699_v3 = vmin.f32 %v2826_v34, 1.0 }
0x1897   :  { %v2841_v40 = vpop.permute.xlu0 %1392 }
0x1898   :  { %v1594_v27 = vmul.f32 1.442695, %v1584_v45 }
0x1899   :  { %v1391_v37 = vpop.permute.xlu1 %1390 }
0x189a   :  { %v1419_v43 = vsel %vm1406_vm3, %v1391_v37, 0.0  ;;  %2091 = vpow2.f32 %v1594_v27 }
0x189b   :  { %1420 = vadd.xlane.f32.xlu2 %v1419_v43 }
0x18a0   :  { %v2092_v37 = vpop.eup %2091 }
0x18a1   :  { %v1608_v6 = vmul.f32 440.0, %v2092_v37 }
0x18a3   :  { %1348 = vmax.xlane.f32.xlu2 %v1347_v53  ;;  %v2837_v43 = vsel %vm1616_vm1, 0.0, %v1608_v6 }
0x18a5   :  { %1718 = vperm.xlu0 %1940, %v1696_v54  }
0x18ad   :  { %1777 = vrot.lane.b32.xlu0 %v1623_v11, %s2236_s24 }
0x18b5   :  { %1783 = vrot.lane.b32.xlu0 %v1626_v15, %s2236_s24 }
0x18bb   :  { %1723 = vperm.xlu2 %1941, %v1697_v29  }
0x18bd   :  { %1789 = vrot.lane.b32.xlu0 %v2823_v33, %s2236_s24 }
0x18c2   :  { %v2843_v7 = vpop.xlane.xlu0 %1408 }
0x18c3   :  { %1733 = vperm.xlu2 %1941, %v1699_v3  }
0x18c4   :  { %v2847_v44 = vpop.xlane.xlu1 %1414 }
0x18c5   :  { %vm1464_vm0 = vweird.f32 %v2847_v44 }
0x18cb   :  { %1748 = vperm.xlu2 %1941, %v1702_v4  }
0x18d3   :  { %1779 = vrot.lane.b32.xlu2 %v2837_v43, %s2236_s24 }
0x18fc   :  { %v2845_v38 = vpop.xlane.xlu0 %1417 }
0x1904   :  { %v2850_v51 = vpop.xlane.xlu0 %1426 }
0x1906   :  { %v1412_v41 = vpop.xlane.xlu2 %1411 }
0x1907   :  { %2093 = vrcp.f32 %v1412_v41  ;;  %v1456_v56 = vand.u32 2147483648, %v1412_v41  ;;  %v1454_v58 = vand.u32 2147483647, %v1412_v41  ;;  %vm1450_vm5 = vweird.f32 %v1412_v41 }
0x1908   :  { %2095 = vrcp.f32 %v2847_v44 }
0x1909   :  { %v1457_v42 = vor.u32 1.1754944e-38, %v1456_v56  ;;  %vm1455_vm7 = vcmp.eq.f32.partialorder %v1454_v58, 8.507059e+37 }
0x190d   :  { %v2094_v47 = vpop.eup %2093 }
0x190e   :  { %v1446_v10 = vmul.f32 %v2094_v47, %v1412_v41  ;;  %v1421_v49 = vpop.xlane.xlu2 %1420  ;;  %vm1451_vm2 = vweird.f32 %v2094_v47  ;;  %v2852_v21 = vpop.eup %2095 }
0x190f   :  { %2097 = vrcp.f32 %v1421_v49  ;;  %vm1452_vm6 = vmor %vm1450_vm5, %vm1451_vm2  ;;  %v1460_v32 = vmul.f32 %v2852_v21, %v2847_v44  ;;  %v1498_v37 = vand.u32 2147483648, %v1421_v49  ;;  %vm1492_vm11 = vweird.f32 %v1421_v49 }
0x1910   :  { %v1447_v53 = vsub.f32 1.0, %v1446_v10  ;;  %vm1465_vm15 = vweird.f32 %v2852_v21 }
0x1911   :  { %v1461_v27 = vsub.f32 1.0, %v1460_v32  ;;  %vm1466_vm1 = vmor %vm1464_vm0, %vm1465_vm15  ;;  %v1707_v32 = vmul.f32 %v1699_v3, %v2699_v46  ;;  %vm1478_vm0 = vweird.f32 %v2845_v38 }
0x1912   :  { %v1448_v20 = vmul.f32 %v2094_v47, %v1447_v53 }
0x1913   :  { %v1462_v52 = vmul.f32 %v2852_v21, %v1461_v27 }
0x1914   :  { %v1449_v0 = vadd.f32 %v2094_v47, %v1448_v20  ;;  %v1499_v20 = vor.u32 1.1754944e-38, %v1498_v37 }
0x1915   :  { %v2098_v1 = vpop.eup %2097 }
0x1916   :  { %v1488_v5 = vmul.f32 %v2098_v1, %v1421_v49  ;;  %v1349_v11 = vpop.xlane.xlu2 %1348  ;;  %v1453_v15 = vsel %vm1452_vm6, %v2094_v47, %v1449_v0  ;;  %vm1493_vm9 = vweird.f32 %v2098_v1  ;;  %vm1632_vm6 = vcmp.gt.f32.partialorder %v2837_v43, 0.0 }
0x1917   :  { %v1357_v16 = vsub.f32 %v2788_v48, %v1349_v11  ;;  %v1719_v61 = vpop.permute.xlu0 %1718  ;;  %v1458_v62 = vsel %vm1455_vm7, %v1457_v42, %v1453_v15  ;;  %vm1494_vm13 = vmor %vm1492_vm11, %vm1493_vm9  ;;  %vm1637_vm9 = vcmp.gt.f32.partialorder %v2823_v33, 0.0  ;;  %vm1436_vm11 = vweird.f32 %v2843_v7 }
0x1918   :  { %v1489_v9 = vsub.f32 1.0, %v1488_v5  ;;  %v1544_v23 = vmul.f32 %v2727_v60, %v1458_v62  ;;  %v1760_v47 = vmul.f32 %v1719_v61, %v2693_v36  ;;  %v1496_v60 = vand.u32 2147483647, %v1421_v49 }
0x1919   :  { %v1372_v24 = vmul.f32 1.442695, %v1357_v16  ;;  %v1463_v49 = vadd.f32 %v2852_v21, %v1462_v52  ;;  %v1470_v5 = vand.u32 2147483648, %v2847_v44 }
0x191a   :  { %v1490_v28 = vmul.f32 %v2098_v1, %v1489_v9  ;;  %v1752_v45 = vmul.f32 %v1719_v61, %v1544_v23  ;;  %vm1497_vm14 = vcmp.eq.f32.partialorder %v1496_v60, 8.507059e+37 }
0x191b   :  { %2099 = vpow2.f32 %v1372_v24  ;;  %v1467_v16 = vsel %vm1466_vm1, %v2852_v21, %v1463_v49  ;;  %v1471_v9 = vor.u32 1.1754944e-38, %v1470_v5  ;;  %v1645_v49 = vsel %vm1637_vm9, 1.0, %v2228_v8 }
0x191c   :  { %v1801_v6 = vsel %vm1799_vm8, %v1704_v25, %v1752_v45  ;;  %v1491_v41 = vadd.f32 %v2098_v1, %v1490_v28  ;;  %v2924_v5 = vadd.f32 %v1645_v49, %v2808_v13 }
0x191d   :  { %v1810_v53 = vsel %vm1808_vm10, %v1801_v6, %v1760_v47 }
0x191e   :  { %v1724_v10 = vpop.permute.xlu2 %1723  ;;  %v1495_v56 = vsel %vm1494_vm13, %v2098_v1, %v1491_v41  ;;  %v1468_v1 = vand.u32 2147483647, %v2847_v44  ;;  %v2120_v41 = vld [vmem:[%s3018_s0 + $0x28] sm:$0xff]  ;;  %s2237_s0 = smov [#allocation10]  }
0x191f   :  { %v1778_v54 = vpop.permute.xlu0 %1777  ;;  %v1500_v36 = vsel %vm1497_vm14, %v1499_v20, %v1495_v56  ;;  %v1761_v45 = vmul.f32 %v1724_v10, %v2635_v22  ;;  %v2905_v20 = vsel %vm1632_vm6, 1.0, %v2228_v8  ;;  %vm1520_vm6 = vweird.f32 %v2850_v51  ;;  %s1847_s28 = sshll.u32 %s2237_s0, 4  ;;  %s1848_s28 = int_to_ptr.vmem [resolvable:$true] %s1847_s28 }
0x1920   :  { %v1819_v58 = vsel %vm1817_vm4, %v1810_v53, %v1778_v54  ;;  %v1547_v11 = vmul.f32 %v2736_v63, %v1500_v36  ;;  %vm1469_vm2 = vcmp.eq.f32.partialorder %v1468_v1, 8.507059e+37  ;;  %v1700_v1 = vmin.f32 %v2924_v5, 1.0 }
0x1921   :  { %v2866_v0 = vpop.eup %2099  ;;  %v1828_v42 = vsel %vm1826_vm12, %v1819_v58, 0.0  ;;  %v1472_v25 = vsel %vm1469_vm2, %v1471_v9, %v1467_v16 }
0x1922   :  { %1836 = vst [vmem:[#allocation10 + $0x8] sm:$0xff] %v1828_v42  ;;  %1396 = vrot.lane.b32.xlu1 %v2866_v0, %s2233_s6  ;;  %v1545_v34 = vmul.f32 %v2715_v59, %v1472_v25  ;;  %v1556_v59 = vmul.f32 127.0, %v2120_v41 }
0x1924   :  { %v1753_v21 = vmul.f32 %v1724_v10, %v1545_v34  ;;  %v1908_v52 = vadd.f32 -69.0, %v1556_v59  ;;  %v1422_v10 = vsel %vm1406_vm3, %v2841_v40, 0.0  ;;  %vm1619_vm5 = vcmp.le.f32.partialorder %v1556_v59, 0.0 }
0x1926   :  { %v1734_v15 = vpop.permute.xlu2 %1733  ;;  %v1572_v12 = vmul.f32 0.6931472, %v1908_v52 }
0x1927   :  { %v1755_v61 = vmul.f32 %v1734_v15, %v1547_v11  ;;  %v1763_v62 = vmul.f32 %v1734_v15, %v2699_v46  ;;  %v1784_v23 = vpop.permute.xlu0 %1783  ;;  %v1705_v46 = vmul.f32 %v1697_v29, %v2635_v22 }
0x1928   :  { %v1587_v29 = vmul.f32 %v2753_v50, %v1572_v12  ;;  %v1695_v50 = vmin.f32 %v2905_v20, 1.0 }
0x1929   :  { %v1804_v24 = vsel %vm1799_vm8, %v1707_v32, %v1755_v61  ;;  %v1802_v27 = vsel %vm1799_vm8, %v1705_v46, %v1753_v21 }
0x192a   :  { %v1813_v44 = vsel %vm1808_vm10, %v1804_v24, %v1763_v62  ;;  %v1811_v37 = vsel %vm1808_vm10, %v1802_v27, %v1761_v45  ;;  %v1600_v22 = vmul.f32 1.442695, %v1587_v29  ;;  %v1440_v24 = vand.u32 2147483647, %v2843_v7 }
0x192b   :  { %v1822_v63 = vsel %vm1817_vm4, %v1813_v44, %v1784_v23  ;;  %v1442_v23 = vand.u32 2147483648, %v2843_v7  ;;  %v1703_v12 = vmul.f32 %v1695_v50, %v2675_v17 }
0x192c   :  { %v1831_v28 = vsel %vm1826_vm12, %v1822_v63, 0.0  ;;  %2101 = vpow2.f32 %v1600_v22  ;;  %vm1441_vm14 = vcmp.eq.f32.partialorder %v1440_v24, 8.507059e+37 }
0x192d   :  { %1839 = vst [vmem:[#allocation10 + $0x20] sm:$0xff] %v1831_v28  ;;  %2103 = vrcp.f32 %v2843_v7  ;;  %v1443_v34 = vor.u32 1.1754944e-38, %v1442_v23 }
0x192e   :  { %v2887_v3 = vpop.permute.xlu2 %1748  ;;  %2105 = vrcp.f32 %v2845_v38 }
0x192f   :  { %2107 = vrcp.f32 %v2850_v51 }
0x1932   :  { %v2102_v54 = vpop.eup %2101 }
0x1933   :  { %v1611_v53 = vmul.f32 440.0, %v2102_v54  ;;  %v2104_v13 = vpop.eup %2103  ;;  %v1524_v54 = vand.u32 2147483647, %v2850_v51 }
0x1935   :  { %v1627_v56 = vsel %vm1619_vm5, 0.0, %v1611_v53  ;;  %vm1525_vm9 = vcmp.eq.f32.partialorder %v1524_v54, 8.507059e+37 }
0x1936   :  { %v1780_v6 = vpop.permute.xlu2 %1779  ;;  %vm1635_vm7 = vcmp.gt.f32.partialorder %v1627_v56, 0.0 }
0x1937   :  { %v1820_v47 = vsel %vm1817_vm4, %v1811_v37, %v1780_v6  ;;  %v2908_v58 = vsel %vm1635_vm7, 1.0, %v2228_v8  ;;  %v1484_v37 = vand.u32 2147483648, %v2845_v38  ;;  %v1482_v6 = vand.u32 2147483647, %v2845_v38 }
0x1938   :  { %v1829_v60 = vsel %vm1826_vm12, %v1820_v47, 0.0  ;;  %v1701_v42 = vmin.f32 %v2908_v58, 1.0  ;;  %v2916_v36 = vadd.f32 %v2908_v58, %v2905_v20 }
0x1939   :  { %1837 = vst [vmem:[#allocation10 + $0x10] sm:$0xff] %v1829_v60  ;;  %v1485_v52 = vor.u32 1.1754944e-38, %v1484_v37  ;;  %vm1483_vm2 = vcmp.eq.f32.partialorder %v1482_v6, 8.507059e+37 }
0x193a   :  { %v1935_v40 = vpack.i.bf16 %v1701_v42, %v1695_v50  ;;  %v1698_v43 = vmin.f32 %v2916_v36, 1.0  ;;  %v1709_v23 = vmul.f32 %v1701_v42, %v2706_v14 }
0x194c   :  { %1423 = vadd.xlane.f32.xlu1 %v1422_v10 }
0x1965   :  { %1936 = vperm.xlu1 %1934, %v1935_v40  }
0x196d   :  { %1728 = vperm.xlu1 %1934, %v1698_v43  }
0x1975   :  { %1738 = vperm.xlu1 %1934, %v1700_v1  }
0x197d   :  { %1775 = vrot.lane.b32.xlu1 %v2775_v55, %s2236_s24  ;;  %v1432_v55 = vmul.f32 %v2104_v13, %v2843_v7 }
0x197f   :  { %v1433_v15 = vsub.f32 1.0, %v1432_v55 }
0x1981   :  { %v1434_v32 = vmul.f32 %v2104_v13, %v1433_v15 }
0x1983   :  { %v1435_v61 = vadd.f32 %v2104_v13, %v1434_v32 }
0x1985   :  { %1781 = vrot.lane.b32.xlu1 %v2779_v30, %s2236_s24  ;;  %v2106_v30 = vpop.eup %2105 }
0x1986   :  { %v1474_v16 = vmul.f32 %v2106_v30, %v2845_v38  ;;  %v2108_v9 = vpop.eup %2107  ;;  %vm1479_vm15 = vweird.f32 %v2106_v30  ;;  %v1526_v38 = vand.u32 2147483648, %v2850_v51 }
0x1987   :  { %v1516_v63 = vmul.f32 %v2108_v9, %v2850_v51  ;;  %vm1480_vm1 = vmor %vm1478_vm0, %vm1479_vm15  ;;  %vm1521_vm5 = vweird.f32 %v2108_v9 }
0x1988   :  { %v1475_v62 = vsub.f32 1.0, %v1474_v16  ;;  %vm1522_vm7 = vmor %vm1520_vm6, %vm1521_vm5 }
0x1989   :  { %v1517_v46 = vsub.f32 1.0, %v1516_v63 }
0x198a   :  { %v1476_v44 = vmul.f32 %v2106_v30, %v1475_v62 }
0x198b   :  { %v1518_v59 = vmul.f32 %v2108_v9, %v1517_v46 }
0x198c   :  { %v1477_v27 = vadd.f32 %v2106_v30, %v1476_v44 }
0x198d   :  { %1787 = vrot.lane.b32.xlu1 %v2810_v19, %s2236_s24  ;;  %v1519_v10 = vadd.f32 %v2108_v9, %v1518_v59 }
0x198e   :  { %v1481_v60 = vsel %vm1480_vm1, %v2106_v30, %v1477_v27 }
0x198f   :  { %v1486_v22 = vsel %vm1483_vm2, %v1485_v52, %v1481_v60  ;;  %v1523_v40 = vsel %vm1522_vm7, %v2108_v9, %v1519_v10 }
0x1990   :  { %v1546_v53 = vmul.f32 %v2720_v2, %v1486_v22 }
0x1994   :  { %v1397_v8 = vpop.permute.xlu1 %1396 }
0x1995   :  { %v1428_v33 = vsel %vm1406_vm3, %v1397_v8, 0.0  ;;  %vm1437_vm3 = vweird.f32 %v2104_v13  ;;  %v1527_v8 = vor.u32 1.1754944e-38, %v1526_v38  ;;  %v1710_v38 = vmul.f32 %v1702_v4, %v2788_v48 }
0x1996   :  { %1429 = vadd.xlane.f32.xlu2 %v1428_v33  ;;  %vm1438_vm13 = vmor %vm1436_vm11, %vm1437_vm3 }
0x1997   :  { %v1439_v28 = vsel %vm1438_vm13, %v2104_v13, %v1435_v61  ;;  %v1706_v13 = vmul.f32 %v1698_v43, %v2689_v26  ;;  %v1528_v2 = vsel %vm1525_vm9, %v1527_v8, %v1523_v40 }
0x1998   :  { %v1444_v21 = vsel %vm1441_vm14, %v1443_v34, %v1439_v28  ;;  %v1549_v16 = vmul.f32 %v2740_v35, %v1528_v2 }
0x1999   :  { %v1543_v7 = vmul.f32 %v2711_v57, %v1444_v21 }
0x19ae   :  { %1785 = vrot.lane.b32.xlu2 %v1627_v56, %s2236_s24 }
0x19bf   :  { %v2939_v11 = vpop.xlane.xlu1 %1423 }
0x19c0   :  { %2109 = vrcp.f32 %v2939_v11  ;;  %v1512_v35 = vand.u32 2147483648, %v2939_v11  ;;  %vm1506_vm11 = vweird.f32 %v2939_v11  ;;  %v1510_v28 = vand.u32 2147483647, %v2939_v11 }
0x19c2   :  { %vm1511_vm14 = vcmp.eq.f32.partialorder %v1510_v28, 8.507059e+37 }
0x19c6   :  { %v2110_v56 = vpop.eup %2109 }
0x19c7   :  { %v1502_v51 = vmul.f32 %v2110_v56, %v2939_v11  ;;  %vm1507_vm3 = vweird.f32 %v2110_v56  ;;  %v1708_v11 = vmul.f32 %v1700_v1, %v2697_v39 }
0x19c8   :  { %vm1508_vm13 = vmor %vm1506_vm11, %vm1507_vm3 }
0x19c9   :  { %v1503_v32 = vsub.f32 1.0, %v1502_v51 }
0x19d7   :  { %v2943_v19 = vpop.permute.xlu1 %1936 }
0x19d8   :  { %v1938_v45 = vunpack.i.l.bf16 %v2943_v19  ;;  %v1939_v15 = vunpack.i.h.bf16 %v2943_v19 }
0x19da   :  { %v1751_v47 = vmul.f32 %v1938_v45, %v1543_v7  ;;  %v1759_v29 = vmul.f32 %v1938_v45, %v2675_v17  ;;  %v1757_v9 = vmul.f32 %v1939_v15, %v1549_v16  ;;  %v1765_v19 = vmul.f32 %v1939_v15, %v2706_v14 }
0x19db   :  { %v1513_v14 = vor.u32 1.1754944e-38, %v1512_v35 }
0x19dc   :  { %v1800_v57 = vsel %vm1799_vm8, %v1703_v12, %v1751_v47  ;;  %v1806_v24 = vsel %vm1799_vm8, %v1709_v23, %v1757_v9 }
0x19dd   :  { %v1809_v50 = vsel %vm1808_vm10, %v1800_v57, %v1759_v29  ;;  %v1815_v63 = vsel %vm1808_vm10, %v1806_v24, %v1765_v19 }
0x19df   :  { %v1729_v25 = vpop.permute.xlu1 %1728 }
0x19e0   :  { %v1754_v17 = vmul.f32 %v1729_v25, %v1546_v53  ;;  %v1762_v55 = vmul.f32 %v1729_v25, %v2689_v26  ;;  %v1504_v26 = vmul.f32 %v2110_v56, %v1503_v32  ;;  %v1766_v53 = vmul.f32 %v2887_v3, %v2788_v48 }
0x19e2   :  { %v1803_v30 = vsel %vm1799_vm8, %v1706_v13, %v1754_v17  ;;  %v1505_v25 = vadd.f32 %v2110_v56, %v1504_v26 }
0x19e3   :  { %v1812_v61 = vsel %vm1808_vm10, %v1803_v30, %v1762_v55 }
0x19e4   :  { %v1509_v34 = vsel %vm1508_vm13, %v2110_v56, %v1505_v25  ;;  %v1790_v56 = vpop.permute.xlu0 %1789 }
0x19e5   :  { %v1514_v21 = vsel %vm1511_vm14, %v1513_v14, %v1509_v34 }
0x19e6   :  { %v1548_v46 = vmul.f32 %v2731_v18, %v1514_v21 }
0x19e7   :  { %v2955_v41 = vpop.permute.xlu1 %1738 }
0x19e8   :  { %v1756_v27 = vmul.f32 %v2955_v41, %v1548_v46  ;;  %v1764_v37 = vmul.f32 %v2955_v41, %v2697_v39 }
0x19ea   :  { %v1805_v7 = vsel %vm1799_vm8, %v1708_v11, %v1756_v27 }
0x19eb   :  { %v1814_v47 = vsel %vm1808_vm10, %v1805_v7, %v1764_v37 }
0x19ef   :  { %v1776_v20 = vpop.permute.xlu1 %1775 }
0x19f0   :  { %v1818_v49 = vsel %vm1817_vm4, %v1809_v50, %v1776_v20 }
0x19f1   :  { %v1827_v33 = vsel %vm1826_vm12, %v1818_v49, 0.0 }
0x19f2   :  { %1835 = vst [vmem:[#allocation10] sm:$0xff] %v1827_v33 }
0x19f7   :  { %v1782_v62 = vpop.permute.xlu1 %1781 }
0x19f8   :  { %v1821_v36 = vsel %vm1817_vm4, %v1812_v61, %v1782_v62 }
0x19f9   :  { %v1830_v43 = vsel %vm1826_vm12, %v1821_v36, 0.0 }
0x19fa   :  { %1838 = vst [vmem:[#allocation10 + $0x18] sm:$0xff] %v1830_v43 }
0x19ff   :  { %v1788_v44 = vpop.permute.xlu1 %1787 }
0x1a00   :  { %v1824_v58 = vsel %vm1817_vm4, %v1815_v63, %v1788_v44 }
0x1a01   :  { %v1833_v42 = vsel %vm1826_vm12, %v1824_v58, 0.0 }
0x1a02   :  { %1841 = vst [vmem:[#allocation10 + $0x30] sm:$0xff] %v1833_v42 }
0x1a09   :  { %v1430_v45 = vpop.xlane.xlu2 %1429 }
0x1a0a   :  { %2111 = vrcp.f32 %v1430_v45  ;;  %v1540_v29 = vand.u32 2147483648, %v1430_v45  ;;  %v1538_v5 = vand.u32 2147483647, %v1430_v45  ;;  %vm1534_vm0 = vweird.f32 %v1430_v45 }
0x1a0c   :  { %v1541_v39 = vor.u32 1.1754944e-38, %v1540_v29  ;;  %vm1539_vm2 = vcmp.eq.f32.partialorder %v1538_v5, 8.507059e+37 }
0x1a10   :  { %v2112_v6 = vpop.eup %2111 }
0x1a11   :  { %v1530_v59 = vmul.f32 %v2112_v6, %v1430_v45  ;;  %v1786_v60 = vpop.permute.xlu2 %1785  ;;  %vm1535_vm15 = vweird.f32 %v2112_v6 }
0x1a12   :  { %v1823_v18 = vsel %vm1817_vm4, %v1814_v47, %v1786_v60  ;;  %vm1536_vm1 = vmor %vm1534_vm0, %vm1535_vm15 }
0x1a13   :  { %v1531_v52 = vsub.f32 1.0, %v1530_v59  ;;  %v1832_v12 = vsel %vm1826_vm12, %v1823_v18, 0.0 }
0x1a14   :  { %1840 = vst [vmem:[#allocation10 + $0x28] sm:$0xff] %v1832_v12 }
0x1a15   :  { %v1532_v22 = vmul.f32 %v2112_v6, %v1531_v52 }
0x1a17   :  { %v1533_v1 = vadd.f32 %v2112_v6, %v1532_v22 }
0x1a19   :  { %v1537_v41 = vsel %vm1536_vm1, %v2112_v6, %v1533_v1 }
0x1a1a   :  { %v1542_v10 = vsel %vm1539_vm2, %v1541_v39, %v1537_v41 }
0x1a1b   :  { %v1550_v57 = vmul.f32 %v2866_v0, %v1542_v10 }
0x1a1d   :  { %v1758_v54 = vmul.f32 %v2887_v3, %v1550_v57 }
0x1a1f   :  { %v1807_v20 = vsel %vm1799_vm8, %v1710_v38, %v1758_v54 }
0x1a20   :  { %v1816_v0 = vsel %vm1808_vm10, %v1807_v20, %v1766_v53 }
0x1a21   :  { %v1825_v50 = vsel %vm1817_vm4, %v1816_v0, %v1790_v56 }
0x1a22   :  { %v1834_v31 = vsel %vm1826_vm12, %v1825_v50, 0.0 }
0x1a23   :  { %1842 = vst [vmem:[#allocation10 + $0x38] sm:$0xff] %v1834_v31 }
0x1a24   :  { %1855 = dma.vmem_to_hbm [thread:$0]  %s1848_s28, 1024, %s1850_s8, [#allocation6], %s2224_s9, %s2224_s9, %s2225_s10  }
0x1a25   :  { %2221 = dma.done.wait [#allocation6], 1024  }
0x1a26   :  { %2222 = vsyncadd [#allocation6], 4294966272 }
0x1a27   :  { %1860 = vsyncpa [#allocation5], 1 }
0x1a28   :  { %1861 = vsyncpa [#allocation8], 1 }
0x1a29   :  { %1862 = vsyncpa [#allocation6], 1 }

</bundles_post_ra>
